<compile_context>
chip_gen: v6e
topology: v6e:2x2x1
jax: 0.10.0
libtpu: 0.0.40
codegen_flags: <defaults>
</compile_context>

<pallas_src>
import numpy as np
import jax
import jax.numpy as jnp
from jax.experimental import pallas as pl
from jax.experimental.pallas import tpu as pltpu

# ----------------------------- configuration -------------------------------
NUM_CLASSES = 4
IN_STRIDES = [8, 16]
OUT_STRIDES = [8, 16]
STRIDE2CHANNELS = {8: 4, 16: 4}
FEAT_CHANNELS = 8
STACKED_CONVS = 2
UPSCALE_BBOX_PRED = True          # eval-mode forward -> bbox_pred *= stride
USE_SIGMOID = True
CLS_OUT_CHANNELS = NUM_CLASSES    # use_sigmoid=True -> num_classes channels
IN_CHANNELS = STRIDE2CHANNELS[IN_STRIDES[0]]   # share_conv=True
NUM_LEVELS = len(OUT_STRIDES)

LANE = 128
K_PAD = 128                                       # padded matmul K (bias row last)
CIN_PAD = ((IN_CHANNELS + 7) // 8) * 8            # pad input channels to 8
CLS_BLOCK = ((CLS_OUT_CHANNELS + 7) // 8) * 8     # 8
OUT_ROWS = CLS_BLOCK + 8                          # 16: [cls|pad|bbox|ctr|pad]
BBOX_ROW = CLS_BLOCK                              # 8
CTR_ROW = CLS_BLOCK + 4                           # 12
assert CLS_OUT_CHANNELS <= CLS_BLOCK


def bias_init_with_prob(p):
    return float(-np.log((1.0 - p) / p))


# -------------------- packed-parameter row layout ---------------------------
def _build_row_layout():
    layout = {}
    r = 0

    def alloc(name, n):
        nonlocal r
        layout[name] = r
        r += ((n + 7) // 8) * 8      # keep every block 8-sublane aligned

    alloc("convs0", 2 * FEAT_CHANNELS)            # fused cls0 + reg0
    for i in range(1, STACKED_CONVS):
        alloc(("cls", i), FEAT_CHANNELS)
        alloc(("reg", i), FEAT_CHANNELS)
    alloc("cls_pred", CLS_OUT_CHANNELS)           # padded to 8 rows
    alloc("regctr_pred", 4 + 1)                   # reg(4) + centerness(1)
    return layout, r


ROWS, PACK_ROWS = _build_row_layout()


# ------------------------------ Pallas kernel -------------------------------
def _make_head_kernel(level_meta):
    """level_meta: tuple of (H, W, N, lane_off, stride) per FPN level."""

    def kernel(x_ref, w_ref, out_ref):
        for lvl, (H, W, N, off, stride) in enumerate(level_meta):
            HW = H * W
            L = N * HW
            wro = lvl * PACK_ROWS
            x = x_ref[:, off:off + L].astype(jnp.float32)    # [CIN_PAD, L]

            # --- per-image local coords + the 9 boundary masks (hoisted) ---
            col = jax.lax.broadcasted_iota(jnp.int32, (1, L), 1)
            local = (col & (HW - 1)) if (HW & (HW - 1)) == 0 else col % HW
            if (W & (W - 1)) == 0:                           # power of two
                h = local >> (W.bit_length() - 1)
                w = local & (W - 1)
            else:
                h = local // W
                w = local % W
            okh = {-1: h >= 1, 0: None, 1: h < H - 1}
            okw = {-1: w >= 1, 0: None, 1: w < W - 1}
            masks = []
            for oy in (-1, 0, 1):
                for ox in (-1, 0, 1):
                    a, b = okh[oy], okw[ox]
                    if a is None and b is None:
                        masks.append(None)                   # center tap
                    else:
                        m = a if b is None else (b if a is None
                                                 else jnp.logical_and(a, b))
                        masks.append(m.astype(jnp.float32))

            # bias row (ones) + zero filler, built once per level and shared
            def make_pad(K):
                return jnp.concatenate(
                    [jnp.zeros((K_PAD - K - 1, L), jnp.float32),
                     jnp.ones((1, L), jnp.float32)], axis=0)

            pads = {9 * c: make_pad(9 * c) for c in {CIN_PAD, FEAT_CHANNELS}}

            def stack_full(f):
                # f: [C, L] -> [K_PAD, L]; tap k = (dy+1)*3 + (dx+1),
                # SAME zero-padding via masks; last row = ones (bias input).
                C = f.shape[0]
                parts = []
                for k in range(9):
                    oy, ox = k // 3 - 1, k % 3 - 1
                    s = oy * W + ox
                    r = f if s == 0 else pltpu.roll(f, (-s) % L, axis=1)
                    m = masks[k]
                    parts.append(r if m is None else r * m)
                parts.append(pads[9 * C])
                return jnp.concatenate(parts, axis=0)        # [K_PAD, L]

            def dense(xs, name, rows, relu):
                r0 = wro + ROWS[name]
                wm = w_ref[r0:r0 + rows, :]                  # aligned [rows,128]
                y = jnp.dot(wm, xs, preferred_element_type=jnp.float32)
                return jnp.maximum(y, 0.0) if relu else y

            # layer 0: cls & reg branches share the shifted input stack
            f01 = dense(stack_full(x), "convs0", 2 * FEAT_CHANNELS, True)
            cls_feat = f01[0:FEAT_CHANNELS]
            reg_feat = f01[FEAT_CHANNELS:2 * FEAT_CHANNELS]
            for i in range(1, STACKED_CONVS):
                cls_feat = dense(stack_full(cls_feat), ("cls", i),
                                 FEAT_CHANNELS, True)
                reg_feat = dense(stack_full(reg_feat), ("reg", i),
                                 FEAT_CHANNELS, True)

            # predictors (weight rows beyond the real outputs are zero-padded,
            # so their outputs are exactly zero -> they double as out padding)
            cls8 = dense(stack_full(cls_feat), "cls_pred", CLS_BLOCK, False)
            regctr8 = dense(stack_full(reg_feat), "regctr_pred", 8, False)
            row = jax.lax.broadcasted_iota(jnp.int32, (8, 1), 0)
            scaled = jnp.maximum(regctr8, 0.0)
            if UPSCALE_BBOX_PRED:
                scaled = scaled * float(stride)
            regout = jnp.where(row < 4, scaled, regctr8)     # bbox rows only

            out = jnp.concatenate([cls8, regout], axis=0)    # [OUT_ROWS, L]
            out_ref[:, off:off + L] = out.astype(out_ref.dtype)

    return kernel


def fcos_head_forward(feats, wpack_all):
    """feats: list of NCHW arrays (one per out_stride); wpack_all: packed
    folded weights from precompute_packed_weights.  Returns
    (cls_scores, bbox_preds, centernesses) lists of NCHW arrays."""
    segs, meta = [], []
    off = 0
    for x, stride in zip(feats, OUT_STRIDES):
        N, C, H, W = x.shape
        HW = H * W
        L = N * HW
        xl = jnp.transpose(x.reshape(N, C, HW), (1, 0, 2)).reshape(C, L)
        if C < CIN_PAD:
            xl = jnp.pad(xl, ((0, CIN_PAD - C), (0, 0)))
        segs.append(xl)
        meta.append((H, W, N, off, stride))
        off += L
    total = off
    x_cat = jnp.concatenate(segs, axis=1)                    # [CIN_PAD, total]

    kernel = _make_head_kernel(tuple(meta))
    out = pl.pallas_call(
        kernel,
        out_shape=jax.ShapeDtypeStruct((OUT_ROWS, total), jnp.float32),
        grid_spec=pltpu.PrefetchScalarGridSpec(
            num_scalar_prefetch=0,
            grid=(1,),
            in_specs=[
                pl.BlockSpec((CIN_PAD, total), lambda i: (0, 0)),
                pl.BlockSpec((NUM_LEVELS * PACK_ROWS, LANE),
                             lambda i: (0, 0)),
            ],
            out_specs=pl.BlockSpec((OUT_ROWS, total), lambda i: (0, 0)),
        ),
        compiler_params=pltpu.CompilerParams(
            dimension_semantics=("arbitrary",)),
    )(x_cat, wpack_all)

    cls_scores, bbox_preds, centernesses = [], [], []
    for (H, W, N, off, stride) in meta:
        L = N * H * W
        seg = out[:, off:off + L].reshape(OUT_ROWS, N, H, W)
        seg = jnp.transpose(seg, (1, 0, 2, 3))               # [N, OUT_ROWS, H, W]
        cls_scores.append(seg[:, 0:CLS_OUT_CHANNELS])
        bbox_preds.append(seg[:, BBOX_ROW:BBOX_ROW + 4])
        centernesses.append(seg[:, CTR_ROW:CTR_ROW + 1])
    return cls_scores, bbox_preds, centernesses


# ------------------- host-side weight folding & packing ---------------------
def _pad_axis(a, axis, target):
    pad = target - a.shape[axis]
    if pad <= 0:
        return a
    widths = [(0, 0)] * a.ndim
    widths[axis] = (0, pad)
    return jnp.pad(a, widths)


def _fold_sep_conv(dw_w, dw_b, pw_w, pw_b, bn_s, bn_b):
    """Fold dw3x3(+b) -> pw1x1(+b) -> BN(eval) into one dense 3x3 conv.
    dw_w:[9,Cin] dw_b:[Cin] pw_w:[Cin,F] pw_b:[F] bn_s:[F] bn_b:[F]
    returns W:[F, 9*Cin_pad], b:[F]."""
    cin = dw_w.shape[1]
    cpad = ((cin + 7) // 8) * 8
    dw_w = _pad_axis(dw_w, 1, cpad)
    dw_b = _pad_axis(dw_b, 0, cpad)
    pw_w = _pad_axis(pw_w, 0, cpad)
    Wk = jnp.einsum('kc,cf->kcf', dw_w, pw_w) * bn_s[None, None, :]
    Wmat = Wk.reshape(9 * cpad, -1).T                        # [F, 9*cpad]
    b = (dw_b @ pw_w + pw_b) * bn_s + bn_b                   # [F]
    return Wmat, b


def _fold_pred(w9, b):
    """w9:[9,F,Cout] b:[Cout] -> W:[Cout, 9*F], b:[Cout]."""
    K = w9.shape[0] * w9.shape[1]
    return w9.reshape(K, -1).T, b


def pack_level_weights(params, j):
    """Pack every folded per-level weight/bias into one [PACK_ROWS, 128] f32
    array (weights in cols 0:K, bias in col 127)."""
    pack = jnp.zeros((PACK_ROWS, LANE), jnp.float32)

    def put(pack, name, Wmat, b):
        r0 = ROWS[name]
        rows, K = Wmat.shape
        # bias lives in column LANE-1: make sure weights can never clobber it
        assert K <= LANE - 2, "weights would overwrite the bias column"
        assert r0 + rows <= PACK_ROWS
        pack = pack.at[r0:r0 + rows, 0:K].set(Wmat.astype(jnp.float32))
        return pack.at[r0:r0 + rows, LANE - 1].set(b.astype(jnp.float32))

    def fold(branch, i):
        return _fold_sep_conv(
            params[f"{branch}_dw_w{i}"], params[f"{branch}_dw_b{i}"][0],
            params[f"{branch}_pw_w{i}"], params[f"{branch}_pw_b{i}"][0],
            params[f"{branch}_bn_s{i}_l{j}"][0],
            params[f"{branch}_bn_b{i}_l{j}"][0])

    # layer 0: fuse cls/reg into one [2F, K] block (shared input stack)
    Wc, bc = fold("cls", 0)
    Wr, br = fold("reg", 0)
    pack = put(pack, "convs0",
               jnp.concatenate([Wc, Wr], axis=0),
               jnp.concatenate([bc, br], axis=0))
    for i in range(1, STACKED_CONVS):
        for branch in ("cls", "reg"):
            pack = put(pack, (branch, i), *fold(branch, i))

    pack = put(pack, "cls_pred",
               *_fold_pred(params["cls_pred_w"], params["cls_pred_b"][0]))
    w_rc = jnp.concatenate([params["reg_pred_w"], params["ctr_pred_w"]],
                           axis=2)                           # [9, F, 5]
    b_rc = jnp.concatenate([params["reg_pred_b"][0], params["ctr_pred_b"][0]])
    pack = put(pack, "regctr_pred", *_fold_pred(w_rc, b_rc))
    return pack


def precompute_packed_weights(params):
    """Done ONCE at module-build time (hoisted out of the forward path)."""
    return jnp.concatenate(
        [pack_level_weights(params, j) for j in range(NUM_LEVELS)], axis=0)


# ------------------------- parameters (deterministic) ------------------------
def init_params(key):
    keys = iter(jax.random.split(key, 64))

    def nrm(shape, std=0.01):
        return std * jax.random.normal(next(keys), shape, jnp.float32)

    params = {}
    for branch in ("cls", "reg"):
        for i in range(STACKED_CONVS):
            cin = IN_CHANNELS if i == 0 else FEAT_CHANNELS
            params[f"{branch}_dw_w{i}"] = nrm((9, cin))              # [k, C]
            params[f"{branch}_dw_b{i}"] = jnp.zeros((1, cin), jnp.float32)
            params[f"{branch}_pw_w{i}"] = nrm((cin, FEAT_CHANNELS))  # [Cin, F]
            params[f"{branch}_pw_b{i}"] = jnp.zeros((1, FEAT_CHANNELS),
                                                    jnp.float32)
            # independent BN per output stride (share_bn=False), folded (eval)
            for j in range(len(OUT_STRIDES)):
                gamma = 1.0 + 0.1 * jax.random.normal(next(keys),
                                                      (FEAT_CHANNELS,))
                beta = 0.05 * jax.random.normal(next(keys), (FEAT_CHANNELS,))
                mean = 0.1 * jax.random.normal(next(keys), (FEAT_CHANNELS,))
                var = 0.5 + jnp.abs(jax.random.normal(next(keys),
                                                      (FEAT_CHANNELS,)))
                scale = gamma / jnp.sqrt(var + 1e-5)
                bias = beta - mean * scale
                params[f"{branch}_bn_s{i}_l{j}"] = scale.reshape(1, -1).astype(
                    jnp.float32)
                params[f"{branch}_bn_b{i}_l{j}"] = bias.reshape(1, -1).astype(
                    jnp.float32)

    params["cls_pred_w"] = nrm((9, FEAT_CHANNELS, CLS_OUT_CHANNELS))
    params["cls_pred_b"] = jnp.full((1, CLS_OUT_CHANNELS),
                                    bias_init_with_prob(0.01), jnp.float32)
    params["reg_pred_w"] = nrm((9, FEAT_CHANNELS, 4))
    params["reg_pred_b"] = jnp.zeros((1, 4), jnp.float32)
    params["ctr_pred_w"] = nrm((9, FEAT_CHANNELS, 1))
    params["ctr_pred_b"] = jnp.zeros((1, 1), jnp.float32)
    return params


# --------------------------- pure-JAX reference -----------------------------
def ref_level(x_nchw, params, j, stride):
    x = jnp.transpose(x_nchw, (0, 2, 3, 1))      # NHWC
    dn = ('NHWC', 'HWIO', 'NHWC')

    def conv(x, w, b, groups=1):
        y = jax.lax.conv_general_dilated(x, w, (1, 1), 'SAME',
                                         dimension_numbers=dn,
                                         feature_group_count=groups)
        return y + b.reshape(1, 1, 1, -1)

    def branch(x, bname):
        f = x
        for i in range(STACKED_CONVS):
            cin = f.shape[-1]
            dw = params[f"{bname}_dw_w{i}"].reshape(3, 3, 1, cin)
            f = conv(f, dw, params[f"{bname}_dw_b{i}"][0], groups=cin)
            pw = params[f"{bname}_pw_w{i}"].reshape(1, 1, cin, FEAT_CHANNELS)
            f = conv(f, pw, params[f"{bname}_pw_b{i}"][0])
            f = f * params[f"{bname}_bn_s{i}_l{j}"][0] \
                + params[f"{bname}_bn_b{i}_l{j}"][0]
            f = jnp.maximum(f, 0.0)
        return f

    cls_feat = branch(x, "cls")
    reg_feat = branch(x, "reg")

    def pred(f, w9, b):
        cout = w9.shape[-1]
        return conv(f, w9.reshape(3, 3, FEAT_CHANNELS, cout), b[0])

    cls_score = pred(cls_feat, params["cls_pred_w"], params["cls_pred_b"])
    bbox = jnp.maximum(pred(reg_feat, params["reg_pred_w"],
                            params["reg_pred_b"]), 0.0) * float(stride)
    ctr = pred(reg_feat, params["ctr_pred_w"], params["ctr_pred_b"])
    to_nchw = lambda y: jnp.transpose(y, (0, 3, 1, 2))
    return to_nchw(cls_score), to_nchw(bbox), to_nchw(ctr)


# ---------------------------------- main -------------------------------------
if __name__ == "__main__":
    key = jax.random.PRNGKey(0)
    kp, kx0, kx1 = jax.random.split(key, 3)
    params = init_params(kp)

    feats = [
        jax.random.normal(kx0, (2, IN_CHANNELS, 16, 16), jnp.float32),  # s=8
        jax.random.normal(kx1, (2, IN_CHANNELS, 8, 8), jnp.float32),    # s=16
    ]

    # weight folding/packing hoisted out of the per-forward path (done once)
    wpack_all = jax.block_until_ready(precompute_packed_weights(params))

    forward = jax.jit(fcos_head_forward)
    cls_scores, bbox_preds, centernesses = forward(feats, wpack_all)
    jax.block_until_ready((cls_scores, bbox_preds, centernesses))

    # verify against a pure-JAX reference (unfused, original op order)
    for j, (x, stride) in enumerate(zip(feats, OUT_STRIDES)):
        r_cls, r_bbox, r_ctr = ref_level(x, params, j, stride)
        np.testing.assert_allclose(np.asarray(cls_scores[j]),
                                   np.asarray(r_cls), rtol=1e-4, atol=1e-4)
        np.testing.assert_allclose(np.asarray(bbox_preds[j]),
                                   np.asarray(r_bbox), rtol=1e-4, atol=1e-4)
        np.testing.assert_allclose(np.asarray(centernesses[j]),
                                   np.asarray(r_ctr), rtol=1e-4, atol=1e-4)

    print("KERNEL_OK")
</pallas_src>

<mosaic_0001>
module attributes {stable_mosaic.version = 11 : i64} {
  func.func @kernel(%arg0: i32, %arg1: memref<8x640xf32, #tpu.memory_space<vmem>>, %arg2: memref<96x128xf32, #tpu.memory_space<vmem>>, %arg3: memref<16x640xf32, #tpu.memory_space<vmem>>) attributes {dimension_semantics = [#tpu.dimension_semantics<arbitrary>], iteration_bounds = array<i64: 1>, scalar_prefetch = 0 : i64, scratch_operands = 0 : i64, tpu.core_type = #tpu.core_type<tc>, window_params = [{pipeline_mode = #tpu.pipeline_mode<synchronous>, transform_indices = @transform_0, window_bounds = array<i64: 8, 640>}, {pipeline_mode = #tpu.pipeline_mode<synchronous>, transform_indices = @transform_1, window_bounds = array<i64: 96, 128>}, {pipeline_mode = #tpu.pipeline_mode<synchronous>, transform_indices = @transform_2, window_bounds = array<i64: 16, 640>}]} {
    %c0 = arith.constant 0 : index
    %c0_0 = arith.constant 0 : index
    %0 = vector.load %arg1[%c0, %c0_0] : memref<8x640xf32, #tpu.memory_space<vmem>>, vector<8x512xf32>
    %1 = tpu.iota {dimensions = array<i32: 1>} : vector<1x512xi32>
    %c255_i32 = arith.constant 255 : i32
    %2 = vector.broadcast %c255_i32 : i32 to vector<1x512xi32>
    %3 = arith.andi %1, %2 : vector<1x512xi32>
    %c4_i32 = arith.constant 4 : i32
    %4 = vector.broadcast %c4_i32 : i32 to vector<1x512xi32>
    %5 = arith.shrsi %3, %4 : vector<1x512xi32>
    %c15_i32 = arith.constant 15 : i32
    %6 = vector.broadcast %c15_i32 : i32 to vector<1x512xi32>
    %7 = arith.andi %3, %6 : vector<1x512xi32>
    %c1_i32 = arith.constant 1 : i32
    %8 = vector.broadcast %c1_i32 : i32 to vector<1x512xi32>
    %9 = arith.cmpi sge, %5, %8 : vector<1x512xi32>
    %c15_i32_1 = arith.constant 15 : i32
    %10 = vector.broadcast %c15_i32_1 : i32 to vector<1x512xi32>
    %11 = arith.cmpi slt, %5, %10 : vector<1x512xi32>
    %c1_i32_2 = arith.constant 1 : i32
    %12 = vector.broadcast %c1_i32_2 : i32 to vector<1x512xi32>
    %13 = arith.cmpi sge, %7, %12 : vector<1x512xi32>
    %c15_i32_3 = arith.constant 15 : i32
    %14 = vector.broadcast %c15_i32_3 : i32 to vector<1x512xi32>
    %15 = arith.cmpi slt, %7, %14 : vector<1x512xi32>
    %16 = arith.andi %9, %13 : vector<1x512xi1>
    %17 = arith.extui %16 : vector<1x512xi1> to vector<1x512xi32>
    %18 = arith.sitofp %17 : vector<1x512xi32> to vector<1x512xf32>
    %19 = arith.extui %9 : vector<1x512xi1> to vector<1x512xi32>
    %20 = arith.sitofp %19 : vector<1x512xi32> to vector<1x512xf32>
    %21 = arith.andi %9, %15 : vector<1x512xi1>
    %22 = arith.extui %21 : vector<1x512xi1> to vector<1x512xi32>
    %23 = arith.sitofp %22 : vector<1x512xi32> to vector<1x512xf32>
    %24 = arith.extui %13 : vector<1x512xi1> to vector<1x512xi32>
    %25 = arith.sitofp %24 : vector<1x512xi32> to vector<1x512xf32>
    %26 = arith.extui %15 : vector<1x512xi1> to vector<1x512xi32>
    %27 = arith.sitofp %26 : vector<1x512xi32> to vector<1x512xf32>
    %28 = arith.andi %11, %13 : vector<1x512xi1>
    %29 = arith.extui %28 : vector<1x512xi1> to vector<1x512xi32>
    %30 = arith.sitofp %29 : vector<1x512xi32> to vector<1x512xf32>
    %31 = arith.extui %11 : vector<1x512xi1> to vector<1x512xi32>
    %32 = arith.sitofp %31 : vector<1x512xi32> to vector<1x512xf32>
    %33 = arith.andi %11, %15 : vector<1x512xi1>
    %34 = arith.extui %33 : vector<1x512xi1> to vector<1x512xi32>
    %35 = arith.sitofp %34 : vector<1x512xi32> to vector<1x512xf32>
    %cst = arith.constant 0.000000e+00 : f32
    %36 = vector.broadcast %cst : f32 to vector<55x512xf32>
    %cst_4 = arith.constant 1.000000e+00 : f32
    %37 = vector.broadcast %cst_4 : f32 to vector<1x512xf32>
    %38 = tpu.concatenate %36, %37 in 0 : vector<55x512xf32>, vector<1x512xf32> -> vector<56x512xf32>
    %c17_i32 = arith.constant 17 : i32
    %39 = tpu.dynamic_rotate %0 by %c17_i32 dim 1 : vector<8x512xf32>, i32 -> vector<8x512xf32>
    %40 = vector.broadcast %18 : vector<1x512xf32> to vector<8x512xf32>
    %41 = arith.mulf %39, %40 : vector<8x512xf32>
    %c16_i32 = arith.constant 16 : i32
    %42 = tpu.dynamic_rotate %0 by %c16_i32 dim 1 : vector<8x512xf32>, i32 -> vector<8x512xf32>
    %43 = vector.broadcast %20 : vector<1x512xf32> to vector<8x512xf32>
    %44 = arith.mulf %42, %43 : vector<8x512xf32>
    %c15_i32_5 = arith.constant 15 : i32
    %45 = tpu.dynamic_rotate %0 by %c15_i32_5 dim 1 : vector<8x512xf32>, i32 -> vector<8x512xf32>
    %46 = vector.broadcast %23 : vector<1x512xf32> to vector<8x512xf32>
    %47 = arith.mulf %45, %46 : vector<8x512xf32>
    %c1_i32_6 = arith.constant 1 : i32
    %48 = tpu.dynamic_rotate %0 by %c1_i32_6 dim 1 : vector<8x512xf32>, i32 -> vector<8x512xf32>
    %49 = vector.broadcast %25 : vector<1x512xf32> to vector<8x512xf32>
    %50 = arith.mulf %48, %49 : vector<8x512xf32>
    %c511_i32 = arith.constant 511 : i32
    %51 = tpu.dynamic_rotate %0 by %c511_i32 dim 1 : vector<8x512xf32>, i32 -> vector<8x512xf32>
    %52 = vector.broadcast %27 : vector<1x512xf32> to vector<8x512xf32>
    %53 = arith.mulf %51, %52 : vector<8x512xf32>
    %c497_i32 = arith.constant 497 : i32
    %54 = tpu.dynamic_rotate %0 by %c497_i32 dim 1 : vector<8x512xf32>, i32 -> vector<8x512xf32>
    %55 = vector.broadcast %30 : vector<1x512xf32> to vector<8x512xf32>
    %56 = arith.mulf %54, %55 : vector<8x512xf32>
    %c496_i32 = arith.constant 496 : i32
    %57 = tpu.dynamic_rotate %0 by %c496_i32 dim 1 : vector<8x512xf32>, i32 -> vector<8x512xf32>
    %58 = vector.broadcast %32 : vector<1x512xf32> to vector<8x512xf32>
    %59 = arith.mulf %57, %58 : vector<8x512xf32>
    %c495_i32 = arith.constant 495 : i32
    %60 = tpu.dynamic_rotate %0 by %c495_i32 dim 1 : vector<8x512xf32>, i32 -> vector<8x512xf32>
    %61 = vector.broadcast %35 : vector<1x512xf32> to vector<8x512xf32>
    %62 = arith.mulf %60, %61 : vector<8x512xf32>
    %63 = tpu.concatenate %41, %44, %47, %50, %0, %53, %56, %59, %62, %38 in 0 : vector<8x512xf32>, vector<8x512xf32>, vector<8x512xf32>, vector<8x512xf32>, vector<8x512xf32>, vector<8x512xf32>, vector<8x512xf32>, vector<8x512xf32>, vector<8x512xf32>, vector<56x512xf32> -> vector<128x512xf32>
    %c0_7 = arith.constant 0 : index
    %c0_8 = arith.constant 0 : index
    %64 = vector.load %arg2[%c0_7, %c0_8] : memref<96x128xf32, #tpu.memory_space<vmem>>, vector<16x128xf32>
    %cst_9 = arith.constant dense<0.000000e+00> : vector<16x512xf32>
    %65 = tpu.matmul %64, %63, %cst_9 {dimension_numbers = #tpu.dot_dimension_numbers<[1], [0], [0], [1], [0, 0, 1, 1], [], []>} : vector<16x128xf32>, vector<128x512xf32>, vector<16x512xf32> -> vector<16x512xf32>
    %cst_10 = arith.constant 0.000000e+00 : f32
    %66 = vector.broadcast %cst_10 : f32 to vector<16x512xf32>
    %67 = arith.maximumf %65, %66 : vector<16x512xf32>
    %68 = vector.extract_strided_slice %67 {offsets = [0, 0], sizes = [8, 512], strides = [1, 1]} : vector<16x512xf32> to vector<8x512xf32>
    %69 = vector.extract_strided_slice %67 {offsets = [8, 0], sizes = [8, 512], strides = [1, 1]} : vector<16x512xf32> to vector<8x512xf32>
    %c17_i32_11 = arith.constant 17 : i32
    %70 = tpu.dynamic_rotate %68 by %c17_i32_11 dim 1 : vector<8x512xf32>, i32 -> vector<8x512xf32>
    %71 = vector.broadcast %18 : vector<1x512xf32> to vector<8x512xf32>
    %72 = arith.mulf %70, %71 : vector<8x512xf32>
    %c16_i32_12 = arith.constant 16 : i32
    %73 = tpu.dynamic_rotate %68 by %c16_i32_12 dim 1 : vector<8x512xf32>, i32 -> vector<8x512xf32>
    %74 = vector.broadcast %20 : vector<1x512xf32> to vector<8x512xf32>
    %75 = arith.mulf %73, %74 : vector<8x512xf32>
    %c15_i32_13 = arith.constant 15 : i32
    %76 = tpu.dynamic_rotate %68 by %c15_i32_13 dim 1 : vector<8x512xf32>, i32 -> vector<8x512xf32>
    %77 = vector.broadcast %23 : vector<1x512xf32> to vector<8x512xf32>
    %78 = arith.mulf %76, %77 : vector<8x512xf32>
    %c1_i32_14 = arith.constant 1 : i32
    %79 = tpu.dynamic_rotate %68 by %c1_i32_14 dim 1 : vector<8x512xf32>, i32 -> vector<8x512xf32>
    %80 = vector.broadcast %25 : vector<1x512xf32> to vector<8x512xf32>
    %81 = arith.mulf %79, %80 : vector<8x512xf32>
    %c511_i32_15 = arith.constant 511 : i32
    %82 = tpu.dynamic_rotate %68 by %c511_i32_15 dim 1 : vector<8x512xf32>, i32 -> vector<8x512xf32>
    %83 = vector.broadcast %27 : vector<1x512xf32> to vector<8x512xf32>
    %84 = arith.mulf %82, %83 : vector<8x512xf32>
    %c497_i32_16 = arith.constant 497 : i32
    %85 = tpu.dynamic_rotate %68 by %c497_i32_16 dim 1 : vector<8x512xf32>, i32 -> vector<8x512xf32>
    %86 = vector.broadcast %30 : vector<1x512xf32> to vector<8x512xf32>
    %87 = arith.mulf %85, %86 : vector<8x512xf32>
    %c496_i32_17 = arith.constant 496 : i32
    %88 = tpu.dynamic_rotate %68 by %c496_i32_17 dim 1 : vector<8x512xf32>, i32 -> vector<8x512xf32>
    %89 = vector.broadcast %32 : vector<1x512xf32> to vector<8x512xf32>
    %90 = arith.mulf %88, %89 : vector<8x512xf32>
    %c495_i32_18 = arith.constant 495 : i32
    %91 = tpu.dynamic_rotate %68 by %c495_i32_18 dim 1 : vector<8x512xf32>, i32 -> vector<8x512xf32>
    %92 = vector.broadcast %35 : vector<1x512xf32> to vector<8x512xf32>
    %93 = arith.mulf %91, %92 : vector<8x512xf32>
    %94 = tpu.concatenate %72, %75, %78, %81, %68, %84, %87, %90, %93, %38 in 0 : vector<8x512xf32>, vector<8x512xf32>, vector<8x512xf32>, vector<8x512xf32>, vector<8x512xf32>, vector<8x512xf32>, vector<8x512xf32>, vector<8x512xf32>, vector<8x512xf32>, vector<56x512xf32> -> vector<128x512xf32>
    %c16 = arith.constant 16 : index
    %c0_19 = arith.constant 0 : index
    %95 = vector.load %arg2[%c16, %c0_19] : memref<96x128xf32, #tpu.memory_space<vmem>>, vector<8x128xf32>
    %cst_20 = arith.constant dense<0.000000e+00> : vector<8x512xf32>
    %96 = tpu.matmul %95, %94, %cst_20 {dimension_numbers = #tpu.dot_dimension_numbers<[1], [0], [0], [1], [0, 0, 1, 1], [], []>} : vector<8x128xf32>, vector<128x512xf32>, vector<8x512xf32> -> vector<8x512xf32>
    %cst_21 = arith.constant 0.000000e+00 : f32
    %97 = vector.broadcast %cst_21 : f32 to vector<8x512xf32>
    %98 = arith.maximumf %96, %97 : vector<8x512xf32>
    %c17_i32_22 = arith.constant 17 : i32
    %99 = tpu.dynamic_rotate %69 by %c17_i32_22 dim 1 : vector<8x512xf32>, i32 -> vector<8x512xf32>
    %100 = vector.broadcast %18 : vector<1x512xf32> to vector<8x512xf32>
    %101 = arith.mulf %99, %100 : vector<8x512xf32>
    %c16_i32_23 = arith.constant 16 : i32
    %102 = tpu.dynamic_rotate %69 by %c16_i32_23 dim 1 : vector<8x512xf32>, i32 -> vector<8x512xf32>
    %103 = vector.broadcast %20 : vector<1x512xf32> to vector<8x512xf32>
    %104 = arith.mulf %102, %103 : vector<8x512xf32>
    %c15_i32_24 = arith.constant 15 : i32
    %105 = tpu.dynamic_rotate %69 by %c15_i32_24 dim 1 : vector<8x512xf32>, i32 -> vector<8x512xf32>
    %106 = vector.broadcast %23 : vector<1x512xf32> to vector<8x512xf32>
    %107 = arith.mulf %105, %106 : vector<8x512xf32>
    %c1_i32_25 = arith.constant 1 : i32
    %108 = tpu.dynamic_rotate %69 by %c1_i32_25 dim 1 : vector<8x512xf32>, i32 -> vector<8x512xf32>
    %109 = vector.broadcast %25 : vector<1x512xf32> to vector<8x512xf32>
    %110 = arith.mulf %108, %109 : vector<8x512xf32>
    %c511_i32_26 = arith.constant 511 : i32
    %111 = tpu.dynamic_rotate %69 by %c511_i32_26 dim 1 : vector<8x512xf32>, i32 -> vector<8x512xf32>
    %112 = vector.broadcast %27 : vector<1x512xf32> to vector<8x512xf32>
    %113 = arith.mulf %111, %112 : vector<8x512xf32>
    %c497_i32_27 = arith.constant 497 : i32
    %114 = tpu.dynamic_rotate %69 by %c497_i32_27 dim 1 : vector<8x512xf32>, i32 -> vector<8x512xf32>
    %115 = vector.broadcast %30 : vector<1x512xf32> to vector<8x512xf32>
    %116 = arith.mulf %114, %115 : vector<8x512xf32>
    %c496_i32_28 = arith.constant 496 : i32
    %117 = tpu.dynamic_rotate %69 by %c496_i32_28 dim 1 : vector<8x512xf32>, i32 -> vector<8x512xf32>
    %118 = vector.broadcast %32 : vector<1x512xf32> to vector<8x512xf32>
    %119 = arith.mulf %117, %118 : vector<8x512xf32>
    %c495_i32_29 = arith.constant 495 : i32
    %120 = tpu.dynamic_rotate %69 by %c495_i32_29 dim 1 : vector<8x512xf32>, i32 -> vector<8x512xf32>
    %121 = vector.broadcast %35 : vector<1x512xf32> to vector<8x512xf32>
    %122 = arith.mulf %120, %121 : vector<8x512xf32>
    %123 = tpu.concatenate %101, %104, %107, %110, %69, %113, %116, %119, %122, %38 in 0 : vector<8x512xf32>, vector<8x512xf32>, vector<8x512xf32>, vector<8x512xf32>, vector<8x512xf32>, vector<8x512xf32>, vector<8x512xf32>, vector<8x512xf32>, vector<8x512xf32>, vector<56x512xf32> -> vector<128x512xf32>
    %c24 = arith.constant 24 : index
    %c0_30 = arith.constant 0 : index
    %124 = vector.load %arg2[%c24, %c0_30] : memref<96x128xf32, #tpu.memory_space<vmem>>, vector<8x128xf32>
    %cst_31 = arith.constant dense<0.000000e+00> : vector<8x512xf32>
    %125 = tpu.matmul %124, %123, %cst_31 {dimension_numbers = #tpu.dot_dimension_numbers<[1], [0], [0], [1], [0, 0, 1, 1], [], []>} : vector<8x128xf32>, vector<128x512xf32>, vector<8x512xf32> -> vector<8x512xf32>
    %cst_32 = arith.constant 0.000000e+00 : f32
    %126 = vector.broadcast %cst_32 : f32 to vector<8x512xf32>
    %127 = arith.maximumf %125, %126 : vector<8x512xf32>
    %c17_i32_33 = arith.constant 17 : i32
    %128 = tpu.dynamic_rotate %98 by %c17_i32_33 dim 1 : vector<8x512xf32>, i32 -> vector<8x512xf32>
    %129 = vector.broadcast %18 : vector<1x512xf32> to vector<8x512xf32>
    %130 = arith.mulf %128, %129 : vector<8x512xf32>
    %c16_i32_34 = arith.constant 16 : i32
    %131 = tpu.dynamic_rotate %98 by %c16_i32_34 dim 1 : vector<8x512xf32>, i32 -> vector<8x512xf32>
    %132 = vector.broadcast %20 : vector<1x512xf32> to vector<8x512xf32>
    %133 = arith.mulf %131, %132 : vector<8x512xf32>
    %c15_i32_35 = arith.constant 15 : i32
    %134 = tpu.dynamic_rotate %98 by %c15_i32_35 dim 1 : vector<8x512xf32>, i32 -> vector<8x512xf32>
    %135 = vector.broadcast %23 : vector<1x512xf32> to vector<8x512xf32>
    %136 = arith.mulf %134, %135 : vector<8x512xf32>
    %c1_i32_36 = arith.constant 1 : i32
    %137 = tpu.dynamic_rotate %98 by %c1_i32_36 dim 1 : vector<8x512xf32>, i32 -> vector<8x512xf32>
    %138 = vector.broadcast %25 : vector<1x512xf32> to vector<8x512xf32>
    %139 = arith.mulf %137, %138 : vector<8x512xf32>
    %c511_i32_37 = arith.constant 511 : i32
    %140 = tpu.dynamic_rotate %98 by %c511_i32_37 dim 1 : vector<8x512xf32>, i32 -> vector<8x512xf32>
    %141 = vector.broadcast %27 : vector<1x512xf32> to vector<8x512xf32>
    %142 = arith.mulf %140, %141 : vector<8x512xf32>
    %c497_i32_38 = arith.constant 497 : i32
    %143 = tpu.dynamic_rotate %98 by %c497_i32_38 dim 1 : vector<8x512xf32>, i32 -> vector<8x512xf32>
    %144 = vector.broadcast %30 : vector<1x512xf32> to vector<8x512xf32>
    %145 = arith.mulf %143, %144 : vector<8x512xf32>
    %c496_i32_39 = arith.constant 496 : i32
    %146 = tpu.dynamic_rotate %98 by %c496_i32_39 dim 1 : vector<8x512xf32>, i32 -> vector<8x512xf32>
    %147 = vector.broadcast %32 : vector<1x512xf32> to vector<8x512xf32>
    %148 = arith.mulf %146, %147 : vector<8x512xf32>
    %c495_i32_40 = arith.constant 495 : i32
    %149 = tpu.dynamic_rotate %98 by %c495_i32_40 dim 1 : vector<8x512xf32>, i32 -> vector<8x512xf32>
    %150 = vector.broadcast %35 : vector<1x512xf32> to vector<8x512xf32>
    %151 = arith.mulf %149, %150 : vector<8x512xf32>
    %152 = tpu.concatenate %130, %133, %136, %139, %98, %142, %145, %148, %151, %38 in 0 : vector<8x512xf32>, vector<8x512xf32>, vector<8x512xf32>, vector<8x512xf32>, vector<8x512xf32>, vector<8x512xf32>, vector<8x512xf32>, vector<8x512xf32>, vector<8x512xf32>, vector<56x512xf32> -> vector<128x512xf32>
    %c32 = arith.constant 32 : index
    %c0_41 = arith.constant 0 : index
    %153 = vector.load %arg2[%c32, %c0_41] : memref<96x128xf32, #tpu.memory_space<vmem>>, vector<8x128xf32>
    %cst_42 = arith.constant dense<0.000000e+00> : vector<8x512xf32>
    %154 = tpu.matmul %153, %152, %cst_42 {dimension_numbers = #tpu.dot_dimension_numbers<[1], [0], [0], [1], [0, 0, 1, 1], [], []>} : vector<8x128xf32>, vector<128x512xf32>, vector<8x512xf32> -> vector<8x512xf32>
    %c17_i32_43 = arith.constant 17 : i32
    %155 = tpu.dynamic_rotate %127 by %c17_i32_43 dim 1 : vector<8x512xf32>, i32 -> vector<8x512xf32>
    %156 = vector.broadcast %18 : vector<1x512xf32> to vector<8x512xf32>
    %157 = arith.mulf %155, %156 : vector<8x512xf32>
    %c16_i32_44 = arith.constant 16 : i32
    %158 = tpu.dynamic_rotate %127 by %c16_i32_44 dim 1 : vector<8x512xf32>, i32 -> vector<8x512xf32>
    %159 = vector.broadcast %20 : vector<1x512xf32> to vector<8x512xf32>
    %160 = arith.mulf %158, %159 : vector<8x512xf32>
    %c15_i32_45 = arith.constant 15 : i32
    %161 = tpu.dynamic_rotate %127 by %c15_i32_45 dim 1 : vector<8x512xf32>, i32 -> vector<8x512xf32>
    %162 = vector.broadcast %23 : vector<1x512xf32> to vector<8x512xf32>
    %163 = arith.mulf %161, %162 : vector<8x512xf32>
    %c1_i32_46 = arith.constant 1 : i32
    %164 = tpu.dynamic_rotate %127 by %c1_i32_46 dim 1 : vector<8x512xf32>, i32 -> vector<8x512xf32>
    %165 = vector.broadcast %25 : vector<1x512xf32> to vector<8x512xf32>
    %166 = arith.mulf %164, %165 : vector<8x512xf32>
    %c511_i32_47 = arith.constant 511 : i32
    %167 = tpu.dynamic_rotate %127 by %c511_i32_47 dim 1 : vector<8x512xf32>, i32 -> vector<8x512xf32>
    %168 = vector.broadcast %27 : vector<1x512xf32> to vector<8x512xf32>
    %169 = arith.mulf %167, %168 : vector<8x512xf32>
    %c497_i32_48 = arith.constant 497 : i32
    %170 = tpu.dynamic_rotate %127 by %c497_i32_48 dim 1 : vector<8x512xf32>, i32 -> vector<8x512xf32>
    %171 = vector.broadcast %30 : vector<1x512xf32> to vector<8x512xf32>
    %172 = arith.mulf %170, %171 : vector<8x512xf32>
    %c496_i32_49 = arith.constant 496 : i32
    %173 = tpu.dynamic_rotate %127 by %c496_i32_49 dim 1 : vector<8x512xf32>, i32 -> vector<8x512xf32>
    %174 = vector.broadcast %32 : vector<1x512xf32> to vector<8x512xf32>
    %175 = arith.mulf %173, %174 : vector<8x512xf32>
    %c495_i32_50 = arith.constant 495 : i32
    %176 = tpu.dynamic_rotate %127 by %c495_i32_50 dim 1 : vector<8x512xf32>, i32 -> vector<8x512xf32>
    %177 = vector.broadcast %35 : vector<1x512xf32> to vector<8x512xf32>
    %178 = arith.mulf %176, %177 : vector<8x512xf32>
    %179 = tpu.concatenate %157, %160, %163, %166, %127, %169, %172, %175, %178, %38 in 0 : vector<8x512xf32>, vector<8x512xf32>, vector<8x512xf32>, vector<8x512xf32>, vector<8x512xf32>, vector<8x512xf32>, vector<8x512xf32>, vector<8x512xf32>, vector<8x512xf32>, vector<56x512xf32> -> vector<128x512xf32>
    %c40 = arith.constant 40 : index
    %c0_51 = arith.constant 0 : index
    %180 = vector.load %arg2[%c40, %c0_51] : memref<96x128xf32, #tpu.memory_space<vmem>>, vector<8x128xf32>
    %cst_52 = arith.constant dense<0.000000e+00> : vector<8x512xf32>
    %181 = tpu.matmul %180, %179, %cst_52 {dimension_numbers = #tpu.dot_dimension_numbers<[1], [0], [0], [1], [0, 0, 1, 1], [], []>} : vector<8x128xf32>, vector<128x512xf32>, vector<8x512xf32> -> vector<8x512xf32>
    %182 = tpu.iota {dimensions = array<i32: 0>} : vector<8x1xi32>
    %cst_53 = arith.constant 0.000000e+00 : f32
    %183 = vector.broadcast %cst_53 : f32 to vector<8x512xf32>
    %184 = arith.maximumf %181, %183 : vector<8x512xf32>
    %cst_54 = arith.constant 8.000000e+00 : f32
    %185 = vector.broadcast %cst_54 : f32 to vector<8x512xf32>
    %186 = arith.mulf %184, %185 : vector<8x512xf32>
    %c4_i32_55 = arith.constant 4 : i32
    %187 = vector.broadcast %c4_i32_55 : i32 to vector<8x1xi32>
    %188 = arith.cmpi slt, %182, %187 : vector<8x1xi32>
    %189 = vector.shape_cast %188 : vector<8x1xi1> to vector<8x1xi1>
    %190 = vector.broadcast %189 : vector<8x1xi1> to vector<8x512xi1>
    %191 = arith.select %190, %186, %181 : vector<8x512xi1>, vector<8x512xf32>
    %192 = tpu.concatenate %154, %191 in 0 : vector<8x512xf32>, vector<8x512xf32> -> vector<16x512xf32>
    %c0_56 = arith.constant 0 : index
    %c0_57 = arith.constant 0 : index
    %193 = vector.load %arg3[%c0_56, %c0_57] : memref<16x640xf32, #tpu.memory_space<vmem>>, vector<16x512xf32>
    tpu.vector_store %arg3[%c0_56, %c0_57], %192 {strides = array<i32>} : memref<16x640xf32, #tpu.memory_space<vmem>>, vector<16x512xf32>,
    %c0_58 = arith.constant 0 : index
    %c512 = arith.constant 512 : index
    %194 = vector.load %arg1[%c0_58, %c512] : memref<8x640xf32, #tpu.memory_space<vmem>>, vector<8x128xf32>
    %195 = tpu.iota {dimensions = array<i32: 1>} : vector<1x128xi32>
    %c63_i32 = arith.constant 63 : i32
    %196 = vector.broadcast %c63_i32 : i32 to vector<1x128xi32>
    %197 = arith.andi %195, %196 : vector<1x128xi32>
    %c3_i32 = arith.constant 3 : i32
    %198 = vector.broadcast %c3_i32 : i32 to vector<1x128xi32>
    %199 = arith.shrsi %197, %198 : vector<1x128xi32>
    %c7_i32 = arith.constant 7 : i32
    %200 = vector.broadcast %c7_i32 : i32 to vector<1x128xi32>
    %201 = arith.andi %197, %200 : vector<1x128xi32>
    %c1_i32_59 = arith.constant 1 : i32
    %202 = vector.broadcast %c1_i32_59 : i32 to vector<1x128xi32>
    %203 = arith.cmpi sge, %199, %202 : vector<1x128xi32>
    %c7_i32_60 = arith.constant 7 : i32
    %204 = vector.broadcast %c7_i32_60 : i32 to vector<1x128xi32>
    %205 = arith.cmpi slt, %199, %204 : vector<1x128xi32>
    %c1_i32_61 = arith.constant 1 : i32
    %206 = vector.broadcast %c1_i32_61 : i32 to vector<1x128xi32>
    %207 = arith.cmpi sge, %201, %206 : vector<1x128xi32>
    %c7_i32_62 = arith.constant 7 : i32
    %208 = vector.broadcast %c7_i32_62 : i32 to vector<1x128xi32>
    %209 = arith.cmpi slt, %201, %208 : vector<1x128xi32>
    %210 = arith.andi %203, %207 : vector<1x128xi1>
    %211 = arith.extui %210 : vector<1x128xi1> to vector<1x128xi32>
    %212 = arith.sitofp %211 : vector<1x128xi32> to vector<1x128xf32>
    %213 = arith.extui %203 : vector<1x128xi1> to vector<1x128xi32>
    %214 = arith.sitofp %213 : vector<1x128xi32> to vector<1x128xf32>
    %215 = arith.andi %203, %209 : vector<1x128xi1>
    %216 = arith.extui %215 : vector<1x128xi1> to vector<1x128xi32>
    %217 = arith.sitofp %216 : vector<1x128xi32> to vector<1x128xf32>
    %218 = arith.extui %207 : vector<1x128xi1> to vector<1x128xi32>
    %219 = arith.sitofp %218 : vector<1x128xi32> to vector<1x128xf32>
    %220 = arith.extui %209 : vector<1x128xi1> to vector<1x128xi32>
    %221 = arith.sitofp %220 : vector<1x128xi32> to vector<1x128xf32>
    %222 = arith.andi %205, %207 : vector<1x128xi1>
    %223 = arith.extui %222 : vector<1x128xi1> to vector<1x128xi32>
    %224 = arith.sitofp %223 : vector<1x128xi32> to vector<1x128xf32>
    %225 = arith.extui %205 : vector<1x128xi1> to vector<1x128xi32>
    %226 = arith.sitofp %225 : vector<1x128xi32> to vector<1x128xf32>
    %227 = arith.andi %205, %209 : vector<1x128xi1>
    %228 = arith.extui %227 : vector<1x128xi1> to vector<1x128xi32>
    %229 = arith.sitofp %228 : vector<1x128xi32> to vector<1x128xf32>
    %cst_63 = arith.constant 0.000000e+00 : f32
    %230 = vector.broadcast %cst_63 : f32 to vector<55x128xf32>
    %cst_64 = arith.constant 1.000000e+00 : f32
    %231 = vector.broadcast %cst_64 : f32 to vector<1x128xf32>
    %232 = tpu.concatenate %230, %231 in 0 : vector<55x128xf32>, vector<1x128xf32> -> vector<56x128xf32>
    %c9_i32 = arith.constant 9 : i32
    %233 = tpu.dynamic_rotate %194 by %c9_i32 dim 1 : vector<8x128xf32>, i32 -> vector<8x128xf32>
    %234 = vector.broadcast %212 : vector<1x128xf32> to vector<8x128xf32>
    %235 = arith.mulf %233, %234 : vector<8x128xf32>
    %c8_i32 = arith.constant 8 : i32
    %236 = tpu.dynamic_rotate %194 by %c8_i32 dim 1 : vector<8x128xf32>, i32 -> vector<8x128xf32>
    %237 = vector.broadcast %214 : vector<1x128xf32> to vector<8x128xf32>
    %238 = arith.mulf %236, %237 : vector<8x128xf32>
    %c7_i32_65 = arith.constant 7 : i32
    %239 = tpu.dynamic_rotate %194 by %c7_i32_65 dim 1 : vector<8x128xf32>, i32 -> vector<8x128xf32>
    %240 = vector.broadcast %217 : vector<1x128xf32> to vector<8x128xf32>
    %241 = arith.mulf %239, %240 : vector<8x128xf32>
    %c1_i32_66 = arith.constant 1 : i32
    %242 = tpu.dynamic_rotate %194 by %c1_i32_66 dim 1 : vector<8x128xf32>, i32 -> vector<8x128xf32>
    %243 = vector.broadcast %219 : vector<1x128xf32> to vector<8x128xf32>
    %244 = arith.mulf %242, %243 : vector<8x128xf32>
    %c127_i32 = arith.constant 127 : i32
    %245 = tpu.dynamic_rotate %194 by %c127_i32 dim 1 : vector<8x128xf32>, i32 -> vector<8x128xf32>
    %246 = vector.broadcast %221 : vector<1x128xf32> to vector<8x128xf32>
    %247 = arith.mulf %245, %246 : vector<8x128xf32>
    %c121_i32 = arith.constant 121 : i32
    %248 = tpu.dynamic_rotate %194 by %c121_i32 dim 1 : vector<8x128xf32>, i32 -> vector<8x128xf32>
    %249 = vector.broadcast %224 : vector<1x128xf32> to vector<8x128xf32>
    %250 = arith.mulf %248, %249 : vector<8x128xf32>
    %c120_i32 = arith.constant 120 : i32
    %251 = tpu.dynamic_rotate %194 by %c120_i32 dim 1 : vector<8x128xf32>, i32 -> vector<8x128xf32>
    %252 = vector.broadcast %226 : vector<1x128xf32> to vector<8x128xf32>
    %253 = arith.mulf %251, %252 : vector<8x128xf32>
    %c119_i32 = arith.constant 119 : i32
    %254 = tpu.dynamic_rotate %194 by %c119_i32 dim 1 : vector<8x128xf32>, i32 -> vector<8x128xf32>
    %255 = vector.broadcast %229 : vector<1x128xf32> to vector<8x128xf32>
    %256 = arith.mulf %254, %255 : vector<8x128xf32>
    %257 = tpu.concatenate %235, %238, %241, %244, %194, %247, %250, %253, %256, %232 in 0 : vector<8x128xf32>, vector<8x128xf32>, vector<8x128xf32>, vector<8x128xf32>, vector<8x128xf32>, vector<8x128xf32>, vector<8x128xf32>, vector<8x128xf32>, vector<8x128xf32>, vector<56x128xf32> -> vector<128x128xf32>
    %c48 = arith.constant 48 : index
    %c0_67 = arith.constant 0 : index
    %258 = vector.load %arg2[%c48, %c0_67] : memref<96x128xf32, #tpu.memory_space<vmem>>, vector<16x128xf32>
    %cst_68 = arith.constant dense<0.000000e+00> : vector<16x128xf32>
    %259 = tpu.matmul %258, %257, %cst_68 {dimension_numbers = #tpu.dot_dimension_numbers<[1], [0], [0], [1], [0, 0, 1, 1], [], []>} : vector<16x128xf32>, vector<128x128xf32>, vector<16x128xf32> -> vector<16x128xf32>
    %cst_69 = arith.constant 0.000000e+00 : f32
    %260 = vector.broadcast %cst_69 : f32 to vector<16x128xf32>
    %261 = arith.maximumf %259, %260 : vector<16x128xf32>
    %262 = vector.extract_strided_slice %261 {offsets = [0, 0], sizes = [8, 128], strides = [1, 1]} : vector<16x128xf32> to vector<8x128xf32>
    %263 = vector.extract_strided_slice %261 {offsets = [8, 0], sizes = [8, 128], strides = [1, 1]} : vector<16x128xf32> to vector<8x128xf32>
    %c9_i32_70 = arith.constant 9 : i32
    %264 = tpu.dynamic_rotate %262 by %c9_i32_70 dim 1 : vector<8x128xf32>, i32 -> vector<8x128xf32>
    %265 = vector.broadcast %212 : vector<1x128xf32> to vector<8x128xf32>
    %266 = arith.mulf %264, %265 : vector<8x128xf32>
    %c8_i32_71 = arith.constant 8 : i32
    %267 = tpu.dynamic_rotate %262 by %c8_i32_71 dim 1 : vector<8x128xf32>, i32 -> vector<8x128xf32>
    %268 = vector.broadcast %214 : vector<1x128xf32> to vector<8x128xf32>
    %269 = arith.mulf %267, %268 : vector<8x128xf32>
    %c7_i32_72 = arith.constant 7 : i32
    %270 = tpu.dynamic_rotate %262 by %c7_i32_72 dim 1 : vector<8x128xf32>, i32 -> vector<8x128xf32>
    %271 = vector.broadcast %217 : vector<1x128xf32> to vector<8x128xf32>
    %272 = arith.mulf %270, %271 : vector<8x128xf32>
    %c1_i32_73 = arith.constant 1 : i32
    %273 = tpu.dynamic_rotate %262 by %c1_i32_73 dim 1 : vector<8x128xf32>, i32 -> vector<8x128xf32>
    %274 = vector.broadcast %219 : vector<1x128xf32> to vector<8x128xf32>
    %275 = arith.mulf %273, %274 : vector<8x128xf32>
    %c127_i32_74 = arith.constant 127 : i32
    %276 = tpu.dynamic_rotate %262 by %c127_i32_74 dim 1 : vector<8x128xf32>, i32 -> vector<8x128xf32>
    %277 = vector.broadcast %221 : vector<1x128xf32> to vector<8x128xf32>
    %278 = arith.mulf %276, %277 : vector<8x128xf32>
    %c121_i32_75 = arith.constant 121 : i32
    %279 = tpu.dynamic_rotate %262 by %c121_i32_75 dim 1 : vector<8x128xf32>, i32 -> vector<8x128xf32>
    %280 = vector.broadcast %224 : vector<1x128xf32> to vector<8x128xf32>
    %281 = arith.mulf %279, %280 : vector<8x128xf32>
    %c120_i32_76 = arith.constant 120 : i32
    %282 = tpu.dynamic_rotate %262 by %c120_i32_76 dim 1 : vector<8x128xf32>, i32 -> vector<8x128xf32>
    %283 = vector.broadcast %226 : vector<1x128xf32> to vector<8x128xf32>
    %284 = arith.mulf %282, %283 : vector<8x128xf32>
    %c119_i32_77 = arith.constant 119 : i32
    %285 = tpu.dynamic_rotate %262 by %c119_i32_77 dim 1 : vector<8x128xf32>, i32 -> vector<8x128xf32>
    %286 = vector.broadcast %229 : vector<1x128xf32> to vector<8x128xf32>
    %287 = arith.mulf %285, %286 : vector<8x128xf32>
    %288 = tpu.concatenate %266, %269, %272, %275, %262, %278, %281, %284, %287, %232 in 0 : vector<8x128xf32>, vector<8x128xf32>, vector<8x128xf32>, vector<8x128xf32>, vector<8x128xf32>, vector<8x128xf32>, vector<8x128xf32>, vector<8x128xf32>, vector<8x128xf32>, vector<56x128xf32> -> vector<128x128xf32>
    %c64 = arith.constant 64 : index
    %c0_78 = arith.constant 0 : index
    %289 = vector.load %arg2[%c64, %c0_78] : memref<96x128xf32, #tpu.memory_space<vmem>>, vector<8x128xf32>
    %cst_79 = arith.constant dense<0.000000e+00> : vector<8x128xf32>
    %290 = tpu.matmul %289, %288, %cst_79 {dimension_numbers = #tpu.dot_dimension_numbers<[1], [0], [0], [1], [0, 0, 1, 1], [], []>} : vector<8x128xf32>, vector<128x128xf32>, vector<8x128xf32> -> vector<8x128xf32>
    %cst_80 = arith.constant 0.000000e+00 : f32
    %291 = vector.broadcast %cst_80 : f32 to vector<8x128xf32>
    %292 = arith.maximumf %290, %291 : vector<8x128xf32>
    %c9_i32_81 = arith.constant 9 : i32
    %293 = tpu.dynamic_rotate %263 by %c9_i32_81 dim 1 : vector<8x128xf32>, i32 -> vector<8x128xf32>
    %294 = vector.broadcast %212 : vector<1x128xf32> to vector<8x128xf32>
    %295 = arith.mulf %293, %294 : vector<8x128xf32>
    %c8_i32_82 = arith.constant 8 : i32
    %296 = tpu.dynamic_rotate %263 by %c8_i32_82 dim 1 : vector<8x128xf32>, i32 -> vector<8x128xf32>
    %297 = vector.broadcast %214 : vector<1x128xf32> to vector<8x128xf32>
    %298 = arith.mulf %296, %297 : vector<8x128xf32>
    %c7_i32_83 = arith.constant 7 : i32
    %299 = tpu.dynamic_rotate %263 by %c7_i32_83 dim 1 : vector<8x128xf32>, i32 -> vector<8x128xf32>
    %300 = vector.broadcast %217 : vector<1x128xf32> to vector<8x128xf32>
    %301 = arith.mulf %299, %300 : vector<8x128xf32>
    %c1_i32_84 = arith.constant 1 : i32
    %302 = tpu.dynamic_rotate %263 by %c1_i32_84 dim 1 : vector<8x128xf32>, i32 -> vector<8x128xf32>
    %303 = vector.broadcast %219 : vector<1x128xf32> to vector<8x128xf32>
    %304 = arith.mulf %302, %303 : vector<8x128xf32>
    %c127_i32_85 = arith.constant 127 : i32
    %305 = tpu.dynamic_rotate %263 by %c127_i32_85 dim 1 : vector<8x128xf32>, i32 -> vector<8x128xf32>
    %306 = vector.broadcast %221 : vector<1x128xf32> to vector<8x128xf32>
    %307 = arith.mulf %305, %306 : vector<8x128xf32>
    %c121_i32_86 = arith.constant 121 : i32
    %308 = tpu.dynamic_rotate %263 by %c121_i32_86 dim 1 : vector<8x128xf32>, i32 -> vector<8x128xf32>
    %309 = vector.broadcast %224 : vector<1x128xf32> to vector<8x128xf32>
    %310 = arith.mulf %308, %309 : vector<8x128xf32>
    %c120_i32_87 = arith.constant 120 : i32
    %311 = tpu.dynamic_rotate %263 by %c120_i32_87 dim 1 : vector<8x128xf32>, i32 -> vector<8x128xf32>
    %312 = vector.broadcast %226 : vector<1x128xf32> to vector<8x128xf32>
    %313 = arith.mulf %311, %312 : vector<8x128xf32>
    %c119_i32_88 = arith.constant 119 : i32
    %314 = tpu.dynamic_rotate %263 by %c119_i32_88 dim 1 : vector<8x128xf32>, i32 -> vector<8x128xf32>
    %315 = vector.broadcast %229 : vector<1x128xf32> to vector<8x128xf32>
    %316 = arith.mulf %314, %315 : vector<8x128xf32>
    %317 = tpu.concatenate %295, %298, %301, %304, %263, %307, %310, %313, %316, %232 in 0 : vector<8x128xf32>, vector<8x128xf32>, vector<8x128xf32>, vector<8x128xf32>, vector<8x128xf32>, vector<8x128xf32>, vector<8x128xf32>, vector<8x128xf32>, vector<8x128xf32>, vector<56x128xf32> -> vector<128x128xf32>
    %c72 = arith.constant 72 : index
    %c0_89 = arith.constant 0 : index
    %318 = vector.load %arg2[%c72, %c0_89] : memref<96x128xf32, #tpu.memory_space<vmem>>, vector<8x128xf32>
    %cst_90 = arith.constant dense<0.000000e+00> : vector<8x128xf32>
    %319 = tpu.matmul %318, %317, %cst_90 {dimension_numbers = #tpu.dot_dimension_numbers<[1], [0], [0], [1], [0, 0, 1, 1], [], []>} : vector<8x128xf32>, vector<128x128xf32>, vector<8x128xf32> -> vector<8x128xf32>
    %cst_91 = arith.constant 0.000000e+00 : f32
    %320 = vector.broadcast %cst_91 : f32 to vector<8x128xf32>
    %321 = arith.maximumf %319, %320 : vector<8x128xf32>
    %c9_i32_92 = arith.constant 9 : i32
    %322 = tpu.dynamic_rotate %292 by %c9_i32_92 dim 1 : vector<8x128xf32>, i32 -> vector<8x128xf32>
    %323 = vector.broadcast %212 : vector<1x128xf32> to vector<8x128xf32>
    %324 = arith.mulf %322, %323 : vector<8x128xf32>
    %c8_i32_93 = arith.constant 8 : i32
    %325 = tpu.dynamic_rotate %292 by %c8_i32_93 dim 1 : vector<8x128xf32>, i32 -> vector<8x128xf32>
    %326 = vector.broadcast %214 : vector<1x128xf32> to vector<8x128xf32>
    %327 = arith.mulf %325, %326 : vector<8x128xf32>
    %c7_i32_94 = arith.constant 7 : i32
    %328 = tpu.dynamic_rotate %292 by %c7_i32_94 dim 1 : vector<8x128xf32>, i32 -> vector<8x128xf32>
    %329 = vector.broadcast %217 : vector<1x128xf32> to vector<8x128xf32>
    %330 = arith.mulf %328, %329 : vector<8x128xf32>
    %c1_i32_95 = arith.constant 1 : i32
    %331 = tpu.dynamic_rotate %292 by %c1_i32_95 dim 1 : vector<8x128xf32>, i32 -> vector<8x128xf32>
    %332 = vector.broadcast %219 : vector<1x128xf32> to vector<8x128xf32>
    %333 = arith.mulf %331, %332 : vector<8x128xf32>
    %c127_i32_96 = arith.constant 127 : i32
    %334 = tpu.dynamic_rotate %292 by %c127_i32_96 dim 1 : vector<8x128xf32>, i32 -> vector<8x128xf32>
    %335 = vector.broadcast %221 : vector<1x128xf32> to vector<8x128xf32>
    %336 = arith.mulf %334, %335 : vector<8x128xf32>
    %c121_i32_97 = arith.constant 121 : i32
    %337 = tpu.dynamic_rotate %292 by %c121_i32_97 dim 1 : vector<8x128xf32>, i32 -> vector<8x128xf32>
    %338 = vector.broadcast %224 : vector<1x128xf32> to vector<8x128xf32>
    %339 = arith.mulf %337, %338 : vector<8x128xf32>
    %c120_i32_98 = arith.constant 120 : i32
    %340 = tpu.dynamic_rotate %292 by %c120_i32_98 dim 1 : vector<8x128xf32>, i32 -> vector<8x128xf32>
    %341 = vector.broadcast %226 : vector<1x128xf32> to vector<8x128xf32>
    %342 = arith.mulf %340, %341 : vector<8x128xf32>
    %c119_i32_99 = arith.constant 119 : i32
    %343 = tpu.dynamic_rotate %292 by %c119_i32_99 dim 1 : vector<8x128xf32>, i32 -> vector<8x128xf32>
    %344 = vector.broadcast %229 : vector<1x128xf32> to vector<8x128xf32>
    %345 = arith.mulf %343, %344 : vector<8x128xf32>
    %346 = tpu.concatenate %324, %327, %330, %333, %292, %336, %339, %342, %345, %232 in 0 : vector<8x128xf32>, vector<8x128xf32>, vector<8x128xf32>, vector<8x128xf32>, vector<8x128xf32>, vector<8x128xf32>, vector<8x128xf32>, vector<8x128xf32>, vector<8x128xf32>, vector<56x128xf32> -> vector<128x128xf32>
    %c80 = arith.constant 80 : index
    %c0_100 = arith.constant 0 : index
    %347 = vector.load %arg2[%c80, %c0_100] : memref<96x128xf32, #tpu.memory_space<vmem>>, vector<8x128xf32>
    %cst_101 = arith.constant dense<0.000000e+00> : vector<8x128xf32>
    %348 = tpu.matmul %347, %346, %cst_101 {dimension_numbers = #tpu.dot_dimension_numbers<[1], [0], [0], [1], [0, 0, 1, 1], [], []>} : vector<8x128xf32>, vector<128x128xf32>, vector<8x128xf32> -> vector<8x128xf32>
    %c9_i32_102 = arith.constant 9 : i32
    %349 = tpu.dynamic_rotate %321 by %c9_i32_102 dim 1 : vector<8x128xf32>, i32 -> vector<8x128xf32>
    %350 = vector.broadcast %212 : vector<1x128xf32> to vector<8x128xf32>
    %351 = arith.mulf %349, %350 : vector<8x128xf32>
    %c8_i32_103 = arith.constant 8 : i32
    %352 = tpu.dynamic_rotate %321 by %c8_i32_103 dim 1 : vector<8x128xf32>, i32 -> vector<8x128xf32>
    %353 = vector.broadcast %214 : vector<1x128xf32> to vector<8x128xf32>
    %354 = arith.mulf %352, %353 : vector<8x128xf32>
    %c7_i32_104 = arith.constant 7 : i32
    %355 = tpu.dynamic_rotate %321 by %c7_i32_104 dim 1 : vector<8x128xf32>, i32 -> vector<8x128xf32>
    %356 = vector.broadcast %217 : vector<1x128xf32> to vector<8x128xf32>
    %357 = arith.mulf %355, %356 : vector<8x128xf32>
    %c1_i32_105 = arith.constant 1 : i32
    %358 = tpu.dynamic_rotate %321 by %c1_i32_105 dim 1 : vector<8x128xf32>, i32 -> vector<8x128xf32>
    %359 = vector.broadcast %219 : vector<1x128xf32> to vector<8x128xf32>
    %360 = arith.mulf %358, %359 : vector<8x128xf32>
    %c127_i32_106 = arith.constant 127 : i32
    %361 = tpu.dynamic_rotate %321 by %c127_i32_106 dim 1 : vector<8x128xf32>, i32 -> vector<8x128xf32>
    %362 = vector.broadcast %221 : vector<1x128xf32> to vector<8x128xf32>
    %363 = arith.mulf %361, %362 : vector<8x128xf32>
    %c121_i32_107 = arith.constant 121 : i32
    %364 = tpu.dynamic_rotate %321 by %c121_i32_107 dim 1 : vector<8x128xf32>, i32 -> vector<8x128xf32>
    %365 = vector.broadcast %224 : vector<1x128xf32> to vector<8x128xf32>
    %366 = arith.mulf %364, %365 : vector<8x128xf32>
    %c120_i32_108 = arith.constant 120 : i32
    %367 = tpu.dynamic_rotate %321 by %c120_i32_108 dim 1 : vector<8x128xf32>, i32 -> vector<8x128xf32>
    %368 = vector.broadcast %226 : vector<1x128xf32> to vector<8x128xf32>
    %369 = arith.mulf %367, %368 : vector<8x128xf32>
    %c119_i32_109 = arith.constant 119 : i32
    %370 = tpu.dynamic_rotate %321 by %c119_i32_109 dim 1 : vector<8x128xf32>, i32 -> vector<8x128xf32>
    %371 = vector.broadcast %229 : vector<1x128xf32> to vector<8x128xf32>
    %372 = arith.mulf %370, %371 : vector<8x128xf32>
    %373 = tpu.concatenate %351, %354, %357, %360, %321, %363, %366, %369, %372, %232 in 0 : vector<8x128xf32>, vector<8x128xf32>, vector<8x128xf32>, vector<8x128xf32>, vector<8x128xf32>, vector<8x128xf32>, vector<8x128xf32>, vector<8x128xf32>, vector<8x128xf32>, vector<56x128xf32> -> vector<128x128xf32>
    %c88 = arith.constant 88 : index
    %c0_110 = arith.constant 0 : index
    %374 = vector.load %arg2[%c88, %c0_110] : memref<96x128xf32, #tpu.memory_space<vmem>>, vector<8x128xf32>
    %cst_111 = arith.constant dense<0.000000e+00> : vector<8x128xf32>
    %375 = tpu.matmul %374, %373, %cst_111 {dimension_numbers = #tpu.dot_dimension_numbers<[1], [0], [0], [1], [0, 0, 1, 1], [], []>} : vector<8x128xf32>, vector<128x128xf32>, vector<8x128xf32> -> vector<8x128xf32>
    %376 = tpu.iota {dimensions = array<i32: 0>} : vector<8x1xi32>
    %cst_112 = arith.constant 0.000000e+00 : f32
    %377 = vector.broadcast %cst_112 : f32 to vector<8x128xf32>
    %378 = arith.maximumf %375, %377 : vector<8x128xf32>
    %cst_113 = arith.constant 1.600000e+01 : f32
    %379 = vector.broadcast %cst_113 : f32 to vector<8x128xf32>
    %380 = arith.mulf %378, %379 : vector<8x128xf32>
    %c4_i32_114 = arith.constant 4 : i32
    %381 = vector.broadcast %c4_i32_114 : i32 to vector<8x1xi32>
    %382 = arith.cmpi slt, %376, %381 : vector<8x1xi32>
    %383 = vector.shape_cast %382 : vector<8x1xi1> to vector<8x1xi1>
    %384 = vector.broadcast %383 : vector<8x1xi1> to vector<8x128xi1>
    %385 = arith.select %384, %380, %375 : vector<8x128xi1>, vector<8x128xf32>
    %386 = tpu.concatenate %348, %385 in 0 : vector<8x128xf32>, vector<8x128xf32> -> vector<16x128xf32>
    %c0_115 = arith.constant 0 : index
    %c512_116 = arith.constant 512 : index
    %387 = vector.load %arg3[%c0_115, %c512_116] : memref<16x640xf32, #tpu.memory_space<vmem>>, vector<16x128xf32>
    tpu.vector_store %arg3[%c0_115, %c512_116], %386 {strides = array<i32>} : memref<16x640xf32, #tpu.memory_space<vmem>>, vector<16x128xf32>,
    return
  }
  func.func @transform_0(%arg0: i32) -> (i32, i32) {
    %c0_i32 = arith.constant 0 : i32
    %c0_i32_0 = arith.constant 0 : i32
    %c0_i32_1 = arith.constant 0 : i32
    return %c0_i32, %c0_i32_0 : i32, i32
  }
  func.func @transform_1(%arg0: i32) -> (i32, i32) {
    %c0_i32 = arith.constant 0 : i32
    %c0_i32_0 = arith.constant 0 : i32
    %c0_i32_1 = arith.constant 0 : i32
    return %c0_i32, %c0_i32_0 : i32, i32
  }
  func.func @transform_2(%arg0: i32) -> (i32, i32) {
    %c0_i32 = arith.constant 0 : i32
    %c0_i32_0 = arith.constant 0 : i32
    %c0_i32_1 = arith.constant 0 : i32
    return %c0_i32, %c0_i32_0 : i32, i32
  }
}

</mosaic_0001>

<bundles_post_ra>
// kernel: fcos_head_forward.1
= control target key start
LH: loop header
LB: loop body
LE: loop exit
PB: predicated region body
PF: predicated region fallthrough
CT: control target
= control target key end

     0   :  { %vm128_vm0 = vcmask 1046528   ;;  %v4391_v2 = vmov 0.0   ;;  %s2438_s13 = smov 111   ;;  %v4432_v3 = vmov 0  ;;  %v4393_v5 = vmov 1.0   ;;  %s2440_s16 = smov 112   ;;  %s4383_s0 = inlined_call_operand.vmem [shape: f32[8,640], index: 0, kind: input, shape index: {}]   ;;  %s4384_s1 = inlined_call_operand.vmem [shape: f32[96,128], index: 1, kind: input, shape index: {}]   ;;  %s4385_s2 = inlined_call_operand.vmem [shape: f32[16,640], index: 2, kind: output, shape index: {}]  }
   0x1   :  { %v2472_v0 = vld [vmem:[%s4383_s0 + $0x8] sm:$0xff]  ;;  %v2477_v1 = vld [vmem:[%s4383_s0] sm:$0xff]  ;;  %332 = vmatprep.mubr.f32.mxu0 %v4391_v2  ;;  %409 = vmatprep.mubr.f32.mxu1 %v4391_v2  ;;  %vm2485_vm1 = vmneg %vm128_vm0  ;;  %s2441_s19 = smov 113   ;;  %s2442_s20 = smov 127   ;;  %v4390_v7 = vlaneseq }
   0x2   :  { %251 = vrot.lane.b32.xlu0 %v2472_v0, %s2438_s13  ;;  %249 = vrot.lane.b32.xlu1 %v2477_v1, %s2438_s13  ;;  %v4433_v3 = vsel %vm2485_vm1, 4294967295, %v4432_v3  ;;  %v2492_v4 = vld [vmem:[%s4383_s0 + $0x10] sm:$0xff]  ;;  %v2515_v6 = vld [vmem:[%s4383_s0 + $0x18] sm:$0xff]  ;;  %s2443_s21 = smov 1   ;;  %s2444_s22 = smov 15  }
   0x3   :  { %4434 = vst [vmem:[#allocation2_spill] sm:$0xff] %v4433_v3  ;;  %2102 = vmatprep.subr.msk.mxu0 %vm2485_vm1, %v4393_v5  ;;  %2106 = vmatprep.subr.msk.mxu1 %vm2485_vm1, %v4393_v5  ;;  %s2445_s23 = smov 16   ;;  %s2446_s24 = smov 17   ;;  %v2596_v8 = vand.u32 127, %v4390_v7 }
   0x4   :  { %2104 = vmatpush1.msk.msra.mxu0 %vm2485_vm1, %v4393_v5  ;;  %2108 = vmatpush1.msk.msra.mxu1 %vm2485_vm1, %v4393_v5  ;;  %s2447_s7 = smov 119   ;;  %s2448_s8 = smov 120  }
   0x5   :  { %270 = vmatprep.subr.mxu0 %v4391_v2  ;;  %347 = vmatprep.subr.mxu1 %v4391_v2  ;;  %v17_v9 = vadd.s32 128, %v2596_v8  ;;  %v19_v10 = vadd.s32 384, %v2596_v8  ;;  %v18_v12 = vadd.s32 256, %v2596_v8  ;;  %v20_v13 = vand.u32 255, %v2596_v8  ;;  %s2449_s9 = smov 121   ;;  %s2451_s10 = smov 8  }
   0x6   :  { %253 = vrot.lane.b32.xlu0 %v2492_v4, %s2438_s13  ;;  %234 = vrot.lane.b32.xlu1 %v2472_v0, %s2440_s16  ;;  %vm257_vm9 = vcmp.lt.s32.totalorder %v2596_v8, 111  ;;  %vm4386_vm15 = vcmp.lt.s32.totalorder %v2596_v8, 112  ;;  %s2452_s11 = smov 9  }
   0x7   :  { %271 = vmatpush1.msra.mxu0 %v4391_v2  ;;  %348 = vmatpush1.msra.mxu1 %v4391_v2  ;;  %v21_v11 = vand.u32 255, %v17_v9  ;;  %v23_v14 = vand.u32 255, %v19_v10  ;;  %v22_v17 = vand.u32 255, %v18_v12  ;;  %v2606_v18 = vshra.s32 %v20_v13, 4 }
   0x8   :  { %272 = vmatprep.subr.mxu0 %v4391_v2  ;;  %349 = vmatprep.subr.mxu1 %v4391_v2  ;;  %v2608_v19 = vand.u32 15, %v20_v13 }
   0x9   :  { %273 = vmatpush1.msra.mxu0 %v4391_v2  ;;  %350 = vmatpush1.msra.mxu1 %v4391_v2  ;;  %v2602_v15 = vshra.s32 %v21_v11, 4  ;;  %v2604_v16 = vand.u32 15, %v21_v11  ;;  %v2610_v20 = vshra.s32 %v23_v14, 4  ;;  %v2612_v21 = vand.u32 15, %v23_v14 }
   0xa   :  { %236 = vrot.lane.b32.xlu0 %v2492_v4, %s2440_s16  ;;  %255 = vrot.lane.b32.xlu1 %v2515_v6, %s2438_s13  ;;  %v2616_v22 = vshra.s32 %v22_v17, 4  ;;  %v2618_v23 = vand.u32 15, %v22_v17  ;;  %vm36_vm4 = vcmp.lt.s32.totalorder %v2606_v18, 15  ;;  %vm44_vm5 = vcmp.lt.s32.totalorder %v2608_v19, 15 }
   0xb   :  { %274 = vmatprep.subr.mxu0 %v4391_v2  ;;  %351 = vmatprep.subr.mxu1 %v4391_v2  ;;  %vm37_vm2 = vcmp.lt.s32.totalorder %v2602_v15, 15  ;;  %vm45_vm3 = vcmp.lt.s32.totalorder %v2604_v16, 15  ;;  %vm39_vm7 = vcmp.lt.s32.totalorder %v2610_v20, 15  ;;  %vm47_vm8 = vcmp.lt.s32.totalorder %v2612_v21, 15  ;;  %vm116_vm10 = vmand %vm36_vm4, %vm44_vm5 }
   0xc   :  { %275 = vmatpush1.msra.mxu0 %v4391_v2  ;;  %352 = vmatpush1.msra.mxu1 %v4391_v2  ;;  %vm117_vm6 = vmand %vm37_vm2, %vm45_vm3  ;;  %vm38_vm11 = vcmp.lt.s32.totalorder %v2616_v22, 15  ;;  %vm46_vm12 = vcmp.lt.s32.totalorder %v2618_v23, 15  ;;  %v2645_v30 = vsel %vm116_vm10, 1.0, %v4391_v2  ;;  %v2659_v34 = vsel %vm37_vm2, 1.0, %v4391_v2 }
   0xd   :  { %276 = vmatprep.subr.mxu0 %v4391_v2  ;;  %353 = vmatprep.subr.mxu1 %v4391_v2  ;;  %v2636_v26 = vsel %vm117_vm6, 1.0, %v4391_v2  ;;  %vm119_vm13 = vmand %vm39_vm7, %vm47_vm8  ;;  %4435 = vst [vmem:[#allocation3_spill] sm:$0xff] %v2645_v30  ;;  %vm41_vm0 = vcmp.ge.s32.totalorder %v2604_v16, 1  ;;  %v2680_v45 = vsel %vm36_vm4, 1.0, %v4391_v2  ;;  %vm40_vm10 = vcmp.ge.s32.totalorder %v2608_v19, 1 }
   0xe   :  { %232 = vrot.lane.b32.xlu0 %v2477_v1, %s2440_s16  ;;  %217 = vrot.lane.b32.xlu1 %v2472_v0, %s2441_s19  ;;  %vm118_vm14 = vmand %vm38_vm11, %vm46_vm12  ;;  %v2662_v35 = vsel %vm119_vm13, 1.0, %v4391_v2  ;;  %vm4388_vm13 = vcmp.lt.s32.totalorder %v2596_v8, 113  ;;  %v2697_v51 = vsel %vm39_vm7, 1.0, %v4391_v2  ;;  %v2702_v52 = vsel %vm38_vm11, 1.0, %v4391_v2 }
   0xf   :  { %277 = vmatpush1.msra.mxu0 %v4391_v2  ;;  %354 = vmatpush1.msra.mxu1 %v4391_v2  ;;  %v2665_v36 = vsel %vm118_vm14, 1.0, %v4391_v2  ;;  %vm97_vm6 = vmand %vm37_vm2, %vm41_vm0  ;;  %vm43_vm14 = vcmp.ge.s32.totalorder %v2612_v21, 1  ;;  %v2737_v11 = vsel %vm45_vm3, 1.0, %v4391_v2 }
  0x10   :  { %278 = vmatprep.subr.mxu0 %v4391_v2  ;;  %355 = vmatprep.subr.mxu1 %v4391_v2  ;;  %v2692_v50 = vsel %vm97_vm6, 1.0, %v4391_v2  ;;  %vm96_vm2 = vmand %vm36_vm4, %vm40_vm10  ;;  %vm42_vm6 = vcmp.ge.s32.totalorder %v2618_v23, 1 }
  0x11   :  { %279 = vmatpush1.msra.mxu0 %v4391_v2  ;;  %356 = vmatpush1.msra.mxu1 %v4391_v2  ;;  %v2720_v61 = vsel %vm96_vm2, 1.0, %v4391_v2  ;;  %vm99_vm4 = vmand %vm39_vm7, %vm43_vm14  ;;  %vm4387_vm2 = vcmp.lt.s32.totalorder %v2596_v8, 127  ;;  %vm4389_vm7 = vcmp.lt.s32.totalorder %v2596_v8, 1 }
  0x12   :  { %219 = vrot.lane.b32.xlu0 %v2492_v4, %s2441_s19  ;;  %238 = vrot.lane.b32.xlu1 %v2515_v6, %s2440_s16  ;;  %v2740_v12 = vsel %vm99_vm4, 1.0, %v4391_v2  ;;  %vm32_vm4 = vcmp.ge.s32.totalorder %v2606_v18, 1 }
  0x13   :  { %280 = vmatprep.subr.mxu0 %v4391_v2  ;;  %357 = vmatprep.subr.mxu1 %v4391_v2 }
  0x14   :  { %281 = vmatpush1.msra.mxu0 %v4391_v2  ;;  %358 = vmatpush1.msra.mxu1 %v4391_v2 }
  0x16   :  { %215 = vrot.lane.b32.xlu0 %v2477_v1, %s2441_s19  ;;  %200 = vrot.lane.b32.xlu1 %v2472_v0, %s2442_s20 }
  0x1a   :  { %202 = vrot.lane.b32.xlu0 %v2492_v4, %s2442_s20  ;;  %221 = vrot.lane.b32.xlu1 %v2515_v6, %s2441_s19 }
  0x1e   :  { %198 = vrot.lane.b32.xlu0 %v2477_v1, %s2442_s20  ;;  %204 = vrot.lane.b32.xlu1 %v2515_v6, %s2442_s20 }
  0x22   :  { %181 = vrot.lane.b32.xlu0 %v2477_v1, %s2443_s21  ;;  %183 = vrot.lane.b32.xlu1 %v2472_v0, %s2443_s21 }
  0x26   :  { %187 = vrot.lane.b32.xlu0 %v2515_v6, %s2443_s21  ;;  %164 = vrot.lane.b32.xlu1 %v2477_v1, %s2444_s22 }
  0x2a   :  { %166 = vrot.lane.b32.xlu0 %v2472_v0, %s2444_s22  ;;  %185 = vrot.lane.b32.xlu1 %v2492_v4, %s2443_s21 }
  0x2e   :  { %170 = vrot.lane.b32.xlu0 %v2515_v6, %s2444_s22  ;;  %147 = vrot.lane.b32.xlu1 %v2477_v1, %s2445_s23 }
  0x32   :  { %149 = vrot.lane.b32.xlu0 %v2472_v0, %s2445_s23  ;;  %168 = vrot.lane.b32.xlu1 %v2492_v4, %s2444_s22 }
  0x36   :  { %153 = vrot.lane.b32.xlu0 %v2515_v6, %s2445_s23  ;;  %130 = vrot.lane.b32.xlu1 %v2477_v1, %s2446_s24 }
  0x3a   :  { %132 = vrot.lane.b32.xlu0 %v2472_v0, %s2446_s24  ;;  %151 = vrot.lane.b32.xlu1 %v2492_v4, %s2445_s23 }
  0x3e   :  { %136 = vrot.lane.b32.xlu0 %v2515_v6, %s2446_s24  ;;  %134 = vrot.lane.b32.xlu1 %v2492_v4, %s2446_s24 }
  0x74   :  { %v252_v24 = vpop.permute.xlu0 %251  ;;  %v250_v25 = vpop.permute.xlu1 %249 }
  0x75   :  { %v260_v27 = vsel %vm257_vm9, %v250_v25, %v252_v24 }
  0x76   :  { %v262_v33 = vmul.f32 %v2645_v30, %v260_v27 }
  0x78   :  { %v254_v28 = vpop.permute.xlu0 %253  ;;  %v235_v29 = vpop.permute.xlu1 %234 }
  0x79   :  { %v259_v31 = vsel %vm257_vm9, %v252_v24, %v254_v28 }
  0x7a   :  { %v263_v32 = vmul.f32 %v2636_v26, %v259_v31 }
  0x7c   :  { %282 = vmatprep.subr.mxu0 %v263_v32  ;;  %v237_v37 = vpop.permute.xlu0 %236  ;;  %v256_v38 = vpop.permute.xlu1 %255  ;;  %v2757_v32 = vsel %vm44_vm5, 1.0, %v4391_v2 }
  0x7d   :  { %v242_v39 = vsel %vm4386_vm15, %v235_v29, %v237_v37  ;;  %v258_v40 = vsel %vm257_vm9, %v254_v28, %v256_v38  ;;  %v261_v41 = vsel %vm257_vm9, %v256_v38, %v250_v25  ;;  %283 = vmatpush1.msra.mxu0 %v262_v33  ;;  %v2762_v33 = vsel %vm47_vm8, 1.0, %v4391_v2 }
  0x7e   :  { %v246_v42 = vmul.f32 %v2659_v34, %v242_v39  ;;  %v265_v43 = vmul.f32 %v2662_v35, %v261_v41  ;;  %v264_v44 = vmul.f32 %v2665_v36, %v258_v40 }
  0x80   :  { %v233_v46 = vpop.permute.xlu0 %232  ;;  %284 = vmatprep.subr.mxu0 %v246_v42  ;;  %359 = vmatprep.subr.mxu1 %v265_v43  ;;  %v218_v47 = vpop.permute.xlu1 %217 }
  0x81   :  { %v243_v48 = vsel %vm4386_vm15, %v233_v46, %v235_v29  ;;  %360 = vmatpush1.msra.mxu1 %v264_v44 }
  0x82   :  { %v245_v49 = vmul.f32 %v2680_v45, %v243_v48 }
  0x84   :  { %v220_v53 = vpop.permute.xlu0 %219  ;;  %285 = vmatpush1.msra.mxu0 %v245_v49  ;;  %v239_v54 = vpop.permute.xlu1 %238 }
  0x85   :  { %v225_v55 = vsel %vm4388_vm13, %v218_v47, %v220_v53  ;;  %v241_v56 = vsel %vm4386_vm15, %v237_v37, %v239_v54  ;;  %v244_v57 = vsel %vm4386_vm15, %v239_v54, %v233_v46  ;;  %vm98_vm15 = vmand %vm38_vm11, %vm42_vm6  ;;  %v2767_v37 = vsel %vm46_vm12, 1.0, %v4391_v2 }
  0x86   :  { %v229_v58 = vmul.f32 %v2692_v50, %v225_v55  ;;  %v248_v59 = vmul.f32 %v2697_v51, %v244_v57  ;;  %v247_v60 = vmul.f32 %v2702_v52, %v241_v56  ;;  %v2743_v13 = vsel %vm98_vm15, 1.0, %v4391_v2 }
  0x87   :  { %vm33_vm11 = vcmp.ge.s32.totalorder %v2602_v15, 1  ;;  %v2794_v55 = vsel %vm40_vm10, 1.0, %v4391_v2 }
  0x88   :  { %v216_v62 = vpop.permute.xlu0 %215  ;;  %286 = vmatprep.subr.mxu0 %v229_v58  ;;  %361 = vmatprep.subr.mxu1 %v248_v59  ;;  %v201_v63 = vpop.permute.xlu1 %200  ;;  %vm69_vm15 = vmand %vm33_vm11, %vm45_vm3  ;;  %v2817_v58 = vsel %vm42_vm6, 1.0, %v4391_v2 }
  0x89   :  { %v226_v9 = vsel %vm4388_vm13, %v216_v62, %v218_v47  ;;  %362 = vmatpush1.msra.mxu1 %v247_v60  ;;  %v2782_v47 = vsel %vm41_vm0, 1.0, %v4391_v2  ;;  %4437 = vst [vmem:[#allocation5_spill] sm:$0xff] %v2817_v58  ;;  %vm68_vm3 = vmand %vm32_vm4, %vm44_vm5 }
  0x8a   :  { %v228_v10 = vmul.f32 %v2720_v61, %v226_v9 }
  0x8c   :  { %v203_v14 = vpop.permute.xlu0 %202  ;;  %287 = vmatpush1.msra.mxu0 %v228_v10  ;;  %v222_v17 = vpop.permute.xlu1 %221 }
  0x8d   :  { %v208_v24 = vsel %vm4387_vm2, %v201_v63, %v203_v14  ;;  %v224_v25 = vsel %vm4388_vm13, %v220_v53, %v222_v17  ;;  %v227_v27 = vsel %vm4388_vm13, %v222_v17, %v216_v62  ;;  %vm34_vm13 = vcmp.ge.s32.totalorder %v2616_v22, 1 }
  0x8e   :  { %v212_v28 = vmul.f32 %v2737_v11, %v208_v24  ;;  %v231_v29 = vmul.f32 %v2740_v12, %v227_v27  ;;  %v230_v31 = vmul.f32 %v2743_v13, %v224_v25  ;;  %v2835_v24 = vsel %vm68_vm3, 1.0, %v4391_v2 }
  0x8f   :  { %vm155_vm3 = vcmp.lt.s32.totalorder %v2596_v8, 16  ;;  %v2897_v16 = vsel %vm34_vm13, 1.0, %v4391_v2 }
  0x90   :  { %v199_v38 = vpop.permute.xlu0 %198  ;;  %288 = vmatprep.subr.mxu0 %v212_v28  ;;  %363 = vmatprep.subr.mxu1 %v231_v29  ;;  %v205_v39 = vpop.permute.xlu1 %204  ;;  %4441 = vst [vmem:[#allocation9_spill] sm:$0xff] %v2897_v16 }
  0x91   :  { %v209_v40 = vsel %vm4387_vm2, %v199_v38, %v201_v63  ;;  %v207_v41 = vsel %vm4387_vm2, %v203_v14, %v205_v39  ;;  %v210_v42 = vsel %vm4387_vm2, %v205_v39, %v199_v38  ;;  %364 = vmatpush1.msra.mxu1 %v230_v31  ;;  %vm172_vm2 = vcmp.lt.s32.totalorder %v2596_v8, 15 }
  0x92   :  { %v211_v43 = vmul.f32 %v2757_v32, %v209_v40  ;;  %v214_v44 = vmul.f32 %v2762_v33, %v210_v42  ;;  %v213_v46 = vmul.f32 %v2767_v37, %v207_v41  ;;  %v2852_v31 = vsel %vm33_vm11, 1.0, %v4391_v2 }
  0x94   :  { %v182_v48 = vpop.permute.xlu0 %181  ;;  %289 = vmatpush1.msra.mxu0 %v211_v43  ;;  %365 = vmatprep.subr.mxu1 %v214_v44  ;;  %v184_v49 = vpop.permute.xlu1 %183 }
  0x95   :  { %v192_v53 = vsel %vm4389_vm7, %v182_v48, %v184_v49  ;;  %366 = vmatpush1.msra.mxu1 %v213_v46  ;;  %290 = vmatprep.subr.mxu0 %v2472_v0 }
  0x96   :  { %291 = vmatpush1.msra.mxu0 %v2477_v1  ;;  %v195_v54 = vmul.f32 %v2782_v47, %v192_v53  ;;  %367 = vmatprep.subr.mxu1 %v2515_v6  ;;  %v2807_v6 = vsel %vm69_vm15, 1.0, %v4391_v2  ;;  %vm35_vm15 = vcmp.ge.s32.totalorder %v2610_v20, 1  ;;  %v2872_v53 = vsel %vm32_vm4, 1.0, %v4391_v2 }
  0x97   :  { %368 = vmatpush1.msra.mxu1 %v2492_v4  ;;  %v2812_v4 = vsel %vm43_vm14, 1.0, %v4391_v2  ;;  %vm71_vm5 = vmand %vm35_vm15, %vm47_vm8  ;;  %v2892_v15 = vsel %vm35_vm15, 1.0, %v4391_v2 }
  0x98   :  { %v188_v56 = vpop.permute.xlu0 %187  ;;  %292 = vmatprep.subr.mxu0 %v195_v54  ;;  %v165_v57 = vpop.permute.xlu1 %164  ;;  %4436 = vst [vmem:[#allocation4_spill] sm:$0xff] %v2812_v4  ;;  %v2855_v38 = vsel %vm71_vm5, 1.0, %v4391_v2  ;;  %vm49_vm8 = vmand %vm33_vm11, %vm41_vm0  ;;  %vm4455_vm5 = vcmp.lt.s32.totalorder %v2596_v8, 127 }
  0x99   :  { %v193_v0 = vsel %vm4389_vm7, %v188_v56, %v182_v48  ;;  %4438 = vst [vmem:[#allocation6_spill] sm:$0xff] %v2855_v38  ;;  %4440 = vst [vmem:[#allocation8_spill] sm:$0xff] %v2892_v15 }
  0x9a   :  { %v194_v1 = vmul.f32 %v2794_v55, %v193_v0  ;;  %vm51_vm0 = vmand %vm35_vm15, %vm43_vm14 }
  0x9b   :  { %v2920_v22 = vsel %vm51_vm0, 1.0, %v4391_v2 }
  0x9c   :  { %v167_v59 = vpop.permute.xlu0 %166  ;;  %293 = vmatpush1.msra.mxu0 %v194_v1  ;;  %v186_v60 = vpop.permute.xlu1 %185  ;;  %v2887_v1 = vsel %vm49_vm8, 1.0, %v4391_v2  ;;  %4443 = vst [vmem:[#allocation11_spill] sm:$0xff] %v2920_v22  ;;  %vm4456_vm8 = vmmov %vm4455_vm5 }
  0x9d   :  { %v175_v62 = vsel %vm172_vm2, %v165_v57, %v167_v59  ;;  %v190_v63 = vsel %vm4389_vm7, %v186_v60, %v188_v56  ;;  %v191_v9 = vsel %vm4389_vm7, %v184_v49, %v186_v60  ;;  %vm70_vm7 = vmand %vm34_vm13, %vm46_vm12  ;;  %vm138_vm12 = vcmp.lt.s32.totalorder %v2596_v8, 17 }
  0x9e   :  { %v178_v10 = vmul.f32 %v2807_v6, %v175_v62  ;;  %v197_v14 = vmul.f32 %v2812_v4, %v190_v63  ;;  %v196_v17 = vmul.f32 %v2817_v58, %v191_v9  ;;  %v2858_v39 = vsel %vm70_vm7, 1.0, %v4391_v2  ;;  %vm48_vm7 = vmand %vm32_vm4, %vm40_vm10 }
  0x9f   :  { %4439 = vst [vmem:[#allocation7_spill] sm:$0xff] %v2858_v39  ;;  %vm50_vm10 = vmand %vm34_vm13, %vm42_vm6  ;;  %v2917_v23 = vsel %vm48_vm7, 1.0, %v4391_v2  ;;  %vm4449_vm13 = vcmp.lt.s32.totalorder %v2596_v8, 112  ;;  %vm4451_vm6 = vcmp.lt.s32.totalorder %v2596_v8, 113 }
  0xa0   :  { %v171_v25 = vpop.permute.xlu0 %170  ;;  %294 = vmatprep.subr.mxu0 %v178_v10  ;;  %369 = vmatprep.subr.mxu1 %v197_v14  ;;  %v148_v27 = vpop.permute.xlu1 %147  ;;  %4442 = vst [vmem:[#allocation10_spill] sm:$0xff] %v2917_v23  ;;  %v2923_v9 = vsel %vm50_vm10, 1.0, %v4391_v2  ;;  %vm4450_vm14 = vmmov %vm4449_vm13 }
  0xa1   :  { %v176_v28 = vsel %vm172_vm2, %v171_v25, %v165_v57  ;;  %370 = vmatpush1.msra.mxu1 %v196_v17  ;;  %4444 = vst [vmem:[#allocation12_spill] sm:$0xff] %v2923_v9  ;;  %vm4452_vm11 = vmmov %vm4451_vm6 }
  0xa2   :  { %v177_v29 = vmul.f32 %v2835_v24, %v176_v28  ;;  %vm4453_vm4 = vmmov %vm4449_vm13 }
  0xa3   :  { %vm4454_vm15 = vmmov %vm4453_vm4 }
  0xa4   :  { %v150_v40 = vpop.permute.xlu0 %149  ;;  %295 = vmatpush1.msra.mxu0 %v177_v29  ;;  %v169_v41 = vpop.permute.xlu1 %168  ;;  %vm4457_vm7 = vmmov %vm4451_vm6 }
  0xa5   :  { %v158_v42 = vsel %vm155_vm3, %v148_v27, %v150_v40  ;;  %v173_v43 = vsel %vm172_vm2, %v169_v41, %v171_v25  ;;  %v174_v44 = vsel %vm172_vm2, %v167_v59, %v169_v41  ;;  %vm4458_vm0 = vmmov %vm4451_vm6 }
  0xa6   :  { %v161_v46 = vmul.f32 %v2852_v31, %v158_v42  ;;  %v180_v48 = vmul.f32 %v2855_v38, %v173_v43  ;;  %v179_v49 = vmul.f32 %v2858_v39, %v174_v44  ;;  %v267_v42 = vld [vmem:[%s4384_s1 + $0x8] sm:$0xff]  ;;  %vm4459_vm10 = vmmov %vm4455_vm5 }
  0xa8   :  { %v154_v54 = vpop.permute.xlu0 %153  ;;  %296 = vmatprep.subr.mxu0 %v161_v46  ;;  %371 = vmatprep.subr.mxu1 %v180_v48  ;;  %v131_v56 = vpop.permute.xlu1 %130 }
  0xa9   :  { %v159_v57 = vsel %vm155_vm3, %v154_v54, %v148_v27  ;;  %372 = vmatpush1.msra.mxu1 %v179_v49 }
  0xaa   :  { %v160_v0 = vmul.f32 %v2872_v53, %v159_v57 }
  0xac   :  { %v133_v18 = vpop.permute.xlu0 %132  ;;  %297 = vmatpush1.msra.mxu0 %v160_v0  ;;  %v152_v19 = vpop.permute.xlu1 %151 }
  0xad   :  { %v141_v59 = vsel %vm138_vm12, %v131_v56, %v133_v18  ;;  %v156_v60 = vsel %vm155_vm3, %v152_v19, %v154_v54  ;;  %v157_v21 = vsel %vm155_vm3, %v150_v40, %v152_v19  ;;  %v266_v40 = vld [vmem:[%s4384_s1] sm:$0xff] }
  0xae   :  { %v144_v20 = vmul.f32 %v2887_v1, %v141_v59  ;;  %v163_v62 = vmul.f32 %v2892_v15, %v156_v60  ;;  %v162_v63 = vmul.f32 %v2897_v16, %v157_v21 }
  0xb0   :  { %v137_v10 = vpop.permute.xlu0 %136  ;;  %298 = vmatprep.subr.mxu0 %v144_v20  ;;  %373 = vmatprep.subr.mxu1 %v163_v62  ;;  %v135_v14 = vpop.permute.xlu1 %134 }
  0xb1   :  { %v142_v17 = vsel %vm138_vm12, %v137_v10, %v131_v56  ;;  %v139_v25 = vsel %vm138_vm12, %v135_v14, %v137_v10  ;;  %v140_v27 = vsel %vm138_vm12, %v133_v18, %v135_v14  ;;  %374 = vmatpush1.msra.mxu1 %v162_v63 }
  0xb2   :  { %v143_v28 = vmul.f32 %v2917_v23, %v142_v17  ;;  %v146_v29 = vmul.f32 %v2920_v22, %v139_v25  ;;  %v145_v41 = vmul.f32 %v2923_v9, %v140_v27 }
  0xb4   :  { %299 = vmatpush1.msra.mxu0 %v143_v28  ;;  %375 = vmatprep.subr.mxu1 %v146_v29 }
  0xb5   :  { %333 = vmatmul.mubr.f32.vlgmr.msra.gmra.mxu0 %v266_v40  ;;  %376 = vmatpush1.msra.mxu1 %v145_v41 }
  0xb6   :  { %410 = vmatmul.mubr.f32.vlgmr.msra.gmra.mxu1 %v266_v40  ;;  %338 = vmatprep.mubr.f32.mxu0 %v4391_v2 }
  0xb7   :  { %415 = vmatprep.mubr.f32.mxu1 %v4391_v2  ;;  %2110 = vmatprep.subr.msk.mxu0 %vm2485_vm1, %v4393_v5 }
  0xb8   :  { %2112 = vmatpush1.msk.msra.mxu0 %vm2485_vm1, %v4393_v5  ;;  %2114 = vmatprep.subr.msk.mxu1 %vm2485_vm1, %v4393_v5 }
  0xb9   :  { %339 = vmatmul.mubr.f32.gmra.mxu0 %v267_v42  ;;  %561 = vmatprep.subr.mxu0 %v4391_v2 }
  0xba   :  { %416 = vmatmul.mubr.f32.gmra.mxu1 %v267_v42  ;;  %562 = vmatpush1.msra.mxu0 %v4391_v2 }
  0xbb   :  { %563 = vmatprep.subr.mxu0 %v4391_v2  ;;  %2116 = vmatpush1.msk.msra.mxu1 %vm2485_vm1, %v4393_v5 }
  0xbc   :  { %564 = vmatpush1.msra.mxu0 %v4391_v2  ;;  %632 = vmatprep.subr.mxu1 %v4391_v2 }
  0xbd   :  { %565 = vmatprep.subr.mxu0 %v4391_v2  ;;  %633 = vmatpush1.msra.mxu1 %v4391_v2 }
  0xbe   :  { %566 = vmatpush1.msra.mxu0 %v4391_v2  ;;  %634 = vmatprep.subr.mxu1 %v4391_v2 }
  0xbf   :  { %567 = vmatprep.subr.mxu0 %v4391_v2  ;;  %635 = vmatpush1.msra.mxu1 %v4391_v2 }
  0xc0   :  { %568 = vmatpush1.msra.mxu0 %v4391_v2  ;;  %636 = vmatprep.subr.mxu1 %v4391_v2 }
  0xc1   :  { %569 = vmatprep.subr.mxu0 %v4391_v2  ;;  %637 = vmatpush1.msra.mxu1 %v4391_v2 }
  0xc2   :  { %570 = vmatpush1.msra.mxu0 %v4391_v2  ;;  %638 = vmatprep.subr.mxu1 %v4391_v2 }
  0xc3   :  { %571 = vmatprep.subr.mxu0 %v4391_v2  ;;  %639 = vmatpush1.msra.mxu1 %v4391_v2 }
  0xc4   :  { %572 = vmatpush1.msra.mxu0 %v4391_v2  ;;  %640 = vmatprep.subr.mxu1 %v4391_v2 }
  0xc5   :  { %641 = vmatpush1.msra.mxu1 %v4391_v2  ;;  %623 = vmatprep.mubr.f32.mxu0 %v4391_v2 }
  0xc6   :  { %642 = vmatprep.subr.mxu1 %v4391_v2  ;;  %694 = vmatprep.mubr.f32.mxu1 %v4391_v2 }
  0xc7   :  { %643 = vmatpush1.msra.mxu1 %v4391_v2 }
 0x175   :  { %v334_v43 = vpop.f32.mrf.mxu0 }
 0x176   :  { %v2980_v44 = vmax.f32 %v334_v43, 0.0  ;;  %v411_v46 = vpop.f32.mrf.mxu1 }
 0x177   :  { %v2982_v48 = vmax.f32 %v411_v46, 0.0  ;;  %v336_v49 = vpop.f32.mrf.mxu0 }
 0x178   :  { %542 = vrot.lane.b32.xlu0 %v2980_v44, %s2438_s13  ;;  %v3016_v54 = vmax.f32 %v336_v49, 0.0  ;;  %v413_v56 = vpop.f32.mrf.mxu1 }
 0x179   :  { %546 = vrot.lane.b32.xlu1 %v2982_v48, %s2438_s13  ;;  %v3022_v57 = vmax.f32 %v413_v56, 0.0  ;;  %v340_v0 = vpop.f32.mrf.mxu0 }
 0x17a   :  { %v3048_v18 = vmax.f32 %v340_v0, 0.0  ;;  %v417_v19 = vpop.f32.mrf.mxu1 }
 0x17b   :  { %v3052_v59 = vmax.f32 %v417_v19, 0.0  ;;  %v342_v60 = vpop.f32.mrf.mxu0 }
 0x17c   :  { %530 = vrot.lane.b32.xlu0 %v2982_v48, %s2440_s16  ;;  %4445 = vst [vmem:[#allocation13_spill] sm:$0xff] %v3048_v18  ;;  %v3080_v21 = vmax.f32 %v342_v60, 0.0  ;;  %v419_v20 = vpop.f32.mrf.mxu1 }
 0x17d   :  { %462 = vrot.lane.b32.xlu1 %v2980_v44, %s2444_s22  ;;  %4446 = vst [vmem:[#allocation14_spill] sm:$0xff] %v3052_v59  ;;  %v3086_v62 = vmax.f32 %v419_v20, 0.0 }
 0x17e   :  { %4447 = vst [vmem:[#allocation15_spill] sm:$0xff] %v3080_v21 }
 0x17f   :  { %4448 = vst [vmem:[#allocation16_spill] sm:$0xff] %v3086_v62 }
 0x180   :  { %526 = vrot.lane.b32.xlu0 %v2980_v44, %s2440_s16 }
 0x181   :  { %482 = vrot.lane.b32.xlu1 %v2982_v48, %s2443_s21 }
 0x184   :  { %514 = vrot.lane.b32.xlu0 %v2982_v48, %s2441_s19 }
 0x185   :  { %446 = vrot.lane.b32.xlu1 %v2980_v44, %s2445_s23 }
 0x188   :  { %510 = vrot.lane.b32.xlu0 %v2980_v44, %s2441_s19 }
 0x189   :  { %466 = vrot.lane.b32.xlu1 %v2982_v48, %s2444_s22 }
 0x18c   :  { %498 = vrot.lane.b32.xlu0 %v2982_v48, %s2442_s20 }
 0x18d   :  { %430 = vrot.lane.b32.xlu1 %v2980_v44, %s2446_s24 }
 0x190   :  { %494 = vrot.lane.b32.xlu0 %v2980_v44, %s2442_s20 }
 0x191   :  { %450 = vrot.lane.b32.xlu1 %v2982_v48, %s2445_s23 }
 0x194   :  { %478 = vrot.lane.b32.xlu0 %v2980_v44, %s2443_s21 }
 0x195   :  { %434 = vrot.lane.b32.xlu1 %v2982_v48, %s2446_s24 }
 0x198   :  { %544 = vrot.lane.b32.xlu0 %v3016_v54, %s2438_s13 }
 0x199   :  { %528 = vrot.lane.b32.xlu1 %v3016_v54, %s2440_s16 }
 0x19c   :  { %484 = vrot.lane.b32.xlu0 %v3022_v57, %s2443_s21 }
 0x19d   :  { %548 = vrot.lane.b32.xlu1 %v3022_v57, %s2438_s13 }
 0x1a0   :  { %464 = vrot.lane.b32.xlu0 %v3016_v54, %s2444_s22 }
 0x1a1   :  { %512 = vrot.lane.b32.xlu1 %v3016_v54, %s2441_s19 }
 0x1a4   :  { %468 = vrot.lane.b32.xlu0 %v3022_v57, %s2444_s22 }
 0x1a5   :  { %532 = vrot.lane.b32.xlu1 %v3022_v57, %s2440_s16 }
 0x1a8   :  { %448 = vrot.lane.b32.xlu0 %v3016_v54, %s2445_s23 }
 0x1a9   :  { %496 = vrot.lane.b32.xlu1 %v3016_v54, %s2442_s20 }
 0x1ac   :  { %452 = vrot.lane.b32.xlu0 %v3022_v57, %s2445_s23 }
 0x1ad   :  { %516 = vrot.lane.b32.xlu1 %v3022_v57, %s2441_s19 }
 0x1b0   :  { %432 = vrot.lane.b32.xlu0 %v3016_v54, %s2446_s24 }
 0x1b1   :  { %500 = vrot.lane.b32.xlu1 %v3022_v57, %s2442_s20 }
 0x1b4   :  { %436 = vrot.lane.b32.xlu0 %v3022_v57, %s2446_s24 }
 0x1b5   :  { %480 = vrot.lane.b32.xlu1 %v3016_v54, %s2443_s21 }
 0x1b8   :  { %817 = vrot.lane.b32.xlu0 %v3048_v18, %s2438_s13 }
 0x1b9   :  { %821 = vrot.lane.b32.xlu1 %v3052_v59, %s2438_s13 }
 0x1bc   :  { %805 = vrot.lane.b32.xlu0 %v3052_v59, %s2440_s16 }
 0x1bd   :  { %737 = vrot.lane.b32.xlu1 %v3048_v18, %s2444_s22 }
 0x1c0   :  { %801 = vrot.lane.b32.xlu0 %v3048_v18, %s2440_s16 }
 0x1c1   :  { %757 = vrot.lane.b32.xlu1 %v3052_v59, %s2443_s21 }
 0x1c4   :  { %789 = vrot.lane.b32.xlu0 %v3052_v59, %s2441_s19 }
 0x1c5   :  { %721 = vrot.lane.b32.xlu1 %v3048_v18, %s2445_s23 }
 0x1c8   :  { %785 = vrot.lane.b32.xlu0 %v3048_v18, %s2441_s19 }
 0x1c9   :  { %741 = vrot.lane.b32.xlu1 %v3052_v59, %s2444_s22 }
 0x1cc   :  { %773 = vrot.lane.b32.xlu0 %v3052_v59, %s2442_s20 }
 0x1cd   :  { %705 = vrot.lane.b32.xlu1 %v3048_v18, %s2446_s24 }
 0x1d0   :  { %769 = vrot.lane.b32.xlu0 %v3048_v18, %s2442_s20 }
 0x1d1   :  { %803 = vrot.lane.b32.xlu1 %v3080_v21, %s2440_s16 }
 0x1d4   :  { %753 = vrot.lane.b32.xlu0 %v3048_v18, %s2443_s21 }
 0x1d5   :  { %823 = vrot.lane.b32.xlu1 %v3086_v62, %s2438_s13 }
 0x1d8   :  { %819 = vrot.lane.b32.xlu0 %v3080_v21, %s2438_s13 }
 0x1d9   :  { %787 = vrot.lane.b32.xlu1 %v3080_v21, %s2441_s19 }
 0x1dc   :  { %759 = vrot.lane.b32.xlu0 %v3086_v62, %s2443_s21 }
 0x1dd   :  { %807 = vrot.lane.b32.xlu1 %v3086_v62, %s2440_s16 }
 0x1e0   :  { %739 = vrot.lane.b32.xlu0 %v3080_v21, %s2444_s22 }
 0x1e1   :  { %771 = vrot.lane.b32.xlu1 %v3080_v21, %s2442_s20 }
 0x1e4   :  { %743 = vrot.lane.b32.xlu0 %v3086_v62, %s2444_s22 }
 0x1e5   :  { %791 = vrot.lane.b32.xlu1 %v3086_v62, %s2441_s19 }
 0x1e8   :  { %723 = vrot.lane.b32.xlu0 %v3080_v21, %s2445_s23 }
 0x1e9   :  { %775 = vrot.lane.b32.xlu1 %v3086_v62, %s2442_s20 }
 0x1ea   :  { %v543_v63 = vpop.permute.xlu0 %542 }
 0x1eb   :  { %v547_v10 = vpop.permute.xlu1 %546 }
 0x1ec   :  { %727 = vrot.lane.b32.xlu0 %v3086_v62, %s2445_s23 }
 0x1ed   :  { %755 = vrot.lane.b32.xlu1 %v3080_v21, %s2443_s21 }
 0x1ee   :  { %v531_v14 = vpop.permute.xlu0 %530 }
 0x1ef   :  { %v3116_v17 = vpop.permute.xlu1 %462 }
 0x1f0   :  { %707 = vrot.lane.b32.xlu0 %v3080_v21, %s2446_s24 }
 0x1f1   :  { %725 = vrot.lane.b32.xlu1 %v3052_v59, %s2445_s23 }
 0x1f2   :  { %v527_v25 = vpop.permute.xlu0 %526 }
 0x1f3   :  { %v3122_v27 = vpop.permute.xlu1 %482 }
 0x1f4   :  { %711 = vrot.lane.b32.xlu0 %v3086_v62, %s2446_s24 }
 0x1f5   :  { %709 = vrot.lane.b32.xlu1 %v3052_v59, %s2446_s24 }
 0x1f6   :  { %v515_v28 = vpop.permute.xlu0 %514 }
 0x1f7   :  { %v3128_v29 = vpop.permute.xlu1 %446 }
 0x1fa   :  { %v511_v40 = vpop.permute.xlu0 %510 }
 0x1fb   :  { %v3130_v41 = vpop.permute.xlu1 %466 }
 0x1fe   :  { %v3132_v42 = vpop.permute.xlu0 %498 }
 0x1ff   :  { %v3134_v43 = vpop.permute.xlu1 %430 }
 0x202   :  { %v3136_v46 = vpop.permute.xlu0 %494 }
 0x203   :  { %v3138_v49 = vpop.permute.xlu1 %450 }
 0x206   :  { %v3140_v56 = vpop.permute.xlu0 %478 }
 0x207   :  { %v3142_v0 = vpop.permute.xlu1 %434 }
 0x20a   :  { %v545_v19 = vpop.permute.xlu0 %544 }
 0x20b   :  { %v551_v60 = vsel %vm257_vm9, %v545_v19, %v547_v10  ;;  %v552_v20 = vsel %vm257_vm9, %v543_v63, %v545_v19  ;;  %v529_v7 = vpop.permute.xlu1 %528 }
 0x20c   :  { %v554_v2 = vmul.f32 %v2645_v30, %v552_v20  ;;  %v535_v5 = vsel %vm4449_vm13, %v529_v7, %v531_v14  ;;  %v536_v59 = vsel %vm4450_vm14, %v527_v25, %v529_v7  ;;  %v555_v62 = vmul.f32 %v2636_v26, %v551_v60  ;;  %vm4460_vm13 = vmmov %vm4455_vm5 }
 0x20d   :  { %v539_v18 = vmul.f32 %v2659_v34, %v535_v5  ;;  %v538_v3 = vmul.f32 %v2680_v45, %v536_v59  ;;  %vm4461_vm14 = vcmp.lt.s32.totalorder %v2596_v8, 1 }
 0x20e   :  { %573 = vmatprep.subr.mxu0 %v555_v62  ;;  %v485_v21 = vpop.permute.xlu0 %484 }
 0x20f   :  { %574 = vmatpush1.msra.mxu0 %v554_v2  ;;  %v549_v23 = vpop.permute.xlu1 %548 }
 0x210   :  { %v550_v19 = vsel %vm257_vm9, %v547_v10, %v549_v23  ;;  %v553_v20 = vsel %vm257_vm9, %v549_v23, %v543_v63  ;;  %575 = vmatprep.subr.mxu0 %v539_v18 }
 0x211   :  { %v556_v30 = vmul.f32 %v2665_v36, %v550_v19  ;;  %576 = vmatpush1.msra.mxu0 %v538_v3  ;;  %v557_v7 = vmul.f32 %v2662_v35, %v553_v20 }
 0x212   :  { %v465_v60 = vpop.permute.xlu0 %464 }
 0x213   :  { %644 = vmatprep.subr.mxu1 %v557_v7  ;;  %v513_v5 = vpop.permute.xlu1 %512 }
 0x214   :  { %v519_v59 = vsel %vm4451_vm6, %v513_v5, %v515_v28  ;;  %v520_v2 = vsel %vm4452_vm11, %v511_v40, %v513_v5  ;;  %645 = vmatpush1.msra.mxu1 %v556_v30  ;;  %vm4462_vm6 = vmmov %vm4461_vm14 }
 0x215   :  { %v522_v62 = vmul.f32 %v2720_v61, %v520_v2  ;;  %v523_v23 = vmul.f32 %v2692_v50, %v519_v59  ;;  %vm4463_vm11 = vmmov %vm4462_vm6 }
 0x216   :  { %v469_v18 = vpop.permute.xlu0 %468 }
 0x217   :  { %577 = vmatprep.subr.mxu0 %v523_v23  ;;  %v533_v63 = vpop.permute.xlu1 %532 }
 0x218   :  { %v534_v3 = vsel %vm4453_vm4, %v531_v14, %v533_v63  ;;  %v537_v10 = vsel %vm4454_vm15, %v533_v63, %v527_v25  ;;  %578 = vmatpush1.msra.mxu0 %v522_v62  ;;  %vm4464_vm4 = vmmov %vm4462_vm6 }
 0x219   :  { %v540_v19 = vmul.f32 %v2702_v52, %v534_v3  ;;  %v541_v20 = vmul.f32 %v2697_v51, %v537_v10 }
 0x21a   :  { %v449_v7 = vpop.permute.xlu0 %448 }
 0x21b   :  { %646 = vmatprep.subr.mxu1 %v541_v20  ;;  %v497_v30 = vpop.permute.xlu1 %496 }
 0x21c   :  { %v503_v5 = vsel %vm4455_vm5, %v497_v30, %v3132_v42  ;;  %v504_v59 = vsel %vm4456_vm8, %v3136_v46, %v497_v30  ;;  %647 = vmatpush1.msra.mxu1 %v540_v19  ;;  %vm4469_vm5 = vmmov %vm4454_vm15 }
 0x21d   :  { %v506_v14 = vmul.f32 %v2757_v32, %v504_v59  ;;  %v507_v25 = vmul.f32 %v2737_v11, %v503_v5  ;;  %vm4471_vm8 = vmmov %vm4458_vm0 }
 0x21e   :  { %v453_v2 = vpop.permute.xlu0 %452 }
 0x21f   :  { %579 = vmatprep.subr.mxu0 %v507_v25  ;;  %v517_v62 = vpop.permute.xlu1 %516 }
 0x220   :  { %v518_v23 = vsel %vm4457_vm7, %v515_v28, %v517_v62  ;;  %v521_v63 = vsel %vm4458_vm0, %v517_v62, %v511_v40  ;;  %580 = vmatpush1.msra.mxu0 %v506_v14  ;;  %v473_v14 = vsel %vm172_vm2, %v469_v18, %v3116_v17  ;;  %vm4472_vm7 = vmmov %vm4458_vm0 }
 0x221   :  { %v524_v3 = vmul.f32 %v2743_v13, %v518_v23  ;;  %581 = vmatprep.subr.mxu0 %v3016_v54  ;;  %v525_v10 = vmul.f32 %v2740_v12, %v521_v63  ;;  %v489_v54 = vsel %vm4461_vm14, %v485_v21, %v3140_v56  ;;  %vm4473_vm0 = vmmov %vm4469_vm5 }
 0x222   :  { %v433_v19 = vpop.permute.xlu0 %432  ;;  %582 = vmatpush1.msra.mxu0 %v2980_v44  ;;  %v486_v44 = vsel %vm4462_vm6, %v3122_v27, %v485_v21  ;;  %v490_v62 = vmul.f32 %v2794_v55, %v489_v54  ;;  %v470_v21 = vsel %vm172_vm2, %v3130_v41, %v469_v18  ;;  %vm4475_vm14 = vmmov %vm4460_vm13 }
 0x223   :  { %648 = vmatprep.subr.mxu1 %v525_v10  ;;  %v501_v20 = vpop.permute.xlu1 %500  ;;  %v477_v54 = vmul.f32 %v2855_v38, %v470_v21  ;;  %vm4476_vm6 = vmmov %vm4472_vm7 }
 0x224   :  { %v502_v30 = vsel %vm4459_vm10, %v3132_v42, %v501_v20  ;;  %v505_v28 = vsel %vm4460_vm13, %v501_v20, %v3136_v46  ;;  %649 = vmatpush1.msra.mxu1 %v524_v3  ;;  %v471_v42 = vsel %vm172_vm2, %v465_v60, %v3130_v41  ;;  %v472_v46 = vsel %vm172_vm2, %v3116_v17, %v465_v60  ;;  %vm4474_vm10 = vmmov %vm4473_vm0 }
 0x225   :  { %v508_v40 = vmul.f32 %v2767_v37, %v502_v30  ;;  %v509_v5 = vmul.f32 %v2762_v33, %v505_v28  ;;  %v456_v17 = vsel %vm155_vm3, %v3128_v29, %v449_v7  ;;  %v493_v41 = vmul.f32 %v2812_v4, %v486_v44 }
 0x226   :  { %v437_v59 = vpop.permute.xlu0 %436  ;;  %v476_v18 = vmul.f32 %v2858_v39, %v471_v42  ;;  %v475_v20 = vmul.f32 %v2807_v6, %v472_v46  ;;  %v457_v30 = vsel %vm155_vm3, %v453_v2, %v3128_v29  ;;  %v439_v29 = vsel %vm138_vm12, %v433_v19, %v3142_v0 }
 0x227   :  { %650 = vmatprep.subr.mxu1 %v509_v5  ;;  %v481_v25 = vpop.permute.xlu1 %480  ;;  %v458_v44 = vmul.f32 %v2872_v53, %v457_v30 }
 0x228   :  { %v487_v23 = vsel %vm4463_vm11, %v481_v25, %v3122_v27  ;;  %v488_v60 = vsel %vm4464_vm4, %v3140_v56, %v481_v25  ;;  %651 = vmatpush1.msra.mxu1 %v508_v40  ;;  %v474_v27 = vmul.f32 %v2835_v24, %v473_v14  ;;  %v454_v56 = vsel %vm155_vm3, %v3138_v49, %v453_v2  ;;  %v558_v25 = vld [vmem:[%s4384_s1 + $0x10] sm:$0xff]  ;;  %vm4477_vm11 = vmmov %vm4476_vm6 }
 0x229   :  { %v492_v63 = vmul.f32 %v2817_v58, %v487_v23  ;;  %652 = vmatprep.subr.mxu1 %v3022_v57  ;;  %v491_v3 = vmul.f32 %v2782_v47, %v488_v60  ;;  %v455_v57 = vsel %vm155_vm3, %v449_v7, %v3138_v49  ;;  %v438_v40 = vsel %vm138_vm12, %v3142_v0, %v437_v59  ;;  %vm4480_vm4 = vmmov %vm4460_vm13 }
 0x22a   :  { %v3235_v10 = vpop.permute.xlu0 %817  ;;  %653 = vmatpush1.msra.mxu1 %v2982_v48  ;;  %v440_v48 = vsel %vm138_vm12, %v3134_v43, %v433_v19  ;;  %v459_v49 = vmul.f32 %v2852_v31, %v456_v17  ;;  %v441_v7 = vsel %vm138_vm12, %v437_v59, %v3134_v43  ;;  %v461_v2 = vmul.f32 %v2892_v15, %v454_v56  ;;  %v4465_v59 = vld [vmem:[#allocation10_spill] sm:$0xff] }
 0x22b   :  { %583 = vmatprep.subr.mxu0 %v491_v3  ;;  %654 = vmatprep.subr.mxu1 %v493_v41  ;;  %v3245_v28 = vpop.permute.xlu1 %821  ;;  %v460_v5 = vmul.f32 %v2897_v16, %v455_v57  ;;  %v443_v0 = vmul.f32 %v2887_v1, %v440_v48  ;;  %v445_v43 = vmul.f32 %v2920_v22, %v438_v40  ;;  %v4466_v23 = vmov 1.0  }
 0x22c   :  { %584 = vmatpush1.msra.mxu0 %v490_v62  ;;  %655 = vmatpush1.msra.mxu1 %v492_v63  ;;  %v444_v19 = vmul.f32 %v2923_v9, %v439_v29  ;;  %v442_v14 = vmul.f32 %v4465_v59, %v441_v7  ;;  %v4468_v63 = vmov 0.0  }
 0x22d   :  { %585 = vmatprep.subr.mxu0 %v475_v20  ;;  %656 = vmatprep.subr.mxu1 %v477_v54 }
 0x22e   :  { %586 = vmatpush1.msra.mxu0 %v474_v27  ;;  %657 = vmatpush1.msra.mxu1 %v476_v18  ;;  %v3264_v42 = vpop.permute.xlu0 %805 }
 0x22f   :  { %587 = vmatprep.subr.mxu0 %v459_v49  ;;  %658 = vmatprep.subr.mxu1 %v461_v2  ;;  %v3266_v46 = vpop.permute.xlu1 %737 }
 0x230   :  { %588 = vmatpush1.msra.mxu0 %v458_v44  ;;  %659 = vmatpush1.msra.mxu1 %v460_v5 }
 0x231   :  { %589 = vmatprep.subr.mxu0 %v443_v0  ;;  %660 = vmatprep.subr.mxu1 %v445_v43 }
 0x232   :  { %590 = vmatpush1.msra.mxu0 %v442_v14  ;;  %661 = vmatpush1.msra.mxu1 %v444_v19  ;;  %v3275_v62 = vpop.permute.xlu0 %801  ;;  %v4470_v19 = vld [vmem:[#allocation3_spill] sm:$0xff] }
 0x233   :  { %624 = vmatmul.mubr.f32.vlgmr.msra.gmra.mxu0 %v558_v25  ;;  %695 = vmatmul.mubr.f32.vlgmr.msra.gmra.mxu1 %v558_v25  ;;  %v3277_v21 = vpop.permute.xlu1 %757 }
 0x234   :  { %2122 = vmatprep.subr.msk.mxu1 %vm2485_vm1, %v4466_v23  ;;  %2118 = vmatprep.subr.msk.mxu0 %vm2485_vm1, %v4466_v23 }
 0x235   :  { %2124 = vmatpush1.msk.msra.mxu1 %vm2485_vm1, %v4466_v23  ;;  %2120 = vmatpush1.msk.msra.mxu0 %vm2485_vm1, %v4466_v23 }
 0x236   :  { %v3291_v17 = vpop.permute.xlu0 %789  ;;  %907 = vmatprep.subr.mxu1 %v4468_v63  ;;  %836 = vmatprep.subr.mxu0 %v4468_v63 }
 0x237   :  { %v3295_v3 = vpop.permute.xlu1 %721  ;;  %908 = vmatpush1.msra.mxu1 %v4468_v63  ;;  %837 = vmatpush1.msra.mxu0 %v4468_v63 }
 0x238   :  { %909 = vmatprep.subr.mxu1 %v4468_v63  ;;  %838 = vmatprep.subr.mxu0 %v4468_v63 }
 0x239   :  { %910 = vmatpush1.msra.mxu1 %v4468_v63  ;;  %839 = vmatpush1.msra.mxu0 %v4468_v63 }
 0x23a   :  { %v3303_v41 = vpop.permute.xlu0 %785  ;;  %911 = vmatprep.subr.mxu1 %v4468_v63  ;;  %840 = vmatprep.subr.mxu0 %v4468_v63 }
 0x23b   :  { %v3307_v18 = vpop.permute.xlu1 %741  ;;  %912 = vmatpush1.msra.mxu1 %v4468_v63  ;;  %841 = vmatpush1.msra.mxu0 %v4468_v63 }
 0x23c   :  { %913 = vmatprep.subr.mxu1 %v4468_v63  ;;  %842 = vmatprep.subr.mxu0 %v4468_v63 }
 0x23d   :  { %914 = vmatpush1.msra.mxu1 %v4468_v63  ;;  %843 = vmatpush1.msra.mxu0 %v4468_v63 }
 0x23e   :  { %v3315_v27 = vpop.permute.xlu0 %773  ;;  %915 = vmatprep.subr.mxu1 %v4468_v63  ;;  %844 = vmatprep.subr.mxu0 %v4468_v63 }
 0x23f   :  { %v3319_v56 = vpop.permute.xlu1 %705  ;;  %916 = vmatpush1.msra.mxu1 %v4468_v63  ;;  %845 = vmatpush1.msra.mxu0 %v4468_v63 }
 0x240   :  { %917 = vmatprep.subr.mxu1 %v4468_v63  ;;  %846 = vmatprep.subr.mxu0 %v4468_v63 }
 0x241   :  { %918 = vmatpush1.msra.mxu1 %v4468_v63  ;;  %847 = vmatpush1.msra.mxu0 %v4468_v63 }
 0x242   :  { %v770_v20 = vpop.permute.xlu0 %769  ;;  %898 = vmatprep.mubr.f32.mxu0 %v4468_v63  ;;  %969 = vmatprep.mubr.f32.mxu1 %v4468_v63 }
 0x243   :  { %v804_v57 = vpop.permute.xlu1 %803 }
 0x244   :  { %v810_v2 = vsel %vm4454_vm15, %v804_v57, %v3264_v42  ;;  %v811_v43 = vsel %vm4469_vm5, %v3275_v62, %v804_v57  ;;  %vm4481_vm15 = vmmov %vm4480_vm4  ;;  %vm4482_vm5 = vcmp.lt.s32.totalorder %v2596_v8, 1 }
 0x246   :  { %v3329_v30 = vpop.permute.xlu0 %753 }
 0x247   :  { %v824_v54 = vpop.permute.xlu1 %823 }
 0x248   :  { %v825_v48 = vsel %vm257_vm9, %v3245_v28, %v824_v54  ;;  %v828_v40 = vsel %vm257_vm9, %v824_v54, %v3235_v10 }
 0x249   :  { %v831_v49 = vmul.f32 %v2665_v36, %v825_v48  ;;  %v832_v29 = vmul.f32 %v2662_v35, %v828_v40  ;;  %v814_v48 = vmul.f32 %v2659_v34, %v810_v2  ;;  %v813_v40 = vmul.f32 %v2680_v45, %v811_v43 }
 0x24a   :  { %v820_v7 = vpop.permute.xlu0 %819 }
 0x24b   :  { %v826_v5 = vsel %vm257_vm9, %v820_v7, %v3245_v28  ;;  %v827_v44 = vsel %vm257_vm9, %v3235_v10, %v820_v7  ;;  %919 = vmatprep.subr.mxu1 %v832_v29  ;;  %v788_v0 = vpop.permute.xlu1 %787 }
 0x24c   :  { %v829_v14 = vmul.f32 %v4470_v19, %v827_v44  ;;  %920 = vmatpush1.msra.mxu1 %v831_v49  ;;  %v830_v25 = vmul.f32 %v2636_v26, %v826_v5  ;;  %v794_v54 = vsel %vm4471_vm8, %v788_v0, %v3291_v17  ;;  %v795_v28 = vsel %vm4472_vm7, %v3303_v41, %v788_v0  ;;  %vm4483_vm8 = vmmov %vm4482_vm5 }
 0x24d   :  { %v798_v7 = vmul.f32 %v2692_v50, %v794_v54  ;;  %v797_v5 = vmul.f32 %v2720_v61, %v795_v28  ;;  %vm4484_vm7 = vmmov %vm4482_vm5 }
 0x24e   :  { %848 = vmatprep.subr.mxu0 %v830_v25  ;;  %v760_v10 = vpop.permute.xlu0 %759 }
 0x24f   :  { %849 = vmatpush1.msra.mxu0 %v829_v14  ;;  %v808_v57 = vpop.permute.xlu1 %807 }
 0x250   :  { %v809_v49 = vsel %vm4473_vm0, %v3264_v42, %v808_v57  ;;  %v812_v29 = vsel %vm4474_vm10, %v808_v57, %v3275_v62  ;;  %850 = vmatprep.subr.mxu0 %v814_v48  ;;  %vm4485_vm0 = vmmov %vm4482_vm5 }
 0x251   :  { %v815_v44 = vmul.f32 %v2702_v52, %v809_v49  ;;  %851 = vmatpush1.msra.mxu0 %v813_v40  ;;  %v816_v2 = vmul.f32 %v2697_v51, %v812_v29  ;;  %v4478_v49 = vld [vmem:[#allocation15_spill] sm:$0xff] }
 0x252   :  { %v740_v0 = vpop.permute.xlu0 %739  ;;  %852 = vmatprep.subr.mxu0 %v798_v7 }
 0x253   :  { %853 = vmatpush1.msra.mxu0 %v797_v5  ;;  %921 = vmatprep.subr.mxu1 %v816_v2  ;;  %v772_v43 = vpop.permute.xlu1 %771  ;;  %v4479_v5 = vld [vmem:[#allocation13_spill] sm:$0xff] }
 0x254   :  { %v778_v42 = vsel %vm4460_vm13, %v772_v43, %v3315_v27  ;;  %v779_v62 = vsel %vm4475_vm14, %v770_v20, %v772_v43  ;;  %922 = vmatpush1.msra.mxu1 %v815_v44  ;;  %vm4492_vm13 = vmmov %vm4474_vm10 }
 0x255   :  { %v781_v14 = vmul.f32 %v2757_v32, %v779_v62  ;;  %v782_v25 = vmul.f32 %v2737_v11, %v778_v42  ;;  %v761_v42 = vsel %vm4482_vm5, %v3277_v21, %v760_v10  ;;  %vm4493_vm14 = vmmov %vm4476_vm6 }
 0x256   :  { %v744_v54 = vpop.permute.xlu0 %743  ;;  %vm4496_vm5 = vmmov %vm4485_vm0 }
 0x257   :  { %854 = vmatprep.subr.mxu0 %v782_v25  ;;  %v792_v28 = vpop.permute.xlu1 %791 }
 0x258   :  { %v793_v48 = vsel %vm4476_vm6, %v3291_v17, %v792_v28  ;;  %v796_v40 = vsel %vm4477_vm11, %v792_v28, %v3303_v41  ;;  %855 = vmatpush1.msra.mxu0 %v781_v14  ;;  %v764_v14 = vsel %vm4483_vm8, %v760_v10, %v3329_v30  ;;  %v745_v28 = vsel %vm172_vm2, %v3307_v18, %v744_v54  ;;  %vm4494_vm11 = vmmov %vm4480_vm4 }
 0x259   :  { %v799_v57 = vmul.f32 %v2743_v13, %v793_v48  ;;  %856 = vmatprep.subr.mxu0 %v4478_v49  ;;  %v800_v29 = vmul.f32 %v2740_v12, %v796_v40  ;;  %v748_v48 = vsel %vm172_vm2, %v744_v54, %v3266_v46  ;;  %vm4504_vm8 = vmmov %vm4474_vm10 }
 0x25a   :  { %v724_v7 = vpop.permute.xlu0 %723  ;;  %857 = vmatpush1.msra.mxu0 %v4479_v5  ;;  %v4487_v5 = vld [vmem:[#allocation14_spill] sm:$0xff] }
 0x25b   :  { %923 = vmatprep.subr.mxu1 %v800_v29  ;;  %v776_v44 = vpop.permute.xlu1 %775  ;;  %v765_v29 = vmul.f32 %v2794_v55, %v764_v14 }
 0x25c   :  { %v777_v17 = vsel %vm4480_vm4, %v3315_v27, %v776_v44  ;;  %v780_v2 = vsel %vm4481_vm15, %v776_v44, %v770_v20  ;;  %924 = vmatpush1.msra.mxu1 %v799_v57  ;;  %v746_v27 = vsel %vm172_vm2, %v740_v0, %v3307_v18  ;;  %v747_v20 = vsel %vm172_vm2, %v3266_v46, %v740_v0  ;;  %v4486_v57 = vld [vmem:[#allocation16_spill] sm:$0xff]  ;;  %vm4495_vm15 = vmmov %vm4485_vm0 }
 0x25d   :  { %v783_v41 = vmul.f32 %v2767_v37, %v777_v17  ;;  %v784_v43 = vmul.f32 %v2762_v33, %v780_v2  ;;  %v768_v18 = vmul.f32 %v2812_v4, %v761_v42  ;;  %v751_v46 = vmul.f32 %v2858_v39, %v746_v27 }
 0x25e   :  { %v728_v62 = vpop.permute.xlu0 %727  ;;  %v749_v44 = vmul.f32 %v2835_v24, %v748_v48 }
 0x25f   :  { %925 = vmatprep.subr.mxu1 %v784_v43  ;;  %v756_v25 = vpop.permute.xlu1 %755  ;;  %v732_v17 = vsel %vm155_vm3, %v728_v62, %v3295_v3 }
 0x260   :  { %v762_v10 = vsel %vm4484_vm7, %v756_v25, %v3277_v21  ;;  %v763_v40 = vsel %vm4485_vm0, %v3329_v30, %v756_v25  ;;  %926 = vmatpush1.msra.mxu1 %v783_v41  ;;  %v731_v21 = vsel %vm155_vm3, %v3295_v3, %v724_v7  ;;  %v750_v30 = vmul.f32 %v2807_v6, %v747_v20  ;;  %vm4505_vm7 = vmmov %vm4504_vm8 }
 0x261   :  { %v767_v0 = vmul.f32 %v2817_v58, %v762_v10  ;;  %927 = vmatprep.subr.mxu1 %v4486_v57  ;;  %v766_v49 = vmul.f32 %v2782_v47, %v763_v40  ;;  %v752_v41 = vmul.f32 %v2855_v38, %v745_v28  ;;  %v734_v3 = vmul.f32 %v2852_v31, %v731_v21  ;;  %v833_v57 = vld [vmem:[%s4384_s1 + $0x18] sm:$0xff]  ;;  %vm4506_vm0 = vmmov %vm4476_vm6 }
 0x262   :  { %v708_v54 = vpop.permute.xlu0 %707  ;;  %928 = vmatpush1.msra.mxu1 %v4487_v5  ;;  %v733_v25 = vmul.f32 %v2872_v53, %v732_v17 }
 0x263   :  { %858 = vmatprep.subr.mxu0 %v766_v49  ;;  %929 = vmatprep.subr.mxu1 %v768_v18  ;;  %v726_v2 = vpop.permute.xlu1 %725  ;;  %v715_v43 = vsel %vm138_vm12, %v3319_v56, %v708_v54 }
 0x264   :  { %v729_v42 = vsel %vm155_vm3, %v726_v2, %v728_v62  ;;  %v730_v14 = vsel %vm155_vm3, %v724_v7, %v726_v2  ;;  %859 = vmatpush1.msra.mxu0 %v765_v29  ;;  %930 = vmatpush1.msra.mxu1 %v767_v0  ;;  %v718_v48 = vmul.f32 %v2887_v1, %v715_v43 }
 0x265   :  { %v735_v27 = vmul.f32 %v2897_v16, %v730_v14  ;;  %860 = vmatprep.subr.mxu0 %v750_v30  ;;  %931 = vmatprep.subr.mxu1 %v752_v41  ;;  %v736_v20 = vmul.f32 %v2892_v15, %v729_v42 }
 0x266   :  { %v712_v28 = vpop.permute.xlu0 %711  ;;  %861 = vmatpush1.msra.mxu0 %v749_v44  ;;  %932 = vmatpush1.msra.mxu1 %v751_v46 }
 0x267   :  { %v716_v62 = vsel %vm138_vm12, %v712_v28, %v3319_v56  ;;  %862 = vmatprep.subr.mxu0 %v734_v3  ;;  %933 = vmatprep.subr.mxu1 %v736_v20  ;;  %v710_v7 = vpop.permute.xlu1 %709  ;;  %v3611_v20 = vld [vmem:[%s4383_s0 + $0x20] sm:$0xff]  ;;  %s2450_s0 = smov 7  }
 0x268   :  { %v717_v10 = vmul.f32 %v4465_v59, %v716_v62  ;;  %v713_v40 = vsel %vm138_vm12, %v710_v7, %v712_v28  ;;  %v714_v0 = vsel %vm138_vm12, %v708_v54, %v710_v7  ;;  %863 = vmatpush1.msra.mxu0 %v733_v25  ;;  %934 = vmatpush1.msra.mxu1 %v735_v27 }
 0x269   :  { %v719_v56 = vmul.f32 %v2923_v9, %v714_v0  ;;  %864 = vmatprep.subr.mxu0 %v718_v48  ;;  %v720_v49 = vmul.f32 %v2920_v22, %v713_v40 }
 0x26a   :  { %865 = vmatpush1.msra.mxu0 %v717_v10 }
 0x26b   :  { %899 = vmatmul.mubr.f32.vlgmr.msra.gmra.mxu0 %v833_v57  ;;  %935 = vmatprep.subr.mxu1 %v720_v49 }
 0x26c   :  { %936 = vmatpush1.msra.mxu1 %v719_v56  ;;  %2126 = vmatprep.subr.msk.mxu0 %vm2485_vm1, %v4466_v23 }
 0x26d   :  { %970 = vmatmul.mubr.f32.vlgmr.msra.gmra.mxu1 %v833_v57  ;;  %2128 = vmatpush1.msk.msra.mxu0 %vm2485_vm1, %v4466_v23 }
 0x26e   :  { %1111 = vmatprep.subr.mxu0 %v4468_v63  ;;  %1173 = vmatprep.mubr.f32.mxu0 %v4468_v63 }
 0x26f   :  { %1112 = vmatpush1.msra.mxu0 %v4468_v63  ;;  %2130 = vmatprep.subr.msk.mxu1 %vm2485_vm1, %v4466_v23 }
 0x270   :  { %1113 = vmatprep.subr.mxu0 %v4468_v63  ;;  %2132 = vmatpush1.msk.msra.mxu1 %vm2485_vm1, %v4466_v23 }
 0x271   :  { %1114 = vmatpush1.msra.mxu0 %v4468_v63  ;;  %1182 = vmatprep.subr.mxu1 %v4468_v63 }
 0x272   :  { %1115 = vmatprep.subr.mxu0 %v4468_v63  ;;  %1183 = vmatpush1.msra.mxu1 %v4468_v63 }
 0x273   :  { %1116 = vmatpush1.msra.mxu0 %v4468_v63  ;;  %1184 = vmatprep.subr.mxu1 %v4468_v63 }
 0x274   :  { %1117 = vmatprep.subr.mxu0 %v4468_v63  ;;  %1185 = vmatpush1.msra.mxu1 %v4468_v63 }
 0x275   :  { %1118 = vmatpush1.msra.mxu0 %v4468_v63  ;;  %1186 = vmatprep.subr.mxu1 %v4468_v63 }
 0x276   :  { %1119 = vmatprep.subr.mxu0 %v4468_v63  ;;  %1187 = vmatpush1.msra.mxu1 %v4468_v63 }
 0x277   :  { %1120 = vmatpush1.msra.mxu0 %v4468_v63  ;;  %1188 = vmatprep.subr.mxu1 %v4468_v63 }
 0x278   :  { %1121 = vmatprep.subr.mxu0 %v4468_v63  ;;  %1189 = vmatpush1.msra.mxu1 %v4468_v63 }
 0x279   :  { %1122 = vmatpush1.msra.mxu0 %v4468_v63  ;;  %1190 = vmatprep.subr.mxu1 %v4468_v63 }
 0x27a   :  { %1191 = vmatpush1.msra.mxu1 %v4468_v63  ;;  %1244 = vmatprep.mubr.f32.mxu1 %v4468_v63 }
 0x27b   :  { %1192 = vmatprep.subr.mxu1 %v4468_v63 }
 0x27c   :  { %1193 = vmatpush1.msra.mxu1 %v4468_v63 }
 0x2f3   :  { %v625_v18 = vpop.f32.mrf.mxu0  ;;  %v696_v29 = vpop.f32.mrf.mxu1 }
 0x2f4   :  { %v3498_v46 = vmax.f32 %v625_v18, 0.0  ;;  %v3500_v21 = vmax.f32 %v696_v29, 0.0 }
 0x2f5   :  { %v627_v54 = vpop.f32.mrf.mxu0  ;;  %v698_v30 = vpop.f32.mrf.mxu1 }
 0x2f6   :  { %4488 = vst [vmem:[#allocation10_spill] sm:$0xff] %v3500_v21  ;;  %1092 = vrot.lane.b32.xlu0 %v3498_v46, %s2438_s13  ;;  %1096 = vrot.lane.b32.xlu1 %v3500_v21, %s2438_s13  ;;  %v3526_v5 = vmax.f32 %v627_v54, 0.0  ;;  %v3536_v44 = vmax.f32 %v698_v30, 0.0 }
 0x2f8   :  { %4489 = vst [vmem:[#allocation2_spill] sm:$0xff] %v3536_v44 }
 0x2fa   :  { %1080 = vrot.lane.b32.xlu0 %v3500_v21, %s2440_s16  ;;  %1076 = vrot.lane.b32.xlu1 %v3498_v46, %s2440_s16 }
 0x2fe   :  { %1060 = vrot.lane.b32.xlu0 %v3498_v46, %s2441_s19  ;;  %1064 = vrot.lane.b32.xlu1 %v3500_v21, %s2441_s19 }
 0x302   :  { %1048 = vrot.lane.b32.xlu0 %v3500_v21, %s2442_s20  ;;  %1044 = vrot.lane.b32.xlu1 %v3498_v46, %s2442_s20 }
 0x306   :  { %1028 = vrot.lane.b32.xlu0 %v3498_v46, %s2443_s21  ;;  %1012 = vrot.lane.b32.xlu1 %v3498_v46, %s2444_s22 }
 0x30a   :  { %996 = vrot.lane.b32.xlu0 %v3498_v46, %s2445_s23  ;;  %980 = vrot.lane.b32.xlu1 %v3498_v46, %s2446_s24 }
 0x30e   :  { %1094 = vrot.lane.b32.xlu0 %v3526_v5, %s2438_s13  ;;  %1078 = vrot.lane.b32.xlu1 %v3526_v5, %s2440_s16 }
 0x312   :  { %1062 = vrot.lane.b32.xlu0 %v3526_v5, %s2441_s19  ;;  %1046 = vrot.lane.b32.xlu1 %v3526_v5, %s2442_s20 }
 0x316   :  { %1034 = vrot.lane.b32.xlu0 %v3536_v44, %s2443_s21  ;;  %1030 = vrot.lane.b32.xlu1 %v3526_v5, %s2443_s21 }
 0x31a   :  { %1014 = vrot.lane.b32.xlu0 %v3526_v5, %s2444_s22  ;;  %1018 = vrot.lane.b32.xlu1 %v3536_v44, %s2444_s22 }
 0x31e   :  { %1002 = vrot.lane.b32.xlu0 %v3536_v44, %s2445_s23  ;;  %998 = vrot.lane.b32.xlu1 %v3526_v5, %s2445_s23 }
 0x322   :  { %982 = vrot.lane.b32.xlu0 %v3526_v5, %s2446_s24  ;;  %986 = vrot.lane.b32.xlu1 %v3536_v44, %s2446_s24 }
 0x32b   :  { %v900_v17 = vpop.f32.mrf.mxu0 }
 0x32c   :  { %v3554_v2 = vmax.f32 %v900_v17, 0.0 }
 0x32d   :  { %v971_v41 = vpop.f32.mrf.mxu1  ;;  %v902_v42 = vpop.f32.mrf.mxu0 }
 0x32e   :  { %v3556_v43 = vmax.f32 %v971_v41, 0.0  ;;  %1363 = vrot.lane.b32.xlu0 %v3554_v2, %s2438_s13  ;;  %v3580_v14 = vmax.f32 %v902_v42, 0.0 }
 0x32f   :  { %v973_v27 = vpop.f32.mrf.mxu1 }
 0x330   :  { %4490 = vst [vmem:[#allocation3_spill] sm:$0xff] %v3556_v43  ;;  %1367 = vrot.lane.b32.xlu1 %v3556_v43, %s2438_s13  ;;  %v3590_v3 = vmax.f32 %v973_v27, 0.0 }
 0x332   :  { %1351 = vrot.lane.b32.xlu0 %v3556_v43, %s2440_s16  ;;  %4491 = vst [vmem:[#allocation15_spill] sm:$0xff] %v3590_v3 }
 0x334   :  { %1347 = vrot.lane.b32.xlu1 %v3554_v2, %s2440_s16 }
 0x336   :  { %1331 = vrot.lane.b32.xlu0 %v3554_v2, %s2441_s19 }
 0x338   :  { %1335 = vrot.lane.b32.xlu1 %v3556_v43, %s2441_s19 }
 0x33a   :  { %1319 = vrot.lane.b32.xlu0 %v3556_v43, %s2442_s20 }
 0x33c   :  { %1315 = vrot.lane.b32.xlu1 %v3554_v2, %s2442_s20 }
 0x33e   :  { %1299 = vrot.lane.b32.xlu0 %v3554_v2, %s2443_s21 }
 0x340   :  { %1283 = vrot.lane.b32.xlu1 %v3554_v2, %s2444_s22 }
 0x342   :  { %1267 = vrot.lane.b32.xlu0 %v3554_v2, %s2445_s23 }
 0x344   :  { %1251 = vrot.lane.b32.xlu1 %v3554_v2, %s2446_s24 }
 0x346   :  { %1365 = vrot.lane.b32.xlu0 %v3580_v14, %s2438_s13 }
 0x348   :  { %1349 = vrot.lane.b32.xlu1 %v3580_v14, %s2440_s16 }
 0x34a   :  { %1333 = vrot.lane.b32.xlu0 %v3580_v14, %s2441_s19 }
 0x34c   :  { %1317 = vrot.lane.b32.xlu1 %v3580_v14, %s2442_s20 }
 0x34e   :  { %1305 = vrot.lane.b32.xlu0 %v3590_v3, %s2443_s21 }
 0x350   :  { %1301 = vrot.lane.b32.xlu1 %v3580_v14, %s2443_s21 }
 0x352   :  { %1285 = vrot.lane.b32.xlu0 %v3580_v14, %s2444_s22 }
 0x354   :  { %1289 = vrot.lane.b32.xlu1 %v3590_v3, %s2444_s22 }
 0x356   :  { %1273 = vrot.lane.b32.xlu0 %v3590_v3, %s2445_s23 }
 0x358   :  { %1269 = vrot.lane.b32.xlu1 %v3580_v14, %s2445_s23 }
 0x35a   :  { %1253 = vrot.lane.b32.xlu0 %v3580_v14, %s2446_s24 }
 0x35c   :  { %1257 = vrot.lane.b32.xlu1 %v3590_v3, %s2446_s24 }
 0x35e   :  { %1596 = vrot.lane.b32.xlu0 %v3611_v20, %s2447_s7 }
 0x360   :  { %1593 = vrot.lane.b32.xlu1 %v3611_v20, %s2448_s8 }
 0x362   :  { %1590 = vrot.lane.b32.xlu0 %v3611_v20, %s2449_s9 }
 0x364   :  { %1587 = vrot.lane.b32.xlu1 %v3611_v20, %s2442_s20 }
 0x366   :  { %1584 = vrot.lane.b32.xlu0 %v3611_v20, %s2443_s21 }
 0x368   :  { %v3625_v25 = vpop.permute.xlu0 %1092  ;;  %1581 = vrot.lane.b32.xlu1 %v3611_v20, %s2450_s0  ;;  %v3629_v28 = vpop.permute.xlu1 %1096 }
 0x36a   :  { %1578 = vrot.lane.b32.xlu0 %v3611_v20, %s2451_s10 }
 0x36c   :  { %v3633_v62 = vpop.permute.xlu0 %1080  ;;  %1575 = vrot.lane.b32.xlu1 %v3611_v20, %s2452_s11  ;;  %v3637_v7 = vpop.permute.xlu1 %1076 }
 0x36e   :  { %1098 = vrot.lane.b32.xlu0 %v3536_v44, %s2438_s13 }
 0x370   :  { %v3641_v48 = vpop.permute.xlu0 %1060  ;;  %1082 = vrot.lane.b32.xlu1 %v3536_v44, %s2440_s16  ;;  %v3645_v10 = vpop.permute.xlu1 %1064 }
 0x372   :  { %1066 = vrot.lane.b32.xlu0 %v3536_v44, %s2441_s19 }
 0x374   :  { %v3649_v40 = vpop.permute.xlu0 %1048  ;;  %1050 = vrot.lane.b32.xlu1 %v3536_v44, %s2442_s20  ;;  %v3653_v0 = vpop.permute.xlu1 %1044 }
 0x376   :  { %1032 = vrot.lane.b32.xlu0 %v3500_v21, %s2443_s21 }
 0x378   :  { %v1029_v57 = vpop.permute.xlu0 %1028  ;;  %1016 = vrot.lane.b32.xlu1 %v3500_v21, %s2444_s22  ;;  %v1013_v56 = vpop.permute.xlu1 %1012 }
 0x37a   :  { %1000 = vrot.lane.b32.xlu0 %v3500_v21, %s2445_s23 }
 0x37c   :  { %v997_v49 = vpop.permute.xlu0 %996  ;;  %984 = vrot.lane.b32.xlu1 %v3500_v21, %s2446_s24  ;;  %v3663_v18 = vpop.permute.xlu1 %980 }
 0x37e   :  { %1369 = vrot.lane.b32.xlu0 %v3590_v3, %s2438_s13 }
 0x380   :  { %v1095_v29 = vpop.permute.xlu0 %1094  ;;  %1353 = vrot.lane.b32.xlu1 %v3590_v3, %s2440_s16  ;;  %v1079_v54 = vpop.permute.xlu1 %1078 }
 0x381   :  { %v1101_v30 = vsel %vm257_vm9, %v1095_v29, %v3629_v28  ;;  %v1102_v17 = vsel %vm257_vm9, %v3625_v25, %v1095_v29  ;;  %v1085_v27 = vsel %vm4474_vm10, %v1079_v54, %v3633_v62  ;;  %v1086_v9 = vsel %vm4492_vm13, %v3637_v7, %v1079_v54  ;;  %vm4507_vm10 = vmmov %vm4506_vm0 }
 0x382   :  { %v1104_v41 = vmul.f32 %v4470_v19, %v1102_v17  ;;  %v1105_v42 = vmul.f32 %v2636_v26, %v1101_v30  ;;  %1337 = vrot.lane.b32.xlu0 %v3590_v3, %s2441_s19  ;;  %v1089_v17 = vmul.f32 %v2659_v34, %v1085_v27  ;;  %v1088_v15 = vmul.f32 %v2680_v45, %v1086_v9  ;;  %vm4508_vm13 = vmmov %vm4480_vm4 }
 0x384   :  { %v1063_v22 = vpop.permute.xlu0 %1062  ;;  %1321 = vrot.lane.b32.xlu1 %v3590_v3, %s2442_s20  ;;  %1123 = vmatprep.subr.mxu0 %v1105_v42  ;;  %v1047_v29 = vpop.permute.xlu1 %1046 }
 0x385   :  { %v1069_v30 = vsel %vm4493_vm14, %v1063_v22, %v3645_v10  ;;  %v1070_v16 = vsel %vm4476_vm6, %v3641_v48, %v1063_v22  ;;  %1124 = vmatpush1.msra.mxu0 %v1104_v41  ;;  %v1053_v42 = vsel %vm4494_vm11, %v1047_v29, %v3649_v40  ;;  %v1054_v27 = vsel %vm4480_vm4, %v3653_v0, %v1047_v29  ;;  %vm4509_vm14 = vmmov %vm4480_vm4 }
 0x386   :  { %v1072_v54 = vmul.f32 %v2720_v61, %v1070_v16  ;;  %v1073_v39 = vmul.f32 %v2692_v50, %v1069_v30  ;;  %1303 = vrot.lane.b32.xlu0 %v3556_v43, %s2443_s21  ;;  %1125 = vmatprep.subr.mxu0 %v1089_v17  ;;  %v1057_v9 = vmul.f32 %v2737_v11, %v1053_v42  ;;  %vm4510_vm6 = vmmov %vm4496_vm5 }
 0x387   :  { %1126 = vmatpush1.msra.mxu0 %v1088_v15  ;;  %v1056_v41 = vmul.f32 %v2757_v32, %v1054_v27  ;;  %vm4511_vm11 = vmmov %vm4496_vm5 }
 0x388   :  { %v3705_v22 = vpop.permute.xlu0 %1034  ;;  %1287 = vrot.lane.b32.xlu1 %v3556_v43, %s2444_s22  ;;  %v3709_v16 = vpop.permute.xlu1 %1030  ;;  %1127 = vmatprep.subr.mxu0 %v1073_v39 }
 0x389   :  { %v1038_v30 = vsel %vm4495_vm15, %v1029_v57, %v3709_v16  ;;  %1128 = vmatpush1.msra.mxu0 %v1072_v54  ;;  %v1039_v15 = vsel %vm4496_vm5, %v3705_v22, %v1029_v57 }
 0x38a   :  { %1271 = vrot.lane.b32.xlu0 %v3556_v43, %s2445_s23  ;;  %1129 = vmatprep.subr.mxu0 %v1057_v9  ;;  %v1041_v17 = vmul.f32 %v2782_v47, %v1038_v30  ;;  %v1040_v42 = vmul.f32 %v2794_v55, %v1039_v15 }
 0x38b   :  { %1130 = vmatpush1.msra.mxu0 %v1056_v41 }
 0x38c   :  { %v3721_v29 = vpop.permute.xlu0 %1014  ;;  %1255 = vrot.lane.b32.xlu1 %v3556_v43, %s2446_s24  ;;  %v3725_v39 = vpop.permute.xlu1 %1018  ;;  %1131 = vmatprep.subr.mxu0 %v3526_v5 }
 0x38d   :  { %4497 = vst [vmem:[#allocation13_spill] sm:$0xff] %v3721_v29  ;;  %v1022_v54 = vsel %vm172_vm2, %v1013_v56, %v3721_v29  ;;  %v1023_v57 = vsel %vm172_vm2, %v3725_v39, %v1013_v56  ;;  %1132 = vmatpush1.msra.mxu0 %v3498_v46 }
 0x38e   :  { %v1025_v27 = vmul.f32 %v2807_v6, %v1022_v54  ;;  %v1024_v9 = vmul.f32 %v2835_v24, %v1023_v57  ;;  %1133 = vmatprep.subr.mxu0 %v1041_v17 }
 0x38f   :  { %1134 = vmatpush1.msra.mxu0 %v1040_v42 }
 0x390   :  { %v3739_v41 = vpop.permute.xlu0 %1002  ;;  %v3741_v30 = vpop.permute.xlu1 %998  ;;  %1135 = vmatprep.subr.mxu0 %v1025_v27 }
 0x391   :  { %4498 = vst [vmem:[#allocation16_spill] sm:$0xff] %v3739_v41  ;;  %4499 = vst [vmem:[#allocation14_spill] sm:$0xff] %v3741_v30  ;;  %v1007_v5 = vsel %vm155_vm3, %v3739_v41, %v997_v49  ;;  %v1006_v56 = vsel %vm155_vm3, %v997_v49, %v3741_v30  ;;  %1136 = vmatpush1.msra.mxu0 %v1024_v9  ;;  %v3768_v9 = vld [vmem:[%s4384_s1 + $0x20] sm:$0xff] }
 0x392   :  { %v1008_v15 = vmul.f32 %v2872_v53, %v1007_v5  ;;  %v1009_v54 = vmul.f32 %v2852_v31, %v1006_v56  ;;  %4502 = vst [vmem:[#allocation19_spill] sm:$0xff] %v3768_v9 }
 0x394   :  { %v3751_v46 = vpop.permute.xlu0 %982  ;;  %1137 = vmatprep.subr.mxu0 %v1009_v54  ;;  %v3753_v17 = vpop.permute.xlu1 %986 }
 0x395   :  { %4500 = vst [vmem:[#allocation17_spill] sm:$0xff] %v3751_v46  ;;  %4501 = vst [vmem:[#allocation18_spill] sm:$0xff] %v3753_v17  ;;  %v990_v57 = vsel %vm138_vm12, %v3663_v18, %v3751_v46  ;;  %v991_v49 = vsel %vm138_vm12, %v3753_v17, %v3663_v18  ;;  %1138 = vmatpush1.msra.mxu0 %v1008_v15 }
 0x396   :  { %v993_v42 = vmul.f32 %v2887_v1, %v990_v57  ;;  %v992_v27 = vmul.f32 %v4465_v59, %v991_v49 }
 0x398   :  { %1139 = vmatprep.subr.mxu0 %v993_v42 }
 0x399   :  { %1140 = vmatpush1.msra.mxu0 %v992_v27 }
 0x39a   :  { %2134 = vmatprep.subr.msk.mxu0 %vm2485_vm1, %v4466_v23  ;;  %1174 = vmatmul.mubr.f32.vlgmr.msra.gmra.mxu0 %v3768_v9 }
 0x39b   :  { %2136 = vmatpush1.msk.msra.mxu0 %vm2485_vm1, %v4466_v23  ;;  %1444 = vmatprep.mubr.f32.mxu0 %v4468_v63 }
 0x39c   :  { %1382 = vmatprep.subr.mxu0 %v4468_v63 }
 0x39d   :  { %1383 = vmatpush1.msra.mxu0 %v4468_v63 }
 0x39e   :  { %1384 = vmatprep.subr.mxu0 %v4468_v63 }
 0x39f   :  { %1385 = vmatpush1.msra.mxu0 %v4468_v63 }
 0x3a0   :  { %v3782_v18 = vpop.permute.xlu0 %1363  ;;  %1386 = vmatprep.subr.mxu0 %v4468_v63 }
 0x3a1   :  { %1387 = vmatpush1.msra.mxu0 %v4468_v63 }
 0x3a2   :  { %v3786_v5 = vpop.permute.xlu1 %1367  ;;  %1388 = vmatprep.subr.mxu0 %v4468_v63 }
 0x3a3   :  { %4503 = vst [vmem:[#allocation20_spill] sm:$0xff] %v3786_v5  ;;  %1389 = vmatpush1.msra.mxu0 %v4468_v63 }
 0x3a4   :  { %v3790_v56 = vpop.permute.xlu0 %1351  ;;  %1390 = vmatprep.subr.mxu0 %v4468_v63 }
 0x3a5   :  { %1391 = vmatpush1.msra.mxu0 %v4468_v63 }
 0x3a6   :  { %v3794_v15 = vpop.permute.xlu1 %1347  ;;  %1392 = vmatprep.subr.mxu0 %v4468_v63 }
 0x3a7   :  { %1393 = vmatpush1.msra.mxu0 %v4468_v63 }
 0x3a8   :  { %v3798_v54 = vpop.permute.xlu0 %1331 }
 0x3aa   :  { %v3800_v57 = vpop.permute.xlu1 %1335 }
 0x3ac   :  { %v3802_v49 = vpop.permute.xlu0 %1319 }
 0x3ae   :  { %v3804_v42 = vpop.permute.xlu1 %1315 }
 0x3b0   :  { %v1300_v27 = vpop.permute.xlu0 %1299 }
 0x3b2   :  { %v1284_v43 = vpop.permute.xlu1 %1283 }
 0x3b4   :  { %v1268_v3 = vpop.permute.xlu0 %1267 }
 0x3b6   :  { %v1252_v9 = vpop.permute.xlu1 %1251 }
 0x3b8   :  { %v1366_v46 = vpop.permute.xlu0 %1365 }
 0x3b9   :  { %v1372_v17 = vsel %vm257_vm9, %v1366_v46, %v3786_v5  ;;  %v1373_v30 = vsel %vm257_vm9, %v3782_v18, %v1366_v46 }
 0x3ba   :  { %v1375_v38 = vmul.f32 %v4470_v19, %v1373_v30  ;;  %v1376_v21 = vmul.f32 %v2636_v26, %v1372_v17  ;;  %v1350_v41 = vpop.permute.xlu1 %1349 }
 0x3bb   :  { %v1356_v58 = vsel %vm4504_vm8, %v1350_v41, %v3790_v56  ;;  %v1357_v44 = vsel %vm4505_vm7, %v3794_v15, %v1350_v41 }
 0x3bc   :  { %v1359_v29 = vmul.f32 %v2680_v45, %v1357_v44  ;;  %v1360_v5 = vmul.f32 %v2659_v34, %v1356_v58  ;;  %v1334_v4 = vpop.permute.xlu0 %1333  ;;  %1394 = vmatprep.subr.mxu0 %v1376_v21 }
 0x3bd   :  { %v1340_v19 = vsel %vm4506_vm0, %v1334_v4, %v3800_v57  ;;  %v1341_v26 = vsel %vm4507_vm10, %v3798_v54, %v1334_v4  ;;  %1395 = vmatpush1.msra.mxu0 %v1375_v38 }
 0x3be   :  { %v1343_v30 = vmul.f32 %v2720_v61, %v1341_v26  ;;  %v1344_v46 = vmul.f32 %v2692_v50, %v1340_v19  ;;  %1396 = vmatprep.subr.mxu0 %v1360_v5  ;;  %v1318_v41 = vpop.permute.xlu1 %1317 }
 0x3bf   :  { %v1324_v34 = vsel %vm4508_vm13, %v1318_v41, %v3802_v49  ;;  %v1325_v45 = vsel %vm4509_vm14, %v3804_v42, %v1318_v41  ;;  %1397 = vmatpush1.msra.mxu0 %v1359_v29  ;;  %vm4512_vm13 = vcmp.lt.s32.totalorder %v2596_v8, 112 }
 0x3c0   :  { %v1327_v58 = vmul.f32 %v2757_v32, %v1325_v45  ;;  %v1328_v4 = vmul.f32 %v2737_v11, %v1324_v34  ;;  %v3838_v38 = vpop.permute.xlu0 %1305  ;;  %1398 = vmatprep.subr.mxu0 %v1344_v46  ;;  %vm4513_vm14 = vmmov %vm4512_vm13 }
 0x3c1   :  { %1399 = vmatpush1.msra.mxu0 %v1343_v30  ;;  %v1310_v50 = vsel %vm4510_vm6, %v3838_v38, %v1300_v27  ;;  %vm4514_vm6 = vcmp.lt.s32.totalorder %v2596_v8, 113 }
 0x3c2   :  { %1400 = vmatprep.subr.mxu0 %v1328_v4  ;;  %v3843_v61 = vpop.permute.xlu1 %1301  ;;  %v1311_v11 = vmul.f32 %v2794_v55, %v1310_v50 }
 0x3c3   :  { %v1309_v21 = vsel %vm4511_vm11, %v1300_v27, %v3843_v61  ;;  %1401 = vmatpush1.msra.mxu0 %v1327_v58  ;;  %v1599_v58 = vld [vmem:[%s4384_s1 + $0x30] sm:$0xff]  ;;  %vm4515_vm11 = vmmov %vm4514_vm6 }
 0x3c4   :  { %v1312_v32 = vmul.f32 %v2782_v47, %v1309_v21  ;;  %v3849_v44 = vpop.permute.xlu0 %1285  ;;  %1402 = vmatprep.subr.mxu0 %v3580_v14 }
 0x3c5   :  { %v1293_v29 = vsel %vm172_vm2, %v1284_v43, %v3849_v44  ;;  %1403 = vmatpush1.msra.mxu0 %v3554_v2 }
 0x3c6   :  { %v1296_v17 = vmul.f32 %v2807_v6, %v1293_v29  ;;  %1404 = vmatprep.subr.mxu0 %v1312_v32  ;;  %v3858_v5 = vpop.permute.xlu1 %1289 }
 0x3c7   :  { %v1294_v47 = vsel %vm172_vm2, %v3858_v5, %v1284_v43  ;;  %1405 = vmatpush1.msra.mxu0 %v1311_v11 }
 0x3c8   :  { %v1295_v14 = vmul.f32 %v2835_v24, %v1294_v47  ;;  %v3864_v27 = vpop.permute.xlu0 %1273  ;;  %1406 = vmatprep.subr.mxu0 %v1296_v17  ;;  %v1548_v24 = vand.u32 63, %v2596_v8 }
 0x3c9   :  { %v1278_v55 = vsel %vm155_vm3, %v3864_v27, %v1268_v3 }
 0x3ca   :  { %1407 = vmatpush1.msra.mxu0 %v1295_v14  ;;  %v3869_v2 = vpop.permute.xlu1 %1269  ;;  %v1279_v26 = vmul.f32 %v2872_v53, %v1278_v55  ;;  %v3889_v34 = vshra.s32 %v1548_v24, 3  ;;  %v3891_v45 = vand.u32 7, %v1548_v24 }
 0x3cb   :  { %v1277_v6 = vsel %vm155_vm3, %v1268_v3, %v3869_v2 }
 0x3cc   :  { %v1280_v19 = vmul.f32 %v2852_v31, %v1277_v6  ;;  %v3875_v43 = vpop.permute.xlu0 %1253  ;;  %vm1552_vm4 = vcmp.lt.s32.totalorder %v3889_v34, 7  ;;  %vm1554_vm15 = vcmp.lt.s32.totalorder %v3891_v45, 7  ;;  %vm1553_vm8 = vcmp.ge.s32.totalorder %v3891_v45, 1 }
 0x3cd   :  { %v1261_v30 = vsel %vm138_vm12, %v1252_v9, %v3875_v43  ;;  %vm1572_vm5 = vmand %vm1552_vm4, %vm1554_vm15  ;;  %v3932_v11 = vsel %vm1552_vm4, 1.0, %v4468_v63  ;;  %v3950_v6 = vsel %vm1554_vm15, 1.0, %v4468_v63  ;;  %vm1551_vm0 = vcmp.ge.s32.totalorder %v3889_v34, 1 }
 0x3ce   :  { %v1264_v46 = vmul.f32 %v2887_v1, %v1261_v30  ;;  %1408 = vmatprep.subr.mxu0 %v1280_v19  ;;  %v3883_v41 = vpop.permute.xlu1 %1257  ;;  %v3896_v1 = vld [vmem:[%s4384_s1 + $0x28] sm:$0xff]  ;;  %v3921_v21 = vsel %vm1572_vm5, 1.0, %v4468_v63  ;;  %vm1567_vm7 = vmand %vm1552_vm4, %vm1553_vm8 }
 0x3cf   :  { %v1262_v3 = vsel %vm138_vm12, %v3883_v41, %v1252_v9  ;;  %1409 = vmatpush1.msra.mxu0 %v1279_v26  ;;  %v3940_v47 = vsel %vm1567_vm7, 1.0, %v4468_v63  ;;  %vm1560_vm10 = vmand %vm1551_vm0, %vm1554_vm15  ;;  %vm4516_vm15 = vcmp.lt.s32.totalorder %v2596_v8, 127 }
 0x3d0   :  { %v1263_v31 = vmul.f32 %v4465_v59, %v1262_v3  ;;  %v1597_v53 = vpop.permute.xlu0 %1596  ;;  %1410 = vmatprep.subr.mxu0 %v1264_v46  ;;  %vm1555_vm4 = vmand %vm1551_vm0, %vm1553_vm8 }
 0x3d1   :  { %v1598_v17 = vmul.f32 %v3921_v21, %v1597_v53  ;;  %vm4517_vm5 = vmmov %vm4516_vm15  ;;  %v4016_v34 = vsel %vm1555_vm4, 1.0, %v4468_v63 }
 0x3d2   :  { %1411 = vmatpush1.msra.mxu0 %v1263_v31  ;;  %v1594_v9 = vpop.permute.xlu1 %1593 }
 0x3d3   :  { %1445 = vmatmul.mubr.f32.vlgmr.msra.gmra.mxu0 %v3896_v1  ;;  %2245 = vmatprep.subr.msk.mxu0 %vm2485_vm1, %v4466_v23  ;;  %v1595_v55 = vmul.f32 %v3932_v11, %v1594_v9 }
 0x3d4   :  { %v1591_v59 = vpop.permute.xlu0 %1590  ;;  %2246 = vmatpush3.msk.msra.mxu0 %vm2485_vm1, %v4466_v23  ;;  %2277 = vmatprep.mubr.f32.mxu0 %v1599_v58  ;;  %v3977_v58 = vsel %vm1553_vm8, 1.0, %v4468_v63  ;;  %vm4518_vm8 = vcmp.lt.s32.totalorder %v2596_v8, 1 }
 0x3d5   :  { %2247 = vmatprep.subr.mxu0 %v4468_v63  ;;  %v1592_v24 = vmul.f32 %v3940_v47, %v1591_v59  ;;  %vm4519_vm7 = vmmov %vm4518_vm8 }
 0x3d6   :  { %2248 = vmatpush3.msra.mxu0 %v4468_v63  ;;  %v1588_v4 = vpop.permute.xlu1 %1587  ;;  %vm4544_vm4 = vmmov %vm4519_vm7 }
 0x3d7   :  { %2249 = vmatprep.subr.mxu0 %v4468_v63  ;;  %v1589_v53 = vmul.f32 %v3950_v6, %v1588_v4 }
 0x3d8   :  { %v1585_v50 = vpop.permute.xlu0 %1584  ;;  %2250 = vmatpush3.msra.mxu0 %v4468_v63 }
 0x3d9   :  { %2251 = vmatprep.subr.mxu0 %v4468_v63 }
 0x3da   :  { %2252 = vmatpush3.msra.mxu0 %v4468_v63  ;;  %v1582_v32 = vpop.permute.xlu1 %1581 }
 0x3db   :  { %2253 = vmatprep.subr.mxu0 %v4468_v63 }
 0x3dc   :  { %v3934_v29 = vpop.permute.xlu0 %1578  ;;  %2254 = vmatpush3.msra.mxu0 %v4468_v63 }
 0x3dd   :  { %2255 = vmatprep.subr.mxu0 %v4468_v63 }
 0x3de   :  { %2256 = vmatpush3.msra.mxu0 %v4468_v63  ;;  %v3943_v14 = vpop.permute.xlu1 %1575 }
 0x3df   :  { %2257 = vmatprep.subr.mxu0 %v4468_v63 }
 0x3e0   :  { %v1099_v19 = vpop.permute.xlu0 %1098  ;;  %2258 = vmatpush3.msra.mxu0 %v4468_v63 }
 0x3e1   :  { %v1100_v26 = vsel %vm257_vm9, %v3629_v28, %v1099_v19  ;;  %v1103_v30 = vsel %vm257_vm9, %v1099_v19, %v3625_v25  ;;  %2259 = vmatprep.subr.mxu0 %v1598_v17 }
 0x3e2   :  { %v1106_v46 = vmul.f32 %v2665_v36, %v1100_v26  ;;  %v1107_v3 = vmul.f32 %v2662_v35, %v1103_v30  ;;  %2260 = vmatpush3.msra.mxu0 %v1598_v17  ;;  %v1083_v31 = vpop.permute.xlu1 %1082  ;;  %v3988_v17 = vsel %vm1560_vm10, 1.0, %v4468_v63  ;;  %v1586_v30 = vmul.f32 %v3977_v58, %v1585_v50 }
 0x3e3   :  { %v1084_v28 = vsel %vm4512_vm13, %v3633_v62, %v1083_v31  ;;  %v1087_v25 = vsel %vm4513_vm14, %v1083_v31, %v3637_v7  ;;  %2261 = vmatprep.subr.mxu0 %v1595_v55  ;;  %vm4541_vm14 = vmmov %vm4517_vm5 }
 0x3e4   :  { %v1090_v9 = vmul.f32 %v2702_v52, %v1084_v28  ;;  %v1091_v59 = vmul.f32 %v2697_v51, %v1087_v25  ;;  %1194 = vmatprep.subr.mxu1 %v1107_v3  ;;  %v1067_v4 = vpop.permute.xlu0 %1066  ;;  %2262 = vmatpush3.msra.mxu0 %v1595_v55  ;;  %v4521_v25 = vld [vmem:[#allocation13_spill] sm:$0xff] }
 0x3e5   :  { %v1068_v62 = vsel %vm4514_vm6, %v3645_v10, %v1067_v4  ;;  %v1071_v7 = vsel %vm4515_vm11, %v1067_v4, %v3641_v48  ;;  %1195 = vmatpush1.msra.mxu1 %v1106_v46  ;;  %2263 = vmatprep.subr.mxu0 %v1592_v24  ;;  %vm4543_vm11 = vmmov %vm4519_vm7 }
 0x3e6   :  { %v1074_v19 = vmul.f32 %v2743_v13, %v1068_v62  ;;  %v1075_v26 = vmul.f32 %v2740_v12, %v1071_v7  ;;  %1196 = vmatprep.subr.mxu1 %v1091_v59  ;;  %2264 = vmatpush3.msra.mxu0 %v1592_v24  ;;  %v1051_v55 = vpop.permute.xlu1 %1050  ;;  %v4006_v24 = vsel %vm1551_vm0, 1.0, %v4468_v63  ;;  %v4522_v59 = vld [vmem:[#allocation2_spill] sm:$0xff]  ;;  %v4524_v62 = vld [vmem:[#allocation16_spill] sm:$0xff]  ;;  %vm4537_vm0 = vmmov %vm4512_vm13 }
 0x3e7   :  { %v1052_v48 = vsel %vm4516_vm15, %v3649_v40, %v1051_v55  ;;  %v1055_v10 = vsel %vm4517_vm5, %v1051_v55, %v3653_v0  ;;  %1197 = vmatpush1.msra.mxu1 %v1090_v9  ;;  %2265 = vmatprep.subr.mxu0 %v1589_v53  ;;  %v1583_v40 = vmul.f32 %v3988_v17, %v1582_v32  ;;  %v4525_v7 = vld [vmem:[#allocation10_spill] sm:$0xff]  ;;  %vm4538_vm10 = vmmov %vm4537_vm0 }
 0x3e8   :  { %v1058_v45 = vmul.f32 %v2767_v37, %v1052_v48  ;;  %v1059_v50 = vmul.f32 %v2762_v33, %v1055_v10  ;;  %v1033_v46 = vpop.permute.xlu0 %1032  ;;  %1198 = vmatprep.subr.mxu1 %v1075_v26  ;;  %2266 = vmatpush3.msra.mxu0 %v1589_v53  ;;  %v1580_v32 = vmul.f32 %v4006_v24, %v3934_v29  ;;  %v4520_v53 = vld [vmem:[#allocation4_spill] sm:$0xff]  ;;  %v4523_v29 = vld [vmem:[#allocation5_spill] sm:$0xff]  ;;  %v4527_v55 = vld [vmem:[#allocation14_spill] sm:$0xff] }
 0x3e9   :  { %v1036_v0 = vsel %vm4518_vm8, %v1033_v46, %v3705_v22  ;;  %1199 = vmatpush1.msra.mxu1 %v1074_v19  ;;  %2267 = vmatprep.subr.mxu0 %v3611_v20  ;;  %v1037_v3 = vsel %vm4519_vm7, %v3709_v16, %v1033_v46  ;;  %v4526_v19 = vld [vmem:[#allocation6_spill] sm:$0xff]  ;;  %v4528_v10 = vld [vmem:[#allocation7_spill] sm:$0xff]  ;;  %v4530_v46 = vld [vmem:[#allocation8_spill] sm:$0xff] }
 0x3ea   :  { %1200 = vmatprep.subr.mxu1 %v1059_v50  ;;  %2268 = vmatpush3.msra.mxu0 %v3611_v20  ;;  %v1017_v31 = vpop.permute.xlu1 %1016  ;;  %v1043_v28 = vmul.f32 %v4520_v53, %v1036_v0  ;;  %v1577_v20 = vmul.f32 %v4016_v34, %v3943_v14  ;;  %v1042_v4 = vmul.f32 %v4523_v29, %v1037_v3  ;;  %v4531_v3 = vld [vmem:[#allocation17_spill] sm:$0xff]  ;;  %vm4540_vm13 = vmmov %vm4514_vm6 }
 0x3eb   :  { %v1020_v22 = vsel %vm172_vm2, %v1017_v31, %v3725_v39  ;;  %1201 = vmatpush1.msra.mxu1 %v1058_v45  ;;  %2269 = vmatprep.subr.mxu0 %v1586_v30  ;;  %v1021_v9 = vsel %vm172_vm2, %v4521_v25, %v1017_v31  ;;  %v4529_v45 = vld [vmem:[#allocation18_spill] sm:$0xff]  ;;  %v4533_v25 = vld [vmem:[#allocation11_spill] sm:$0xff] }
 0x3ec   :  { %v1001_v16 = vpop.permute.xlu0 %1000  ;;  %1202 = vmatprep.subr.mxu1 %v4522_v59  ;;  %2270 = vmatpush3.msra.mxu0 %v1586_v30  ;;  %v1027_v26 = vmul.f32 %v4526_v19, %v1020_v22  ;;  %v1026_v14 = vmul.f32 %v4528_v10, %v1021_v9  ;;  %v4532_v22 = vld [vmem:[#allocation9_spill] sm:$0xff] }
 0x3ed   :  { %v1004_v39 = vsel %vm155_vm3, %v1001_v16, %v4524_v62  ;;  %1203 = vmatpush1.msra.mxu1 %v4525_v7  ;;  %2271 = vmatprep.subr.mxu0 %v1583_v40  ;;  %v1005_v48 = vsel %vm155_vm3, %v4527_v55, %v1001_v16  ;;  %v4534_v16 = vld [vmem:[#allocation12_spill] sm:$0xff] }
 0x3ee   :  { %1204 = vmatprep.subr.mxu1 %v1043_v28  ;;  %2272 = vmatpush3.msra.mxu0 %v1583_v40  ;;  %v985_v30 = vpop.permute.xlu1 %984  ;;  %v1011_v0 = vmul.f32 %v4530_v46, %v1004_v39  ;;  %v1600_v40 = vld [vmem:[%s4384_s1 + $0x38] sm:$0xff]  ;;  %v1010_v28 = vmul.f32 %v4532_v22, %v1005_v48  ;;  %v4536_v7 = vld [vmem:[#allocation20_spill] sm:$0xff] }
 0x3ef   :  { %v988_v50 = vsel %vm138_vm12, %v985_v30, %v4529_v45  ;;  %1205 = vmatpush1.msra.mxu1 %v1042_v4  ;;  %2273 = vmatprep.subr.mxu0 %v1580_v32  ;;  %v989_v31 = vsel %vm138_vm12, %v4531_v3, %v985_v30 }
 0x3f0   :  { %1206 = vmatprep.subr.mxu1 %v1027_v26  ;;  %2274 = vmatpush3.msra.mxu0 %v1580_v32  ;;  %v995_v9 = vmul.f32 %v4533_v25, %v988_v50  ;;  %v994_v59 = vmul.f32 %v4534_v16, %v989_v31  ;;  %v4535_v32 = vld [vmem:[#allocation19_spill] sm:$0xff] }
 0x3f1   :  { %1207 = vmatpush1.msra.mxu1 %v1026_v14  ;;  %2275 = vmatprep.subr.mxu0 %v1577_v20 }
 0x3f2   :  { %1208 = vmatprep.subr.mxu1 %v1011_v0  ;;  %2276 = vmatpush3.msra.mxu0 %v1577_v20  ;;  %v1370_v20 = vpop.permute.xlu0 %1369  ;;  %v1354_v4 = vpop.permute.xlu1 %1353 }
 0x3f3   :  { %1209 = vmatpush1.msra.mxu1 %v1010_v28  ;;  %2278 = vmatmul.mubr.f32.vlgmr.msra.gmra.mxu0 %v1600_v40  ;;  %v1374_v39 = vsel %vm257_vm9, %v1370_v20, %v3782_v18  ;;  %v1371_v26 = vsel %vm257_vm9, %v4536_v7, %v1370_v20  ;;  %v1358_v48 = vsel %vm4537_vm0, %v1354_v4, %v3794_v15  ;;  %vm4539_vm9 = vmmov %vm4514_vm6  ;;  %v4546_v28 = vld [vmem:[#allocation3_spill] sm:$0xff] }
 0x3f4   :  { %1210 = vmatprep.subr.mxu1 %v995_v9  ;;  %2315 = vmatprep.subr.mxu0 %v4468_v63  ;;  %v1378_v18 = vmul.f32 %v2662_v35, %v1374_v39  ;;  %v1355_v30 = vsel %vm4538_vm10, %v3790_v56, %v1354_v4  ;;  %v1377_v14 = vmul.f32 %v2665_v36, %v1371_v26  ;;  %vm4542_vm6 = vmmov %vm4517_vm5 }
 0x3f5   :  { %1211 = vmatpush1.msra.mxu1 %v994_v59  ;;  %2316 = vmatpush3.msk.msra.mxu0 %vm2485_vm1, %v4466_v23  ;;  %v1362_v35 = vmul.f32 %v2697_v51, %v1358_v48  ;;  %v1361_v36 = vmul.f32 %v2702_v52, %v1355_v30 }
 0x3f6   :  { %2138 = vmatprep.subr.msk.mxu1 %vm2485_vm1, %v4466_v23  ;;  %1245 = vmatmul.mubr.f32.vlgmr.msra.gmra.mxu1 %v4535_v32  ;;  %v1338_v62 = vpop.permute.xlu0 %1337  ;;  %v1322_v55 = vpop.permute.xlu1 %1321 }
 0x3f7   :  { %2140 = vmatpush1.msk.msra.mxu1 %vm2485_vm1, %v4466_v23  ;;  %2317 = vmatprep.subr.mxu0 %v4468_v63  ;;  %v1342_v15 = vsel %vm4539_vm9, %v1338_v62, %v3798_v54  ;;  %v1339_v56 = vsel %vm4540_vm13, %v3800_v57, %v1338_v62  ;;  %v1326_v54 = vsel %vm4541_vm14, %v1322_v55, %v3804_v42 }
 0x3f8   :  { %1453 = vmatprep.subr.mxu1 %v4468_v63  ;;  %2318 = vmatpush3.msra.mxu0 %v4468_v63  ;;  %v1346_v50 = vmul.f32 %v2740_v12, %v1342_v15  ;;  %v1323_v51 = vsel %vm4542_vm6, %v3802_v49, %v1322_v55  ;;  %v1345_v57 = vmul.f32 %v2743_v13, %v1339_v56 }
 0x3f9   :  { %1454 = vmatpush1.msra.mxu1 %v4468_v63  ;;  %2319 = vmatprep.subr.mxu0 %v4468_v63  ;;  %v1330_v3 = vmul.f32 %v2762_v33, %v1326_v54  ;;  %v1329_v52 = vmul.f32 %v2767_v37, %v1323_v51 }
 0x3fa   :  { %1455 = vmatprep.subr.mxu1 %v4468_v63  ;;  %2320 = vmatpush3.msra.mxu0 %v4468_v63  ;;  %v1304_v45 = vpop.permute.xlu0 %1303  ;;  %v1288_v0 = vpop.permute.xlu1 %1287 }
 0x3fb   :  { %1456 = vmatpush1.msra.mxu1 %v4468_v63  ;;  %2321 = vmatprep.subr.mxu0 %v4468_v63  ;;  %v1307_v42 = vsel %vm4543_vm11, %v1304_v45, %v3838_v38  ;;  %v1308_v12 = vsel %vm4544_vm4, %v3843_v61, %v1304_v45  ;;  %v1291_v13 = vsel %vm172_vm2, %v1288_v0, %v3858_v5  ;;  %v4545_v38 = vld [vmem:[#allocation15_spill] sm:$0xff] }
 0x3fc   :  { %1457 = vmatprep.subr.mxu1 %v4468_v63  ;;  %2322 = vmatpush3.msra.mxu0 %v4468_v63  ;;  %v1314_v33 = vmul.f32 %v4520_v53, %v1307_v42  ;;  %v1292_v37 = vsel %vm172_vm2, %v3849_v44, %v1288_v0  ;;  %v1313_v40 = vmul.f32 %v4523_v29, %v1308_v12 }
 0x3fd   :  { %1458 = vmatpush1.msra.mxu1 %v4468_v63  ;;  %1515 = vmatprep.mubr.f32.mxu1 %v4468_v63  ;;  %v1298_v5 = vmul.f32 %v4526_v19, %v1291_v13  ;;  %v1297_v44 = vmul.f32 %v4528_v10, %v1292_v37 }
 0x3fe   :  { %1459 = vmatprep.subr.mxu1 %v4468_v63  ;;  %2323 = vmatprep.subr.mxu0 %v4468_v63  ;;  %v1272_v49 = vpop.permute.xlu0 %1271  ;;  %v1256_v31 = vpop.permute.xlu1 %1255 }
 0x3ff   :  { %1460 = vmatpush1.msra.mxu1 %v4468_v63  ;;  %2324 = vmatpush3.msra.mxu0 %v4468_v63  ;;  %v1275_v61 = vsel %vm155_vm3, %v1272_v49, %v3864_v27  ;;  %v1276_v53 = vsel %vm155_vm3, %v3869_v2, %v1272_v49  ;;  %v1259_v9 = vsel %vm138_vm12, %v1256_v31, %v3883_v41  ;;  %v4547_v41 = vlaneseq }
 0x400   :  { %1461 = vmatprep.subr.mxu1 %v4468_v63  ;;  %2325 = vmatprep.subr.mxu0 %v4468_v63  ;;  %v1282_v29 = vmul.f32 %v4530_v46, %v1275_v61  ;;  %v1260_v27 = vsel %vm138_vm12, %v3875_v43, %v1256_v31  ;;  %v1281_v19 = vmul.f32 %v4532_v22, %v1276_v53  ;;  %vm2453_vm3 = vmmov 0  }
 0x401   :  { %1462 = vmatpush1.msra.mxu1 %v4468_v63  ;;  %2326 = vmatpush3.msra.mxu0 %v4468_v63  ;;  %v1266_v2 = vmul.f32 %v4533_v25, %v1259_v9  ;;  %v1265_v10 = vmul.f32 %v4534_v16, %v1260_v27 }
 0x402   :  { %1463 = vmatprep.subr.mxu1 %v4468_v63  ;;  %2327 = vmatprep.subr.mxu0 %v4468_v63 }
 0x403   :  { %1464 = vmatpush1.msra.mxu1 %v4468_v63  ;;  %2328 = vmatpush3.msra.mxu0 %v4468_v63 }
 0x404   :  { %1465 = vmatprep.subr.mxu1 %v1378_v18  ;;  %2329 = vmatprep.subr.mxu0 %v4468_v63 }
 0x405   :  { %1466 = vmatpush1.msra.mxu1 %v1377_v14  ;;  %2347 = vmatprep.mubr.msk.f32.mxu0 %vm2453_vm3, %v4468_v63 }
 0x406   :  { %1467 = vmatprep.subr.mxu1 %v1362_v35 }
 0x407   :  { %1468 = vmatpush1.msra.mxu1 %v1361_v36 }
 0x408   :  { %1469 = vmatprep.subr.mxu1 %v1346_v50 }
 0x409   :  { %1470 = vmatpush1.msra.mxu1 %v1345_v57 }
 0x40a   :  { %1471 = vmatprep.subr.mxu1 %v1330_v3 }
 0x40b   :  { %1472 = vmatpush1.msra.mxu1 %v1329_v52 }
 0x40c   :  { %1473 = vmatprep.subr.mxu1 %v4545_v38 }
 0x40d   :  { %1474 = vmatpush1.msra.mxu1 %v4546_v28 }
 0x40e   :  { %1475 = vmatprep.subr.mxu1 %v1314_v33 }
 0x40f   :  { %1476 = vmatpush1.msra.mxu1 %v1313_v40 }
 0x410   :  { %1477 = vmatprep.subr.mxu1 %v1298_v5 }
 0x411   :  { %1478 = vmatpush1.msra.mxu1 %v1297_v44 }
 0x412   :  { %1479 = vmatprep.subr.mxu1 %v1282_v29 }
 0x413   :  { %1480 = vmatpush1.msra.mxu1 %v1281_v19 }
 0x414   :  { %1481 = vmatprep.subr.mxu1 %v1266_v2 }
 0x415   :  { %1482 = vmatpush1.msra.mxu1 %v1265_v10 }
 0x416   :  { %2280 = vmatprep.subr.mxu1 %v4468_v63  ;;  %1516 = vmatmul.mubr.f32.vlgmr.msra.gmra.mxu1 %v3896_v1  ;;  %v4185_v1 = vshrl.u32 %v4547_v41, 7 }
 0x417   :  { %2281 = vmatpush3.msk.msra.mxu1 %vm2485_vm1, %v4466_v23  ;;  %2312 = vmatprep.mubr.msk.f32.mxu1 %vm2453_vm3, %v4468_v63 }
 0x418   :  { %2282 = vmatprep.subr.mxu1 %v4468_v63  ;;  %vm1532_vm2 = vcmp.lt.s32.totalorder %v4185_v1, 4 }
 0x419   :  { %2283 = vmatpush3.msra.mxu1 %v4468_v63 }
 0x41a   :  { %2284 = vmatprep.subr.mxu1 %v4468_v63 }
 0x41b   :  { %2285 = vmatpush3.msra.mxu1 %v4468_v63 }
 0x41c   :  { %2286 = vmatprep.subr.mxu1 %v4468_v63 }
 0x41d   :  { %2287 = vmatpush3.msra.mxu1 %v4468_v63 }
 0x41e   :  { %2288 = vmatprep.subr.mxu1 %v4468_v63 }
 0x41f   :  { %2289 = vmatpush3.msra.mxu1 %v4468_v63 }
 0x420   :  { %2290 = vmatprep.subr.mxu1 %v4468_v63 }
 0x421   :  { %2291 = vmatpush3.msra.mxu1 %v4468_v63 }
 0x422   :  { %2292 = vmatprep.subr.mxu1 %v4468_v63 }
 0x423   :  { %2293 = vmatpush3.msra.mxu1 %v4468_v63 }
 0x424   :  { %2294 = vmatprep.subr.mxu1 %v4468_v63 }
 0x45a   :  { %v1175_v8 = vpop.f32.mrf.mxu0 }
 0x45b   :  { %1539 = vst [vmem:[%s4385_s2] sm:$0xff] %v1175_v8 }
 0x45c   :  { %v1177_v43 = vpop.f32.mrf.mxu0 }
 0x45d   :  { %1540 = vst [vmem:[%s4385_s2 + $0x8] sm:$0xff] %v1177_v43  ;;  %v1798_v43 = vld [vmem:[%s4384_s1 + $0x48] sm:$0xff] }
 0x493   :  { %v1446_v46 = vpop.f32.mrf.mxu0 }
 0x494   :  { %v1524_v22 = vmax.f32 %v1446_v46, 0.0 }
 0x495   :  { %v1448_v25 = vpop.f32.mrf.mxu0 }
 0x496   :  { %v1528_v16 = vmul.f32 8.0, %v1524_v22  ;;  %v1525_v59 = vmax.f32 %v1448_v25, 0.0 }
 0x498   :  { %v1535_v32 = vsel %vm1532_vm2, %v1528_v16, %v1446_v46  ;;  %v1529_v20 = vmul.f32 8.0, %v1525_v59  ;;  %v1702_v16 = vld [vmem:[%s4384_s1 + $0x40] sm:$0xff] }
 0x499   :  { %1543 = vst [vmem:[%s4385_s2 + $0x28] sm:$0xff] %v1535_v32 }
 0x49a   :  { %v1536_v4 = vsel %vm1532_vm2, %v1529_v20, %v1448_v25 }
 0x49b   :  { %1544 = vst [vmem:[%s4385_s2 + $0x30] sm:$0xff] %v1536_v4 }
 0x4b3   :  { %v2279_v62 = vpop.f32.mrf.mxu0 }
 0x4b4   :  { %v1677_v39 = vmax.f32 %v2279_v62, 0.0 }
 0x4b5   :  { %v1667_v7 = vpop.f32.mrf.mxu0 }
 0x4b6   :  { %1792 = vrot.lane.b32.xlu1 %v1677_v39, %s2448_s8  ;;  %1795 = vrot.lane.b32.xlu0 %v1677_v39, %s2447_s7  ;;  %v4202_v26 = vmax.f32 %v1667_v7, 0.0  ;;  %v1246_v55 = vpop.f32.mrf.mxu1 }
 0x4b7   :  { %1541 = vst [vmem:[%s4385_s2 + $0x10] sm:$0xff] %v1246_v55 }
 0x4b8   :  { %v1248_v48 = vpop.f32.mrf.mxu1 }
 0x4b9   :  { %1542 = vst [vmem:[%s4385_s2 + $0x18] sm:$0xff] %v1248_v48 }
 0x4ba   :  { %1789 = vrot.lane.b32.xlu1 %v1677_v39, %s2449_s9  ;;  %1783 = vrot.lane.b32.xlu0 %v1677_v39, %s2443_s21 }
 0x4be   :  { %1786 = vrot.lane.b32.xlu1 %v1677_v39, %s2442_s20  ;;  %1699 = vrot.lane.b32.xlu0 %v4202_v26, %s2447_s7 }
 0x4c2   :  { %1780 = vrot.lane.b32.xlu1 %v1677_v39, %s2450_s0  ;;  %1696 = vrot.lane.b32.xlu0 %v4202_v26, %s2448_s8 }
 0x4c6   :  { %1690 = vrot.lane.b32.xlu1 %v4202_v26, %s2442_s20  ;;  %1693 = vrot.lane.b32.xlu0 %v4202_v26, %s2449_s9 }
 0x4ca   :  { %1777 = vrot.lane.b32.xlu1 %v1677_v39, %s2451_s10  ;;  %1687 = vrot.lane.b32.xlu0 %v4202_v26, %s2443_s21 }
 0x4ce   :  { %1774 = vrot.lane.b32.xlu1 %v1677_v39, %s2452_s11  ;;  %1684 = vrot.lane.b32.xlu0 %v4202_v26, %s2450_s0 }
 0x4d2   :  { %1678 = vrot.lane.b32.xlu1 %v4202_v26, %s2452_s11  ;;  %1681 = vrot.lane.b32.xlu0 %v4202_v26, %s2451_s10 }
 0x4d6   :  { %v1517_v18 = vpop.f32.mrf.mxu1 }
 0x4d7   :  { %v1526_v30 = vmax.f32 %v1517_v18, 0.0 }
 0x4d8   :  { %v1519_v14 = vpop.f32.mrf.mxu1 }
 0x4d9   :  { %v1530_v15 = vmul.f32 8.0, %v1526_v30  ;;  %v1527_v35 = vmax.f32 %v1519_v14, 0.0 }
 0x4db   :  { %v1537_v56 = vsel %vm1532_vm2, %v1530_v15, %v1517_v18  ;;  %v1531_v45 = vmul.f32 8.0, %v1527_v35 }
 0x4dc   :  { %1545 = vst [vmem:[%s4385_s2 + $0x38] sm:$0xff] %v1537_v56 }
 0x4dd   :  { %v1538_v36 = vsel %vm1532_vm2, %v1531_v45, %v1519_v14 }
 0x4de   :  { %1546 = vst [vmem:[%s4385_s2 + $0x40] sm:$0xff] %v1538_v36 }
 0x528   :  { %v1796_v54 = vpop.permute.xlu0 %1795  ;;  %v1793_v50 = vpop.permute.xlu1 %1792 }
 0x529   :  { %v1797_v51 = vmul.f32 %v3921_v21, %v1796_v54  ;;  %v1794_v0 = vmul.f32 %v3932_v11, %v1793_v50 }
 0x52b   :  { %2330 = vmatpush3.msra.mxu0 %v1797_v51 }
 0x52c   :  { %2331 = vmatprep.subr.mxu0 %v4468_v63  ;;  %v1784_v57 = vpop.permute.xlu0 %1783  ;;  %v1790_v3 = vpop.permute.xlu1 %1789 }
 0x52d   :  { %v1791_v52 = vmul.f32 %v3940_v47, %v1790_v3  ;;  %2332 = vmatpush3.msra.mxu0 %v1794_v0  ;;  %v1785_v31 = vmul.f32 %v3977_v58, %v1784_v57 }
 0x52e   :  { %2333 = vmatprep.subr.mxu0 %v4468_v63 }
 0x52f   :  { %2334 = vmatpush3.msra.mxu0 %v1791_v52 }
 0x530   :  { %v1700_v42 = vpop.permute.xlu0 %1699  ;;  %v1787_v12 = vpop.permute.xlu1 %1786  ;;  %2335 = vmatprep.subr.mxu0 %v4468_v63 }
 0x531   :  { %v1701_v49 = vmul.f32 %v3921_v21, %v1700_v42  ;;  %v1788_v13 = vmul.f32 %v3950_v6, %v1787_v12 }
 0x533   :  { %2295 = vmatpush3.msra.mxu1 %v1701_v49  ;;  %2336 = vmatpush3.msra.mxu0 %v1788_v13  ;;  %v1989_v13 = vld [vmem:[%s4384_s1 + $0x58] sm:$0xff] }
 0x534   :  { %v1697_v33 = vpop.permute.xlu0 %1696  ;;  %2337 = vmatprep.subr.mxu0 %v4468_v63  ;;  %v1781_v37 = vpop.permute.xlu1 %1780  ;;  %2296 = vmatprep.subr.mxu1 %v4468_v63 }
 0x535   :  { %v1698_v38 = vmul.f32 %v3932_v11, %v1697_v33  ;;  %2338 = vmatpush3.msra.mxu0 %v1677_v39  ;;  %v1782_v40 = vmul.f32 %v3988_v17, %v1781_v37 }
 0x536   :  { %2339 = vmatprep.subr.mxu0 %v4468_v63 }
 0x537   :  { %2297 = vmatpush3.msra.mxu1 %v1698_v38  ;;  %2340 = vmatpush3.msra.mxu0 %v1785_v31  ;;  %v1894_v31 = vld [vmem:[%s4384_s1 + $0x50] sm:$0xff] }
 0x538   :  { %v1694_v61 = vpop.permute.xlu0 %1693  ;;  %2341 = vmatprep.subr.mxu0 %v4468_v63  ;;  %v1691_v28 = vpop.permute.xlu1 %1690  ;;  %2298 = vmatprep.subr.mxu1 %v4468_v63 }
 0x539   :  { %v1695_v5 = vmul.f32 %v3940_v47, %v1694_v61  ;;  %2342 = vmatpush3.msra.mxu0 %v1782_v40  ;;  %v1692_v53 = vmul.f32 %v3950_v6, %v1691_v28 }
 0x53a   :  { %2343 = vmatprep.subr.mxu0 %v4468_v63 }
 0x53b   :  { %2299 = vmatpush3.msra.mxu1 %v1695_v5 }
 0x53c   :  { %v1688_v44 = vpop.permute.xlu0 %1687  ;;  %2300 = vmatprep.subr.mxu1 %v4468_v63  ;;  %v1778_v9 = vpop.permute.xlu1 %1777 }
 0x53d   :  { %v1779_v29 = vmul.f32 %v4006_v24, %v1778_v9  ;;  %2301 = vmatpush3.msra.mxu1 %v1692_v53  ;;  %v1689_v27 = vmul.f32 %v3977_v58, %v1688_v44 }
 0x53e   :  { %2302 = vmatprep.subr.mxu1 %v4468_v63 }
 0x53f   :  { %2303 = vmatpush3.msra.mxu1 %v4202_v26  ;;  %2344 = vmatpush3.msra.mxu0 %v1779_v29 }
 0x540   :  { %v1685_v19 = vpop.permute.xlu0 %1684  ;;  %2304 = vmatprep.subr.mxu1 %v4468_v63  ;;  %v1775_v2 = vpop.permute.xlu1 %1774  ;;  %2345 = vmatprep.subr.mxu0 %v4468_v63 }
 0x541   :  { %v1686_v10 = vmul.f32 %v3988_v17, %v1685_v19  ;;  %v1776_v8 = vmul.f32 %v4016_v34, %v1775_v2  ;;  %2305 = vmatpush3.msra.mxu1 %v1689_v27 }
 0x542   :  { %2306 = vmatprep.subr.mxu1 %v4468_v63 }
 0x543   :  { %2307 = vmatpush3.msra.mxu1 %v1686_v10  ;;  %2346 = vmatpush3.msra.mxu0 %v1776_v8 }
 0x544   :  { %v1682_v41 = vpop.permute.xlu0 %1681  ;;  %2348 = vmatmul.mubr.f32.vlgmr.msra.gmra.mxu0 %v1798_v43  ;;  %v1679_v46 = vpop.permute.xlu1 %1678  ;;  %2308 = vmatprep.subr.mxu1 %v4468_v63 }
 0x545   :  { %v1683_v22 = vmul.f32 %v4006_v24, %v1682_v41  ;;  %2385 = vmatprep.subr.mxu0 %v4468_v63  ;;  %2417 = vmatprep.mubr.msk.f32.mxu0 %vm2453_vm3, %v4468_v63  ;;  %v1680_v25 = vmul.f32 %v4016_v34, %v1679_v46 }
 0x546   :  { %2386 = vmatpush3.msk.msra.mxu0 %vm2485_vm1, %v4466_v23 }
 0x547   :  { %2309 = vmatpush3.msra.mxu1 %v1683_v22  ;;  %2387 = vmatprep.subr.mxu0 %v4468_v63 }
 0x548   :  { %2310 = vmatprep.subr.mxu1 %v4468_v63  ;;  %2388 = vmatpush3.msra.mxu0 %v4468_v63 }
 0x549   :  { %2311 = vmatpush3.msra.mxu1 %v1680_v25  ;;  %2389 = vmatprep.subr.mxu0 %v4468_v63 }
 0x54a   :  { %2313 = vmatmul.mubr.f32.vlgmr.msra.gmra.mxu1 %v1702_v16  ;;  %2390 = vmatpush3.msra.mxu0 %v4468_v63 }
 0x54b   :  { %2391 = vmatprep.subr.mxu0 %v4468_v63  ;;  %2350 = vmatprep.subr.mxu1 %v4468_v63 }
 0x54c   :  { %2392 = vmatpush3.msra.mxu0 %v4468_v63  ;;  %2351 = vmatpush3.msk.msra.mxu1 %vm2485_vm1, %v4466_v23 }
 0x54d   :  { %2393 = vmatprep.subr.mxu0 %v4468_v63  ;;  %2352 = vmatprep.subr.mxu1 %v4468_v63 }
 0x54e   :  { %2394 = vmatpush3.msra.mxu0 %v4468_v63  ;;  %2353 = vmatpush3.msra.mxu1 %v4468_v63 }
 0x54f   :  { %2395 = vmatprep.subr.mxu0 %v4468_v63  ;;  %2354 = vmatprep.subr.mxu1 %v4468_v63 }
 0x550   :  { %2396 = vmatpush3.msra.mxu0 %v4468_v63  ;;  %2355 = vmatpush3.msra.mxu1 %v4468_v63 }
 0x551   :  { %2397 = vmatprep.subr.mxu0 %v4468_v63  ;;  %2356 = vmatprep.subr.mxu1 %v4468_v63 }
 0x552   :  { %2398 = vmatpush3.msra.mxu0 %v4468_v63  ;;  %2357 = vmatpush3.msra.mxu1 %v4468_v63 }
 0x553   :  { %2399 = vmatprep.subr.mxu0 %v4468_v63  ;;  %2358 = vmatprep.subr.mxu1 %v4468_v63 }
 0x554   :  { %2359 = vmatpush3.msra.mxu1 %v4468_v63  ;;  %2382 = vmatprep.mubr.msk.f32.mxu1 %vm2453_vm3, %v4468_v63 }
 0x555   :  { %2360 = vmatprep.subr.mxu1 %v4468_v63 }
 0x556   :  { %2361 = vmatpush3.msra.mxu1 %v4468_v63 }
 0x557   :  { %2362 = vmatprep.subr.mxu1 %v4468_v63 }
 0x558   :  { %2363 = vmatpush3.msra.mxu1 %v4468_v63 }
 0x559   :  { %2364 = vmatprep.subr.mxu1 %v4468_v63 }
 0x604   :  { %v1865_v23 = vpop.f32.mrf.mxu0 }
 0x605   :  { %v1869_v60 = vmax.f32 %v1865_v23, 0.0 }
 0x606   :  { %v2349_v59 = vpop.f32.mrf.mxu0 }
 0x607   :  { %1983 = vrot.lane.b32.xlu1 %v1869_v60, %s2448_s8  ;;  %1986 = vrot.lane.b32.xlu0 %v1869_v60, %s2447_s7 }
 0x60a   :  { %v1769_v32 = vpop.f32.mrf.mxu1 }
 0x60b   :  { %v1773_v20 = vmax.f32 %v1769_v32, 0.0  ;;  %1980 = vrot.lane.b32.xlu1 %v1869_v60, %s2449_s9  ;;  %1974 = vrot.lane.b32.xlu0 %v1869_v60, %s2443_s21 }
 0x60c   :  { %v2314_v4 = vpop.f32.mrf.mxu1 }
 0x60f   :  { %1977 = vrot.lane.b32.xlu1 %v1869_v60, %s2442_s20  ;;  %1891 = vrot.lane.b32.xlu0 %v1773_v20, %s2447_s7 }
 0x613   :  { %1971 = vrot.lane.b32.xlu1 %v1869_v60, %s2450_s0  ;;  %1888 = vrot.lane.b32.xlu0 %v1773_v20, %s2448_s8 }
 0x617   :  { %1882 = vrot.lane.b32.xlu1 %v1773_v20, %s2442_s20  ;;  %1885 = vrot.lane.b32.xlu0 %v1773_v20, %s2449_s9 }
 0x61b   :  { %1968 = vrot.lane.b32.xlu1 %v1869_v60, %s2451_s10  ;;  %1879 = vrot.lane.b32.xlu0 %v1773_v20, %s2443_s21 }
 0x61f   :  { %1965 = vrot.lane.b32.xlu1 %v1869_v60, %s2452_s11  ;;  %1876 = vrot.lane.b32.xlu0 %v1773_v20, %s2450_s0 }
 0x623   :  { %1870 = vrot.lane.b32.xlu1 %v1773_v20, %s2452_s11  ;;  %1873 = vrot.lane.b32.xlu0 %v1773_v20, %s2451_s10 }
 0x679   :  { %v1987_v62 = vpop.permute.xlu0 %1986  ;;  %v1984_v39 = vpop.permute.xlu1 %1983 }
 0x67a   :  { %v1988_v7 = vmul.f32 %v3921_v21, %v1987_v62  ;;  %v1985_v26 = vmul.f32 %v3932_v11, %v1984_v39 }
 0x67c   :  { %2400 = vmatpush3.msra.mxu0 %v1988_v7 }
 0x67d   :  { %2401 = vmatprep.subr.mxu0 %v4468_v63  ;;  %v1975_v55 = vpop.permute.xlu0 %1974  ;;  %v1981_v48 = vpop.permute.xlu1 %1980 }
 0x67e   :  { %v1982_v18 = vmul.f32 %v3940_v47, %v1981_v48  ;;  %2402 = vmatpush3.msra.mxu0 %v1985_v26  ;;  %v1976_v36 = vmul.f32 %v3977_v58, %v1975_v55 }
 0x67f   :  { %2403 = vmatprep.subr.mxu0 %v4468_v63 }
 0x680   :  { %2404 = vmatpush3.msra.mxu0 %v1982_v18 }
 0x681   :  { %v1892_v30 = vpop.permute.xlu0 %1891  ;;  %v1978_v14 = vpop.permute.xlu1 %1977  ;;  %2405 = vmatprep.subr.mxu0 %v4468_v63 }
 0x682   :  { %v1893_v15 = vmul.f32 %v3921_v21, %v1892_v30  ;;  %v1979_v35 = vmul.f32 %v3950_v6, %v1978_v14 }
 0x684   :  { %2365 = vmatpush3.msra.mxu1 %v1893_v15  ;;  %2406 = vmatpush3.msra.mxu0 %v1979_v35 }
 0x685   :  { %v1889_v56 = vpop.permute.xlu0 %1888  ;;  %2407 = vmatprep.subr.mxu0 %v4468_v63  ;;  %v1972_v45 = vpop.permute.xlu1 %1971  ;;  %2366 = vmatprep.subr.mxu1 %v4468_v63 }
 0x686   :  { %v1890_v54 = vmul.f32 %v3932_v11, %v1889_v56  ;;  %2408 = vmatpush3.msra.mxu0 %v1869_v60  ;;  %v1973_v50 = vmul.f32 %v3988_v17, %v1972_v45 }
 0x687   :  { %2409 = vmatprep.subr.mxu0 %v4468_v63 }
 0x688   :  { %2367 = vmatpush3.msra.mxu1 %v1890_v54  ;;  %2410 = vmatpush3.msra.mxu0 %v1976_v36 }
 0x689   :  { %v1886_v21 = vpop.permute.xlu0 %1885  ;;  %2411 = vmatprep.subr.mxu0 %v4468_v63  ;;  %v1883_v51 = vpop.permute.xlu1 %1882  ;;  %2368 = vmatprep.subr.mxu1 %v4468_v63 }
 0x68a   :  { %v1887_v0 = vmul.f32 %v3940_v47, %v1886_v21  ;;  %2412 = vmatpush3.msra.mxu0 %v1973_v50  ;;  %v1884_v11 = vmul.f32 %v3950_v6, %v1883_v51 }
 0x68b   :  { %2413 = vmatprep.subr.mxu0 %v4468_v63 }
 0x68c   :  { %2369 = vmatpush3.msra.mxu1 %v1887_v0 }
 0x68d   :  { %2370 = vmatprep.subr.mxu1 %v4468_v63  ;;  %v1880_v57 = vpop.permute.xlu0 %1879  ;;  %v1969_v3 = vpop.permute.xlu1 %1968 }
 0x68e   :  { %v1970_v52 = vmul.f32 %v4006_v24, %v1969_v3  ;;  %2371 = vmatpush3.msra.mxu1 %v1884_v11  ;;  %v1881_v42 = vmul.f32 %v3977_v58, %v1880_v57 }
 0x68f   :  { %2372 = vmatprep.subr.mxu1 %v4468_v63 }
 0x690   :  { %2373 = vmatpush3.msra.mxu1 %v1773_v20  ;;  %2414 = vmatpush3.msra.mxu0 %v1970_v52 }
 0x691   :  { %v1877_v47 = vpop.permute.xlu0 %1876  ;;  %2374 = vmatprep.subr.mxu1 %v4468_v63  ;;  %v1966_v12 = vpop.permute.xlu1 %1965  ;;  %2415 = vmatprep.subr.mxu0 %v4468_v63 }
 0x692   :  { %v1878_v6 = vmul.f32 %v3988_v17, %v1877_v47  ;;  %v1967_v49 = vmul.f32 %v4016_v34, %v1966_v12  ;;  %2375 = vmatpush3.msra.mxu1 %v1881_v42 }
 0x693   :  { %2376 = vmatprep.subr.mxu1 %v4468_v63 }
 0x694   :  { %2377 = vmatpush3.msra.mxu1 %v1878_v6  ;;  %2416 = vmatpush3.msra.mxu0 %v1967_v49 }
 0x695   :  { %v1874_v58 = vpop.permute.xlu0 %1873  ;;  %2418 = vmatmul.mubr.f32.vlgmr.msra.gmra.mxu0 %v1989_v13  ;;  %v1871_v33 = vpop.permute.xlu1 %1870  ;;  %2378 = vmatprep.subr.mxu1 %v4468_v63 }
 0x696   :  { %v1875_v37 = vmul.f32 %v4006_v24, %v1874_v58  ;;  %v1872_v17 = vmul.f32 %v4016_v34, %v1871_v33 }
 0x698   :  { %2379 = vmatpush3.msra.mxu1 %v1875_v37 }
 0x699   :  { %2380 = vmatprep.subr.mxu1 %v4468_v63 }
 0x69a   :  { %2381 = vmatpush3.msra.mxu1 %v1872_v17 }
 0x69b   :  { %2383 = vmatmul.mubr.f32.vlgmr.msra.gmra.mxu1 %v1894_v31 }
 0x755   :  { %v2056_v38 = vpop.f32.mrf.mxu0 }
 0x756   :  { %v2060_v40 = vmax.f32 %v2056_v38, 0.0 }
 0x757   :  { %v2419_v61 = vpop.f32.mrf.mxu0 }
 0x758   :  { %v2061_v28 = vmul.f32 16.0, %v2060_v40 }
 0x75a   :  { %v2062_v5 = vsel %vm1532_vm2, %v2061_v28, %v2056_v38 }
 0x75b   :  { %2064 = vst [vmem:[%s4385_s2 + $0x48] sm:$0xff] %v2062_v5  ;;  %v1961_v24 = vpop.f32.mrf.mxu1 }
 0x75c   :  { %2063 = vst [vmem:[%s4385_s2 + $0x20] sm:$0xff] %v1961_v24 }
 0x75d   :  { %v2384_v34 = vpop.f32.mrf.mxu1 }

</bundles_post_ra>
